<compile_context>
chip_gen: v5e
topology: v5e:2x2
jax: 0.10.0
libtpu: 0.0.40
codegen_flags: <defaults>
</compile_context>

<pallas_src>
import jax
import jax.numpy as jnp
from jax import lax
from jax.experimental import pallas as pl
from jax.experimental.pallas import tpu as pltpu

DIM = 2
HIDDEN = 64
PACK = 64                      # samples per packed row (free-reshape quantum)
LANES = 2 * PACK               # 128
DEFAULT_BLOCK_ROWS = 2048      # packed rows per grid step (= 131072 samples)
MIN_GRID_STEPS = 8             # keep both v7x TensorCores fed + pipelining
MIN_PALLAS_BATCH = 32768       # below this, fused XLA beats per-step overhead


def _round_up(n, m):
    return ((n + m - 1) // m) * m


def _packing_mats(dtype=jnp.float32):
    """Constant 0/1 lane-map matrices (exact de-interleave via matmul).

    a0: (128,128)  x0_i -> lanes {2i, 2i+1}
    a1: (128,128)  x1_i -> lanes {2i, 2i+1}
    a2: ( 64,128)  t_i  -> lanes {2i, 2i+1}
    """
    src = jnp.arange(LANES)[:, None]
    dst = jnp.arange(LANES)[None, :]
    pair = (dst // 2) * 2
    a0 = (src == pair).astype(dtype)
    a1 = (src == pair + 1).astype(dtype)
    a2 = (jnp.arange(PACK)[:, None] == (dst // 2)).astype(dtype)
    return a0, a1, a2


def _make_kernel(sub_rows):
    hp = jax.lax.Precision.HIGHEST  # keeps the 0/1 matmuls bit-exact in f32

    def kernel(x_ref, t_ref, a0_ref, a1_ref, a2_ref,
               w1_ref, b1_ref, w2_ref, b2_ref, o_ref):
        block_rows = x_ref.shape[0]
        n_sub = block_rows // sub_rows

        # Hoisted once per grid step (don't rebuild broadcasts inside loops).
        lane = lax.broadcasted_iota(jnp.int32, (sub_rows, LANES), 1)
        even = (lane & 1) == 0                               # o0 / o1 lane parity
        bias = jnp.where(even, b2_ref[0], b2_ref[1])         # (sub, 128)
        a0 = a0_ref[...]
        a1 = a1_ref[...]
        a2 = a2_ref[...]

        @pl.loop(0, n_sub)
        def _(c):
            r0 = pl.multiple_of(c * sub_rows, sub_rows)
            xs = x_ref[pl.ds(r0, sub_rows), :]               # (sub, 128) interleaved
            ts = t_ref[pl.ds(r0, sub_rows), :]               # (sub, 64)

            # Align inputs: value of sample i duplicated onto both lanes of its
            # pair {2i, 2i+1} via constant lane->lane matmuls (MXU has slack).
            x0d = jnp.dot(xs, a0, precision=hp, preferred_element_type=jnp.float32)
            x1d = jnp.dot(xs, a1, precision=hp, preferred_element_type=jnp.float32)
            td = jnp.dot(ts, a2, precision=hp, preferred_element_type=jnp.float32)

            # MLP evaluated directly in the packed layout: static loop over the
            # 64 hidden units (VPU); weights are SMEM scalars.  Output lane 2i
            # accumulates W2[:,0], lane 2i+1 accumulates W2[:,1], so the result
            # is produced already interleaved.
            acc = bias
            for h in range(HIDDEN):
                z = (x0d * w1_ref[0, h] + x1d * w1_ref[1, h]
                     + td * w1_ref[2, h] + b1_ref[h])
                r = jnp.maximum(z, 0.0)
                c_h = jnp.where(even, w2_ref[h, 0], w2_ref[h, 1])
                acc = acc + r * c_h

            o_ref[pl.ds(r0, sub_rows), :] = acc              # full-lane store

    return kernel


def _pallas_forward(x, t, w1, b1, w2, b2, *, block_rows):
    B = x.shape[0]
    Bp = _round_up(B, PACK)
    if Bp != B:
        # Pad only to the packing quantum (64), never to a tile multiple.
        x = jnp.pad(x, ((0, Bp - B), (0, 0)))
        t = jnp.pad(t, ((0, Bp - B), (0, 0)))
    R = Bp // PACK

    # Free, metadata-only reshapes: lane-dense packed views.
    xp = x.reshape(R, LANES)
    tp = t.reshape(R, PACK)

    # Packed-row tile: large enough to amortize per-step overhead, clamped to
    # keep >= MIN_GRID_STEPS steps and to not (greatly) exceed the array.
    rb = min(block_rows,
             _round_up(pl.cdiv(R, MIN_GRID_STEPS), 8),
             _round_up(R, 8))
    rb = max(8, rb)
    sub = 32 if rb % 32 == 0 else 8
    assert rb % sub == 0
    grid = (pl.cdiv(R, rb),)

    a0, a1, a2 = _packing_mats()

    # Explicit scoped-VMEM budget: 3 lane-dense blocks x 2 buffers + headroom.
    vmem_limit = int(2 * 3 * rb * LANES * 4 + (4 << 20))

    row_block = lambda lanes: pl.BlockSpec((rb, lanes), lambda i: (i, 0))
    resident = lambda shape: pl.BlockSpec(shape, lambda i: (0, 0))
    smem = pl.BlockSpec(memory_space=pltpu.MemorySpace.SMEM)

    op = pl.pallas_call(
        _make_kernel(sub),
        out_shape=jax.ShapeDtypeStruct((R, LANES), jnp.float32),
        grid=grid,
        in_specs=[
            row_block(LANES),            # packed x   (R, 128)
            row_block(PACK),             # packed t   (R, 64)
            resident((LANES, LANES)),    # a0 (VMEM-resident constants)
            resident((LANES, LANES)),    # a1
            resident((PACK, LANES)),     # a2
            smem,                        # w1 (3, 64)   scalar weights
            smem,                        # b1 (64,)
            smem,                        # w2 (64, 2)
            smem,                        # b2 (2,)
        ],
        out_specs=row_block(LANES),      # packed out (R, 128)
        compiler_params=pltpu.CompilerParams(
            dimension_semantics=("parallel",),
            vmem_limit_bytes=vmem_limit),
    )(xp, tp, a0, a1, a2, w1, b1, w2, b2)

    out = op.reshape(Bp, DIM)            # free reshape back to (Bp, 2)
    return out if Bp == B else out[:B]


def vector_field_forward(x, t, w1, b1, w2, b2, *,
                         block_rows=DEFAULT_BLOCK_ROWS, force_pallas=False):
    """x: (B, 2), t: (B, 1) -> (B, 2).  Matches VectorField.forward."""
    x = jnp.asarray(x, jnp.float32)
    t = jnp.asarray(t, jnp.float32).reshape(x.shape[0], 1)
    b1 = jnp.asarray(b1, jnp.float32).reshape(-1)
    b2 = jnp.asarray(b2, jnp.float32).reshape(-1)
    B = x.shape[0]
    if not force_pallas and B < MIN_PALLAS_BATCH:
        # Small batch: let XLA fuse; the kernel's per-step overhead would lose.
        return reference_forward(x, t, w1, b1, w2, b2)
    return _pallas_forward(x, t, w1, b1, w2, b2, block_rows=block_rows)


def init_params(key):
    """nn.Linear-style init; weights stored transposed (in_features x out)."""
    k1, k2, k3, k4 = jax.random.split(key, 4)
    bound1 = 1.0 / jnp.sqrt(DIM + 1)
    bound2 = 1.0 / jnp.sqrt(HIDDEN)
    w1 = jax.random.uniform(k1, (DIM + 1, HIDDEN), jnp.float32, -bound1, bound1)
    b1 = jax.random.uniform(k2, (HIDDEN,), jnp.float32, -bound1, bound1)
    w2 = jax.random.uniform(k3, (HIDDEN, DIM), jnp.float32, -bound2, bound2)
    b2 = jax.random.uniform(k4, (DIM,), jnp.float32, -bound2, bound2)
    return w1, b1, w2, b2


def reference_forward(x, t, w1, b1, w2, b2):
    xt = jnp.concatenate([x, jnp.reshape(t, (x.shape[0], 1))], axis=1)
    h = jnp.maximum(
        jnp.dot(xt, w1, precision=jax.lax.Precision.HIGHEST)
        + jnp.reshape(b1, (-1,)), 0.0)
    return (jnp.dot(h, w2, precision=jax.lax.Precision.HIGHEST)
            + jnp.reshape(b2, (-1,)))


if __name__ == "__main__":
    key = jax.random.PRNGKey(0)
    kx, kt, kp = jax.random.split(key, 3)
    w1, b1, w2, b2 = init_params(kp)

    def check(batch, **kw):
        kxb, ktb = jax.random.split(jax.random.fold_in(kx, batch))
        x = jax.random.normal(kxb, (batch, DIM), jnp.float32) * 2.0  # noise_data-style
        t = jax.random.uniform(ktb, (batch, 1), jnp.float32)
        out = jax.block_until_ready(
            vector_field_forward(x, t, w1, b1, w2, b2, **kw))
        ref = reference_forward(x, t, w1, b1, w2, b2)
        assert out.shape == (batch, DIM)
        assert jnp.allclose(out, ref, atol=1e-4, rtol=1e-4), \
            f"mismatch vs ref (B={batch})"

    # Small, exactly-packed batch (single grid step); forces the Pallas path.
    check(512, force_pallas=True)
    # Ragged batch: pad-to-64, multi-step "parallel" grid, partial final block.
    check(8232, force_pallas=True)

    print("KERNEL_OK")
</pallas_src>

<mosaic_0001>
module attributes {stable_mosaic.version = 11 : i64} {
  func.func @kernel(%arg0: i32, %arg1: memref<8x128xf32, #tpu.memory_space<vmem>>, %arg2: memref<8x64xf32, #tpu.memory_space<vmem>>, %arg3: memref<128x128xf32, #tpu.memory_space<vmem>>, %arg4: memref<128x128xf32, #tpu.memory_space<vmem>>, %arg5: memref<64x128xf32, #tpu.memory_space<vmem>>, %arg6: memref<3x64xf32, #tpu.memory_space<smem>>, %arg7: memref<64xf32, #tpu.memory_space<smem>>, %arg8: memref<64x2xf32, #tpu.memory_space<smem>>, %arg9: memref<2xf32, #tpu.memory_space<smem>>, %arg10: memref<8x128xf32, #tpu.memory_space<vmem>>) attributes {dimension_semantics = [#tpu.dimension_semantics<parallel>], iteration_bounds = array<i64: 1>, scalar_prefetch = 0 : i64, scratch_operands = 0 : i64, tpu.core_type = #tpu.core_type<tc>, window_params = [{transform_indices = @transform_0, window_bounds = array<i64: 8, 128>}, {transform_indices = @transform_1, window_bounds = array<i64: 8, 64>}, {pipeline_mode = #tpu.pipeline_mode<synchronous>, transform_indices = @transform_2, window_bounds = array<i64: 128, 128>}, {pipeline_mode = #tpu.pipeline_mode<synchronous>, transform_indices = @transform_3, window_bounds = array<i64: 128, 128>}, {pipeline_mode = #tpu.pipeline_mode<synchronous>, transform_indices = @transform_4, window_bounds = array<i64: 64, 128>}, {transform_indices = @transform_5, window_bounds = array<i64: 3, 64>}, {transform_indices = @transform_6, window_bounds = array<i64: 64>}, {transform_indices = @transform_7, window_bounds = array<i64: 64, 2>}, {transform_indices = @transform_8, window_bounds = array<i64: 2>}, {transform_indices = @transform_9, window_bounds = array<i64: 8, 128>}]} {
    %0 = tpu.iota {dimensions = array<i32: 1>} : vector<8x128xi32>
    %c1_i32 = arith.constant 1 : i32
    %1 = vector.broadcast %c1_i32 : i32 to vector<8x128xi32>
    %2 = arith.andi %0, %1 : vector<8x128xi32>
    %c0_i32 = arith.constant 0 : i32
    %3 = vector.broadcast %c0_i32 : i32 to vector<8x128xi32>
    %4 = arith.cmpi eq, %2, %3 : vector<8x128xi32>
    %c0 = arith.constant 0 : index
    %5 = memref.load %arg9[%c0] : memref<2xf32, #tpu.memory_space<smem>>
    %c1 = arith.constant 1 : index
    %6 = memref.load %arg9[%c1] : memref<2xf32, #tpu.memory_space<smem>>
    %7 = vector.broadcast %5 : f32 to vector<8x128xf32>
    %8 = vector.broadcast %6 : f32 to vector<8x128xf32>
    %9 = arith.select %4, %7, %8 : vector<8x128xi1>, vector<8x128xf32>
    %c0_0 = arith.constant 0 : index
    %c0_1 = arith.constant 0 : index
    %10 = vector.load %arg3[%c0_0, %c0_1] : memref<128x128xf32, #tpu.memory_space<vmem>>, vector<128x128xf32>
    %c0_2 = arith.constant 0 : index
    %c0_3 = arith.constant 0 : index
    %11 = vector.load %arg4[%c0_2, %c0_3] : memref<128x128xf32, #tpu.memory_space<vmem>>, vector<128x128xf32>
    %c0_4 = arith.constant 0 : index
    %c0_5 = arith.constant 0 : index
    %12 = vector.load %arg5[%c0_4, %c0_5] : memref<64x128xf32, #tpu.memory_space<vmem>>, vector<64x128xf32>
    %c0_i32_6 = arith.constant 0 : i32
    %c1_i32_7 = arith.constant 1 : i32
    %13 = arith.muli %c0_i32_6, %c1_i32_7 : i32
    %c0_i32_8 = arith.constant 0 : i32
    %14 = arith.addi %c0_i32_8, %13 : i32
    %c8_i32 = arith.constant 8 : i32
    %15 = arith.muli %14, %c8_i32 : i32
    %16 = tpu.assume_multiple %15, 8 : i32
    %17 = arith.index_cast %16 : i32 to index
    %c0_9 = arith.constant 0 : index
    %18 = vector.load %arg1[%17, %c0_9] : memref<8x128xf32, #tpu.memory_space<vmem>>, vector<8x128xf32>
    %19 = arith.index_cast %16 : i32 to index
    %c0_10 = arith.constant 0 : index
    %20 = vector.load %arg2[%19, %c0_10] : memref<8x64xf32, #tpu.memory_space<vmem>>, vector<8x64xf32>
    %cst = arith.constant dense<0.000000e+00> : vector<8x128xf32>
    %21 = tpu.matmul %18, %10, %cst {dimension_numbers = #tpu.dot_dimension_numbers<[1], [0], [0], [1], [0, 0, 1, 1], [], []>, precision = #tpu.contract_precision<fp32>} : vector<8x128xf32>, vector<128x128xf32>, vector<8x128xf32> -> vector<8x128xf32>
    %cst_11 = arith.constant dense<0.000000e+00> : vector<8x128xf32>
    %22 = tpu.matmul %18, %11, %cst_11 {dimension_numbers = #tpu.dot_dimension_numbers<[1], [0], [0], [1], [0, 0, 1, 1], [], []>, precision = #tpu.contract_precision<fp32>} : vector<8x128xf32>, vector<128x128xf32>, vector<8x128xf32> -> vector<8x128xf32>
    %cst_12 = arith.constant dense<0.000000e+00> : vector<8x128xf32>
    %23 = tpu.matmul %20, %12, %cst_12 {dimension_numbers = #tpu.dot_dimension_numbers<[1], [0], [0], [1], [0, 0, 1, 1], [], []>, precision = #tpu.contract_precision<fp32>} : vector<8x64xf32>, vector<64x128xf32>, vector<8x128xf32> -> vector<8x128xf32>
    %c0_13 = arith.constant 0 : index
    %c0_14 = arith.constant 0 : index
    %24 = memref.load %arg6[%c0_13, %c0_14] : memref<3x64xf32, #tpu.memory_space<smem>>
    %25 = vector.broadcast %24 : f32 to vector<8x128xf32>
    %26 = arith.mulf %21, %25 : vector<8x128xf32>
    %c1_15 = arith.constant 1 : index
    %c0_16 = arith.constant 0 : index
    %27 = memref.load %arg6[%c1_15, %c0_16] : memref<3x64xf32, #tpu.memory_space<smem>>
    %28 = vector.broadcast %27 : f32 to vector<8x128xf32>
    %29 = arith.mulf %22, %28 : vector<8x128xf32>
    %30 = arith.addf %26, %29 : vector<8x128xf32>
    %c2 = arith.constant 2 : index
    %c0_17 = arith.constant 0 : index
    %31 = memref.load %arg6[%c2, %c0_17] : memref<3x64xf32, #tpu.memory_space<smem>>
    %32 = vector.broadcast %31 : f32 to vector<8x128xf32>
    %33 = arith.mulf %23, %32 : vector<8x128xf32>
    %34 = arith.addf %30, %33 : vector<8x128xf32>
    %c0_18 = arith.constant 0 : index
    %35 = memref.load %arg7[%c0_18] : memref<64xf32, #tpu.memory_space<smem>>
    %36 = vector.broadcast %35 : f32 to vector<8x128xf32>
    %37 = arith.addf %34, %36 : vector<8x128xf32>
    %cst_19 = arith.constant 0.000000e+00 : f32
    %38 = vector.broadcast %cst_19 : f32 to vector<8x128xf32>
    %39 = arith.maximumf %37, %38 : vector<8x128xf32>
    %c0_20 = arith.constant 0 : index
    %c0_21 = arith.constant 0 : index
    %40 = memref.load %arg8[%c0_20, %c0_21] : memref<64x2xf32, #tpu.memory_space<smem>>
    %c0_22 = arith.constant 0 : index
    %c1_23 = arith.constant 1 : index
    %41 = memref.load %arg8[%c0_22, %c1_23] : memref<64x2xf32, #tpu.memory_space<smem>>
    %42 = vector.broadcast %40 : f32 to vector<8x128xf32>
    %43 = vector.broadcast %41 : f32 to vector<8x128xf32>
    %44 = arith.select %4, %42, %43 : vector<8x128xi1>, vector<8x128xf32>
    %45 = arith.mulf %39, %44 : vector<8x128xf32>
    %46 = arith.addf %9, %45 : vector<8x128xf32>
    %c0_24 = arith.constant 0 : index
    %c1_25 = arith.constant 1 : index
    %47 = memref.load %arg6[%c0_24, %c1_25] : memref<3x64xf32, #tpu.memory_space<smem>>
    %48 = vector.broadcast %47 : f32 to vector<8x128xf32>
    %49 = arith.mulf %21, %48 : vector<8x128xf32>
    %c1_26 = arith.constant 1 : index
    %c1_27 = arith.constant 1 : index
    %50 = memref.load %arg6[%c1_26, %c1_27] : memref<3x64xf32, #tpu.memory_space<smem>>
    %51 = vector.broadcast %50 : f32 to vector<8x128xf32>
    %52 = arith.mulf %22, %51 : vector<8x128xf32>
    %53 = arith.addf %49, %52 : vector<8x128xf32>
    %c2_28 = arith.constant 2 : index
    %c1_29 = arith.constant 1 : index
    %54 = memref.load %arg6[%c2_28, %c1_29] : memref<3x64xf32, #tpu.memory_space<smem>>
    %55 = vector.broadcast %54 : f32 to vector<8x128xf32>
    %56 = arith.mulf %23, %55 : vector<8x128xf32>
    %57 = arith.addf %53, %56 : vector<8x128xf32>
    %c1_30 = arith.constant 1 : index
    %58 = memref.load %arg7[%c1_30] : memref<64xf32, #tpu.memory_space<smem>>
    %59 = vector.broadcast %58 : f32 to vector<8x128xf32>
    %60 = arith.addf %57, %59 : vector<8x128xf32>
    %cst_31 = arith.constant 0.000000e+00 : f32
    %61 = vector.broadcast %cst_31 : f32 to vector<8x128xf32>
    %62 = arith.maximumf %60, %61 : vector<8x128xf32>
    %c1_32 = arith.constant 1 : index
    %c0_33 = arith.constant 0 : index
    %63 = memref.load %arg8[%c1_32, %c0_33] : memref<64x2xf32, #tpu.memory_space<smem>>
    %c1_34 = arith.constant 1 : index
    %c1_35 = arith.constant 1 : index
    %64 = memref.load %arg8[%c1_34, %c1_35] : memref<64x2xf32, #tpu.memory_space<smem>>
    %65 = vector.broadcast %63 : f32 to vector<8x128xf32>
    %66 = vector.broadcast %64 : f32 to vector<8x128xf32>
    %67 = arith.select %4, %65, %66 : vector<8x128xi1>, vector<8x128xf32>
    %68 = arith.mulf %62, %67 : vector<8x128xf32>
    %69 = arith.addf %46, %68 : vector<8x128xf32>
    %c0_36 = arith.constant 0 : index
    %c2_37 = arith.constant 2 : index
    %70 = memref.load %arg6[%c0_36, %c2_37] : memref<3x64xf32, #tpu.memory_space<smem>>
    %71 = vector.broadcast %70 : f32 to vector<8x128xf32>
    %72 = arith.mulf %21, %71 : vector<8x128xf32>
    %c1_38 = arith.constant 1 : index
    %c2_39 = arith.constant 2 : index
    %73 = memref.load %arg6[%c1_38, %c2_39] : memref<3x64xf32, #tpu.memory_space<smem>>
    %74 = vector.broadcast %73 : f32 to vector<8x128xf32>
    %75 = arith.mulf %22, %74 : vector<8x128xf32>
    %76 = arith.addf %72, %75 : vector<8x128xf32>
    %c2_40 = arith.constant 2 : index
    %c2_41 = arith.constant 2 : index
    %77 = memref.load %arg6[%c2_40, %c2_41] : memref<3x64xf32, #tpu.memory_space<smem>>
    %78 = vector.broadcast %77 : f32 to vector<8x128xf32>
    %79 = arith.mulf %23, %78 : vector<8x128xf32>
    %80 = arith.addf %76, %79 : vector<8x128xf32>
    %c2_42 = arith.constant 2 : index
    %81 = memref.load %arg7[%c2_42] : memref<64xf32, #tpu.memory_space<smem>>
    %82 = vector.broadcast %81 : f32 to vector<8x128xf32>
    %83 = arith.addf %80, %82 : vector<8x128xf32>
    %cst_43 = arith.constant 0.000000e+00 : f32
    %84 = vector.broadcast %cst_43 : f32 to vector<8x128xf32>
    %85 = arith.maximumf %83, %84 : vector<8x128xf32>
    %c2_44 = arith.constant 2 : index
    %c0_45 = arith.constant 0 : index
    %86 = memref.load %arg8[%c2_44, %c0_45] : memref<64x2xf32, #tpu.memory_space<smem>>
    %c2_46 = arith.constant 2 : index
    %c1_47 = arith.constant 1 : index
    %87 = memref.load %arg8[%c2_46, %c1_47] : memref<64x2xf32, #tpu.memory_space<smem>>
    %88 = vector.broadcast %86 : f32 to vector<8x128xf32>
    %89 = vector.broadcast %87 : f32 to vector<8x128xf32>
    %90 = arith.select %4, %88, %89 : vector<8x128xi1>, vector<8x128xf32>
    %91 = arith.mulf %85, %90 : vector<8x128xf32>
    %92 = arith.addf %69, %91 : vector<8x128xf32>
    %c0_48 = arith.constant 0 : index
    %c3 = arith.constant 3 : index
    %93 = memref.load %arg6[%c0_48, %c3] : memref<3x64xf32, #tpu.memory_space<smem>>
    %94 = vector.broadcast %93 : f32 to vector<8x128xf32>
    %95 = arith.mulf %21, %94 : vector<8x128xf32>
    %c1_49 = arith.constant 1 : index
    %c3_50 = arith.constant 3 : index
    %96 = memref.load %arg6[%c1_49, %c3_50] : memref<3x64xf32, #tpu.memory_space<smem>>
    %97 = vector.broadcast %96 : f32 to vector<8x128xf32>
    %98 = arith.mulf %22, %97 : vector<8x128xf32>
    %99 = arith.addf %95, %98 : vector<8x128xf32>
    %c2_51 = arith.constant 2 : index
    %c3_52 = arith.constant 3 : index
    %100 = memref.load %arg6[%c2_51, %c3_52] : memref<3x64xf32, #tpu.memory_space<smem>>
    %101 = vector.broadcast %100 : f32 to vector<8x128xf32>
    %102 = arith.mulf %23, %101 : vector<8x128xf32>
    %103 = arith.addf %99, %102 : vector<8x128xf32>
    %c3_53 = arith.constant 3 : index
    %104 = memref.load %arg7[%c3_53] : memref<64xf32, #tpu.memory_space<smem>>
    %105 = vector.broadcast %104 : f32 to vector<8x128xf32>
    %106 = arith.addf %103, %105 : vector<8x128xf32>
    %cst_54 = arith.constant 0.000000e+00 : f32
    %107 = vector.broadcast %cst_54 : f32 to vector<8x128xf32>
    %108 = arith.maximumf %106, %107 : vector<8x128xf32>
    %c3_55 = arith.constant 3 : index
    %c0_56 = arith.constant 0 : index
    %109 = memref.load %arg8[%c3_55, %c0_56] : memref<64x2xf32, #tpu.memory_space<smem>>
    %c3_57 = arith.constant 3 : index
    %c1_58 = arith.constant 1 : index
    %110 = memref.load %arg8[%c3_57, %c1_58] : memref<64x2xf32, #tpu.memory_space<smem>>
    %111 = vector.broadcast %109 : f32 to vector<8x128xf32>
    %112 = vector.broadcast %110 : f32 to vector<8x128xf32>
    %113 = arith.select %4, %111, %112 : vector<8x128xi1>, vector<8x128xf32>
    %114 = arith.mulf %108, %113 : vector<8x128xf32>
    %115 = arith.addf %92, %114 : vector<8x128xf32>
    %c0_59 = arith.constant 0 : index
    %c4 = arith.constant 4 : index
    %116 = memref.load %arg6[%c0_59, %c4] : memref<3x64xf32, #tpu.memory_space<smem>>
    %117 = vector.broadcast %116 : f32 to vector<8x128xf32>
    %118 = arith.mulf %21, %117 : vector<8x128xf32>
    %c1_60 = arith.constant 1 : index
    %c4_61 = arith.constant 4 : index
    %119 = memref.load %arg6[%c1_60, %c4_61] : memref<3x64xf32, #tpu.memory_space<smem>>
    %120 = vector.broadcast %119 : f32 to vector<8x128xf32>
    %121 = arith.mulf %22, %120 : vector<8x128xf32>
    %122 = arith.addf %118, %121 : vector<8x128xf32>
    %c2_62 = arith.constant 2 : index
    %c4_63 = arith.constant 4 : index
    %123 = memref.load %arg6[%c2_62, %c4_63] : memref<3x64xf32, #tpu.memory_space<smem>>
    %124 = vector.broadcast %123 : f32 to vector<8x128xf32>
    %125 = arith.mulf %23, %124 : vector<8x128xf32>
    %126 = arith.addf %122, %125 : vector<8x128xf32>
    %c4_64 = arith.constant 4 : index
    %127 = memref.load %arg7[%c4_64] : memref<64xf32, #tpu.memory_space<smem>>
    %128 = vector.broadcast %127 : f32 to vector<8x128xf32>
    %129 = arith.addf %126, %128 : vector<8x128xf32>
    %cst_65 = arith.constant 0.000000e+00 : f32
    %130 = vector.broadcast %cst_65 : f32 to vector<8x128xf32>
    %131 = arith.maximumf %129, %130 : vector<8x128xf32>
    %c4_66 = arith.constant 4 : index
    %c0_67 = arith.constant 0 : index
    %132 = memref.load %arg8[%c4_66, %c0_67] : memref<64x2xf32, #tpu.memory_space<smem>>
    %c4_68 = arith.constant 4 : index
    %c1_69 = arith.constant 1 : index
    %133 = memref.load %arg8[%c4_68, %c1_69] : memref<64x2xf32, #tpu.memory_space<smem>>
    %134 = vector.broadcast %132 : f32 to vector<8x128xf32>
    %135 = vector.broadcast %133 : f32 to vector<8x128xf32>
    %136 = arith.select %4, %134, %135 : vector<8x128xi1>, vector<8x128xf32>
    %137 = arith.mulf %131, %136 : vector<8x128xf32>
    %138 = arith.addf %115, %137 : vector<8x128xf32>
    %c0_70 = arith.constant 0 : index
    %c5 = arith.constant 5 : index
    %139 = memref.load %arg6[%c0_70, %c5] : memref<3x64xf32, #tpu.memory_space<smem>>
    %140 = vector.broadcast %139 : f32 to vector<8x128xf32>
    %141 = arith.mulf %21, %140 : vector<8x128xf32>
    %c1_71 = arith.constant 1 : index
    %c5_72 = arith.constant 5 : index
    %142 = memref.load %arg6[%c1_71, %c5_72] : memref<3x64xf32, #tpu.memory_space<smem>>
    %143 = vector.broadcast %142 : f32 to vector<8x128xf32>
    %144 = arith.mulf %22, %143 : vector<8x128xf32>
    %145 = arith.addf %141, %144 : vector<8x128xf32>
    %c2_73 = arith.constant 2 : index
    %c5_74 = arith.constant 5 : index
    %146 = memref.load %arg6[%c2_73, %c5_74] : memref<3x64xf32, #tpu.memory_space<smem>>
    %147 = vector.broadcast %146 : f32 to vector<8x128xf32>
    %148 = arith.mulf %23, %147 : vector<8x128xf32>
    %149 = arith.addf %145, %148 : vector<8x128xf32>
    %c5_75 = arith.constant 5 : index
    %150 = memref.load %arg7[%c5_75] : memref<64xf32, #tpu.memory_space<smem>>
    %151 = vector.broadcast %150 : f32 to vector<8x128xf32>
    %152 = arith.addf %149, %151 : vector<8x128xf32>
    %cst_76 = arith.constant 0.000000e+00 : f32
    %153 = vector.broadcast %cst_76 : f32 to vector<8x128xf32>
    %154 = arith.maximumf %152, %153 : vector<8x128xf32>
    %c5_77 = arith.constant 5 : index
    %c0_78 = arith.constant 0 : index
    %155 = memref.load %arg8[%c5_77, %c0_78] : memref<64x2xf32, #tpu.memory_space<smem>>
    %c5_79 = arith.constant 5 : index
    %c1_80 = arith.constant 1 : index
    %156 = memref.load %arg8[%c5_79, %c1_80] : memref<64x2xf32, #tpu.memory_space<smem>>
    %157 = vector.broadcast %155 : f32 to vector<8x128xf32>
    %158 = vector.broadcast %156 : f32 to vector<8x128xf32>
    %159 = arith.select %4, %157, %158 : vector<8x128xi1>, vector<8x128xf32>
    %160 = arith.mulf %154, %159 : vector<8x128xf32>
    %161 = arith.addf %138, %160 : vector<8x128xf32>
    %c0_81 = arith.constant 0 : index
    %c6 = arith.constant 6 : index
    %162 = memref.load %arg6[%c0_81, %c6] : memref<3x64xf32, #tpu.memory_space<smem>>
    %163 = vector.broadcast %162 : f32 to vector<8x128xf32>
    %164 = arith.mulf %21, %163 : vector<8x128xf32>
    %c1_82 = arith.constant 1 : index
    %c6_83 = arith.constant 6 : index
    %165 = memref.load %arg6[%c1_82, %c6_83] : memref<3x64xf32, #tpu.memory_space<smem>>
    %166 = vector.broadcast %165 : f32 to vector<8x128xf32>
    %167 = arith.mulf %22, %166 : vector<8x128xf32>
    %168 = arith.addf %164, %167 : vector<8x128xf32>
    %c2_84 = arith.constant 2 : index
    %c6_85 = arith.constant 6 : index
    %169 = memref.load %arg6[%c2_84, %c6_85] : memref<3x64xf32, #tpu.memory_space<smem>>
    %170 = vector.broadcast %169 : f32 to vector<8x128xf32>
    %171 = arith.mulf %23, %170 : vector<8x128xf32>
    %172 = arith.addf %168, %171 : vector<8x128xf32>
    %c6_86 = arith.constant 6 : index
    %173 = memref.load %arg7[%c6_86] : memref<64xf32, #tpu.memory_space<smem>>
    %174 = vector.broadcast %173 : f32 to vector<8x128xf32>
    %175 = arith.addf %172, %174 : vector<8x128xf32>
    %cst_87 = arith.constant 0.000000e+00 : f32
    %176 = vector.broadcast %cst_87 : f32 to vector<8x128xf32>
    %177 = arith.maximumf %175, %176 : vector<8x128xf32>
    %c6_88 = arith.constant 6 : index
    %c0_89 = arith.constant 0 : index
    %178 = memref.load %arg8[%c6_88, %c0_89] : memref<64x2xf32, #tpu.memory_space<smem>>
    %c6_90 = arith.constant 6 : index
    %c1_91 = arith.constant 1 : index
    %179 = memref.load %arg8[%c6_90, %c1_91] : memref<64x2xf32, #tpu.memory_space<smem>>
    %180 = vector.broadcast %178 : f32 to vector<8x128xf32>
    %181 = vector.broadcast %179 : f32 to vector<8x128xf32>
    %182 = arith.select %4, %180, %181 : vector<8x128xi1>, vector<8x128xf32>
    %183 = arith.mulf %177, %182 : vector<8x128xf32>
    %184 = arith.addf %161, %183 : vector<8x128xf32>
    %c0_92 = arith.constant 0 : index
    %c7 = arith.constant 7 : index
    %185 = memref.load %arg6[%c0_92, %c7] : memref<3x64xf32, #tpu.memory_space<smem>>
    %186 = vector.broadcast %185 : f32 to vector<8x128xf32>
    %187 = arith.mulf %21, %186 : vector<8x128xf32>
    %c1_93 = arith.constant 1 : index
    %c7_94 = arith.constant 7 : index
    %188 = memref.load %arg6[%c1_93, %c7_94] : memref<3x64xf32, #tpu.memory_space<smem>>
    %189 = vector.broadcast %188 : f32 to vector<8x128xf32>
    %190 = arith.mulf %22, %189 : vector<8x128xf32>
    %191 = arith.addf %187, %190 : vector<8x128xf32>
    %c2_95 = arith.constant 2 : index
    %c7_96 = arith.constant 7 : index
    %192 = memref.load %arg6[%c2_95, %c7_96] : memref<3x64xf32, #tpu.memory_space<smem>>
    %193 = vector.broadcast %192 : f32 to vector<8x128xf32>
    %194 = arith.mulf %23, %193 : vector<8x128xf32>
    %195 = arith.addf %191, %194 : vector<8x128xf32>
    %c7_97 = arith.constant 7 : index
    %196 = memref.load %arg7[%c7_97] : memref<64xf32, #tpu.memory_space<smem>>
    %197 = vector.broadcast %196 : f32 to vector<8x128xf32>
    %198 = arith.addf %195, %197 : vector<8x128xf32>
    %cst_98 = arith.constant 0.000000e+00 : f32
    %199 = vector.broadcast %cst_98 : f32 to vector<8x128xf32>
    %200 = arith.maximumf %198, %199 : vector<8x128xf32>
    %c7_99 = arith.constant 7 : index
    %c0_100 = arith.constant 0 : index
    %201 = memref.load %arg8[%c7_99, %c0_100] : memref<64x2xf32, #tpu.memory_space<smem>>
    %c7_101 = arith.constant 7 : index
    %c1_102 = arith.constant 1 : index
    %202 = memref.load %arg8[%c7_101, %c1_102] : memref<64x2xf32, #tpu.memory_space<smem>>
    %203 = vector.broadcast %201 : f32 to vector<8x128xf32>
    %204 = vector.broadcast %202 : f32 to vector<8x128xf32>
    %205 = arith.select %4, %203, %204 : vector<8x128xi1>, vector<8x128xf32>
    %206 = arith.mulf %200, %205 : vector<8x128xf32>
    %207 = arith.addf %184, %206 : vector<8x128xf32>
    %c0_103 = arith.constant 0 : index
    %c8 = arith.constant 8 : index
    %208 = memref.load %arg6[%c0_103, %c8] : memref<3x64xf32, #tpu.memory_space<smem>>
    %209 = vector.broadcast %208 : f32 to vector<8x128xf32>
    %210 = arith.mulf %21, %209 : vector<8x128xf32>
    %c1_104 = arith.constant 1 : index
    %c8_105 = arith.constant 8 : index
    %211 = memref.load %arg6[%c1_104, %c8_105] : memref<3x64xf32, #tpu.memory_space<smem>>
    %212 = vector.broadcast %211 : f32 to vector<8x128xf32>
    %213 = arith.mulf %22, %212 : vector<8x128xf32>
    %214 = arith.addf %210, %213 : vector<8x128xf32>
    %c2_106 = arith.constant 2 : index
    %c8_107 = arith.constant 8 : index
    %215 = memref.load %arg6[%c2_106, %c8_107] : memref<3x64xf32, #tpu.memory_space<smem>>
    %216 = vector.broadcast %215 : f32 to vector<8x128xf32>
    %217 = arith.mulf %23, %216 : vector<8x128xf32>
    %218 = arith.addf %214, %217 : vector<8x128xf32>
    %c8_108 = arith.constant 8 : index
    %219 = memref.load %arg7[%c8_108] : memref<64xf32, #tpu.memory_space<smem>>
    %220 = vector.broadcast %219 : f32 to vector<8x128xf32>
    %221 = arith.addf %218, %220 : vector<8x128xf32>
    %cst_109 = arith.constant 0.000000e+00 : f32
    %222 = vector.broadcast %cst_109 : f32 to vector<8x128xf32>
    %223 = arith.maximumf %221, %222 : vector<8x128xf32>
    %c8_110 = arith.constant 8 : index
    %c0_111 = arith.constant 0 : index
    %224 = memref.load %arg8[%c8_110, %c0_111] : memref<64x2xf32, #tpu.memory_space<smem>>
    %c8_112 = arith.constant 8 : index
    %c1_113 = arith.constant 1 : index
    %225 = memref.load %arg8[%c8_112, %c1_113] : memref<64x2xf32, #tpu.memory_space<smem>>
    %226 = vector.broadcast %224 : f32 to vector<8x128xf32>
    %227 = vector.broadcast %225 : f32 to vector<8x128xf32>
    %228 = arith.select %4, %226, %227 : vector<8x128xi1>, vector<8x128xf32>
    %229 = arith.mulf %223, %228 : vector<8x128xf32>
    %230 = arith.addf %207, %229 : vector<8x128xf32>
    %c0_114 = arith.constant 0 : index
    %c9 = arith.constant 9 : index
    %231 = memref.load %arg6[%c0_114, %c9] : memref<3x64xf32, #tpu.memory_space<smem>>
    %232 = vector.broadcast %231 : f32 to vector<8x128xf32>
    %233 = arith.mulf %21, %232 : vector<8x128xf32>
    %c1_115 = arith.constant 1 : index
    %c9_116 = arith.constant 9 : index
    %234 = memref.load %arg6[%c1_115, %c9_116] : memref<3x64xf32, #tpu.memory_space<smem>>
    %235 = vector.broadcast %234 : f32 to vector<8x128xf32>
    %236 = arith.mulf %22, %235 : vector<8x128xf32>
    %237 = arith.addf %233, %236 : vector<8x128xf32>
    %c2_117 = arith.constant 2 : index
    %c9_118 = arith.constant 9 : index
    %238 = memref.load %arg6[%c2_117, %c9_118] : memref<3x64xf32, #tpu.memory_space<smem>>
    %239 = vector.broadcast %238 : f32 to vector<8x128xf32>
    %240 = arith.mulf %23, %239 : vector<8x128xf32>
    %241 = arith.addf %237, %240 : vector<8x128xf32>
    %c9_119 = arith.constant 9 : index
    %242 = memref.load %arg7[%c9_119] : memref<64xf32, #tpu.memory_space<smem>>
    %243 = vector.broadcast %242 : f32 to vector<8x128xf32>
    %244 = arith.addf %241, %243 : vector<8x128xf32>
    %cst_120 = arith.constant 0.000000e+00 : f32
    %245 = vector.broadcast %cst_120 : f32 to vector<8x128xf32>
    %246 = arith.maximumf %244, %245 : vector<8x128xf32>
    %c9_121 = arith.constant 9 : index
    %c0_122 = arith.constant 0 : index
    %247 = memref.load %arg8[%c9_121, %c0_122] : memref<64x2xf32, #tpu.memory_space<smem>>
    %c9_123 = arith.constant 9 : index
    %c1_124 = arith.constant 1 : index
    %248 = memref.load %arg8[%c9_123, %c1_124] : memref<64x2xf32, #tpu.memory_space<smem>>
    %249 = vector.broadcast %247 : f32 to vector<8x128xf32>
    %250 = vector.broadcast %248 : f32 to vector<8x128xf32>
    %251 = arith.select %4, %249, %250 : vector<8x128xi1>, vector<8x128xf32>
    %252 = arith.mulf %246, %251 : vector<8x128xf32>
    %253 = arith.addf %230, %252 : vector<8x128xf32>
    %c0_125 = arith.constant 0 : index
    %c10 = arith.constant 10 : index
    %254 = memref.load %arg6[%c0_125, %c10] : memref<3x64xf32, #tpu.memory_space<smem>>
    %255 = vector.broadcast %254 : f32 to vector<8x128xf32>
    %256 = arith.mulf %21, %255 : vector<8x128xf32>
    %c1_126 = arith.constant 1 : index
    %c10_127 = arith.constant 10 : index
    %257 = memref.load %arg6[%c1_126, %c10_127] : memref<3x64xf32, #tpu.memory_space<smem>>
    %258 = vector.broadcast %257 : f32 to vector<8x128xf32>
    %259 = arith.mulf %22, %258 : vector<8x128xf32>
    %260 = arith.addf %256, %259 : vector<8x128xf32>
    %c2_128 = arith.constant 2 : index
    %c10_129 = arith.constant 10 : index
    %261 = memref.load %arg6[%c2_128, %c10_129] : memref<3x64xf32, #tpu.memory_space<smem>>
    %262 = vector.broadcast %261 : f32 to vector<8x128xf32>
    %263 = arith.mulf %23, %262 : vector<8x128xf32>
    %264 = arith.addf %260, %263 : vector<8x128xf32>
    %c10_130 = arith.constant 10 : index
    %265 = memref.load %arg7[%c10_130] : memref<64xf32, #tpu.memory_space<smem>>
    %266 = vector.broadcast %265 : f32 to vector<8x128xf32>
    %267 = arith.addf %264, %266 : vector<8x128xf32>
    %cst_131 = arith.constant 0.000000e+00 : f32
    %268 = vector.broadcast %cst_131 : f32 to vector<8x128xf32>
    %269 = arith.maximumf %267, %268 : vector<8x128xf32>
    %c10_132 = arith.constant 10 : index
    %c0_133 = arith.constant 0 : index
    %270 = memref.load %arg8[%c10_132, %c0_133] : memref<64x2xf32, #tpu.memory_space<smem>>
    %c10_134 = arith.constant 10 : index
    %c1_135 = arith.constant 1 : index
    %271 = memref.load %arg8[%c10_134, %c1_135] : memref<64x2xf32, #tpu.memory_space<smem>>
    %272 = vector.broadcast %270 : f32 to vector<8x128xf32>
    %273 = vector.broadcast %271 : f32 to vector<8x128xf32>
    %274 = arith.select %4, %272, %273 : vector<8x128xi1>, vector<8x128xf32>
    %275 = arith.mulf %269, %274 : vector<8x128xf32>
    %276 = arith.addf %253, %275 : vector<8x128xf32>
    %c0_136 = arith.constant 0 : index
    %c11 = arith.constant 11 : index
    %277 = memref.load %arg6[%c0_136, %c11] : memref<3x64xf32, #tpu.memory_space<smem>>
    %278 = vector.broadcast %277 : f32 to vector<8x128xf32>
    %279 = arith.mulf %21, %278 : vector<8x128xf32>
    %c1_137 = arith.constant 1 : index
    %c11_138 = arith.constant 11 : index
    %280 = memref.load %arg6[%c1_137, %c11_138] : memref<3x64xf32, #tpu.memory_space<smem>>
    %281 = vector.broadcast %280 : f32 to vector<8x128xf32>
    %282 = arith.mulf %22, %281 : vector<8x128xf32>
    %283 = arith.addf %279, %282 : vector<8x128xf32>
    %c2_139 = arith.constant 2 : index
    %c11_140 = arith.constant 11 : index
    %284 = memref.load %arg6[%c2_139, %c11_140] : memref<3x64xf32, #tpu.memory_space<smem>>
    %285 = vector.broadcast %284 : f32 to vector<8x128xf32>
    %286 = arith.mulf %23, %285 : vector<8x128xf32>
    %287 = arith.addf %283, %286 : vector<8x128xf32>
    %c11_141 = arith.constant 11 : index
    %288 = memref.load %arg7[%c11_141] : memref<64xf32, #tpu.memory_space<smem>>
    %289 = vector.broadcast %288 : f32 to vector<8x128xf32>
    %290 = arith.addf %287, %289 : vector<8x128xf32>
    %cst_142 = arith.constant 0.000000e+00 : f32
    %291 = vector.broadcast %cst_142 : f32 to vector<8x128xf32>
    %292 = arith.maximumf %290, %291 : vector<8x128xf32>
    %c11_143 = arith.constant 11 : index
    %c0_144 = arith.constant 0 : index
    %293 = memref.load %arg8[%c11_143, %c0_144] : memref<64x2xf32, #tpu.memory_space<smem>>
    %c11_145 = arith.constant 11 : index
    %c1_146 = arith.constant 1 : index
    %294 = memref.load %arg8[%c11_145, %c1_146] : memref<64x2xf32, #tpu.memory_space<smem>>
    %295 = vector.broadcast %293 : f32 to vector<8x128xf32>
    %296 = vector.broadcast %294 : f32 to vector<8x128xf32>
    %297 = arith.select %4, %295, %296 : vector<8x128xi1>, vector<8x128xf32>
    %298 = arith.mulf %292, %297 : vector<8x128xf32>
    %299 = arith.addf %276, %298 : vector<8x128xf32>
    %c0_147 = arith.constant 0 : index
    %c12 = arith.constant 12 : index
    %300 = memref.load %arg6[%c0_147, %c12] : memref<3x64xf32, #tpu.memory_space<smem>>
    %301 = vector.broadcast %300 : f32 to vector<8x128xf32>
    %302 = arith.mulf %21, %301 : vector<8x128xf32>
    %c1_148 = arith.constant 1 : index
    %c12_149 = arith.constant 12 : index
    %303 = memref.load %arg6[%c1_148, %c12_149] : memref<3x64xf32, #tpu.memory_space<smem>>
    %304 = vector.broadcast %303 : f32 to vector<8x128xf32>
    %305 = arith.mulf %22, %304 : vector<8x128xf32>
    %306 = arith.addf %302, %305 : vector<8x128xf32>
    %c2_150 = arith.constant 2 : index
    %c12_151 = arith.constant 12 : index
    %307 = memref.load %arg6[%c2_150, %c12_151] : memref<3x64xf32, #tpu.memory_space<smem>>
    %308 = vector.broadcast %307 : f32 to vector<8x128xf32>
    %309 = arith.mulf %23, %308 : vector<8x128xf32>
    %310 = arith.addf %306, %309 : vector<8x128xf32>
    %c12_152 = arith.constant 12 : index
    %311 = memref.load %arg7[%c12_152] : memref<64xf32, #tpu.memory_space<smem>>
    %312 = vector.broadcast %311 : f32 to vector<8x128xf32>
    %313 = arith.addf %310, %312 : vector<8x128xf32>
    %cst_153 = arith.constant 0.000000e+00 : f32
    %314 = vector.broadcast %cst_153 : f32 to vector<8x128xf32>
    %315 = arith.maximumf %313, %314 : vector<8x128xf32>
    %c12_154 = arith.constant 12 : index
    %c0_155 = arith.constant 0 : index
    %316 = memref.load %arg8[%c12_154, %c0_155] : memref<64x2xf32, #tpu.memory_space<smem>>
    %c12_156 = arith.constant 12 : index
    %c1_157 = arith.constant 1 : index
    %317 = memref.load %arg8[%c12_156, %c1_157] : memref<64x2xf32, #tpu.memory_space<smem>>
    %318 = vector.broadcast %316 : f32 to vector<8x128xf32>
    %319 = vector.broadcast %317 : f32 to vector<8x128xf32>
    %320 = arith.select %4, %318, %319 : vector<8x128xi1>, vector<8x128xf32>
    %321 = arith.mulf %315, %320 : vector<8x128xf32>
    %322 = arith.addf %299, %321 : vector<8x128xf32>
    %c0_158 = arith.constant 0 : index
    %c13 = arith.constant 13 : index
    %323 = memref.load %arg6[%c0_158, %c13] : memref<3x64xf32, #tpu.memory_space<smem>>
    %324 = vector.broadcast %323 : f32 to vector<8x128xf32>
    %325 = arith.mulf %21, %324 : vector<8x128xf32>
    %c1_159 = arith.constant 1 : index
    %c13_160 = arith.constant 13 : index
    %326 = memref.load %arg6[%c1_159, %c13_160] : memref<3x64xf32, #tpu.memory_space<smem>>
    %327 = vector.broadcast %326 : f32 to vector<8x128xf32>
    %328 = arith.mulf %22, %327 : vector<8x128xf32>
    %329 = arith.addf %325, %328 : vector<8x128xf32>
    %c2_161 = arith.constant 2 : index
    %c13_162 = arith.constant 13 : index
    %330 = memref.load %arg6[%c2_161, %c13_162] : memref<3x64xf32, #tpu.memory_space<smem>>
    %331 = vector.broadcast %330 : f32 to vector<8x128xf32>
    %332 = arith.mulf %23, %331 : vector<8x128xf32>
    %333 = arith.addf %329, %332 : vector<8x128xf32>
    %c13_163 = arith.constant 13 : index
    %334 = memref.load %arg7[%c13_163] : memref<64xf32, #tpu.memory_space<smem>>
    %335 = vector.broadcast %334 : f32 to vector<8x128xf32>
    %336 = arith.addf %333, %335 : vector<8x128xf32>
    %cst_164 = arith.constant 0.000000e+00 : f32
    %337 = vector.broadcast %cst_164 : f32 to vector<8x128xf32>
    %338 = arith.maximumf %336, %337 : vector<8x128xf32>
    %c13_165 = arith.constant 13 : index
    %c0_166 = arith.constant 0 : index
    %339 = memref.load %arg8[%c13_165, %c0_166] : memref<64x2xf32, #tpu.memory_space<smem>>
    %c13_167 = arith.constant 13 : index
    %c1_168 = arith.constant 1 : index
    %340 = memref.load %arg8[%c13_167, %c1_168] : memref<64x2xf32, #tpu.memory_space<smem>>
    %341 = vector.broadcast %339 : f32 to vector<8x128xf32>
    %342 = vector.broadcast %340 : f32 to vector<8x128xf32>
    %343 = arith.select %4, %341, %342 : vector<8x128xi1>, vector<8x128xf32>
    %344 = arith.mulf %338, %343 : vector<8x128xf32>
    %345 = arith.addf %322, %344 : vector<8x128xf32>
    %c0_169 = arith.constant 0 : index
    %c14 = arith.constant 14 : index
    %346 = memref.load %arg6[%c0_169, %c14] : memref<3x64xf32, #tpu.memory_space<smem>>
    %347 = vector.broadcast %346 : f32 to vector<8x128xf32>
    %348 = arith.mulf %21, %347 : vector<8x128xf32>
    %c1_170 = arith.constant 1 : index
    %c14_171 = arith.constant 14 : index
    %349 = memref.load %arg6[%c1_170, %c14_171] : memref<3x64xf32, #tpu.memory_space<smem>>
    %350 = vector.broadcast %349 : f32 to vector<8x128xf32>
    %351 = arith.mulf %22, %350 : vector<8x128xf32>
    %352 = arith.addf %348, %351 : vector<8x128xf32>
    %c2_172 = arith.constant 2 : index
    %c14_173 = arith.constant 14 : index
    %353 = memref.load %arg6[%c2_172, %c14_173] : memref<3x64xf32, #tpu.memory_space<smem>>
    %354 = vector.broadcast %353 : f32 to vector<8x128xf32>
    %355 = arith.mulf %23, %354 : vector<8x128xf32>
    %356 = arith.addf %352, %355 : vector<8x128xf32>
    %c14_174 = arith.constant 14 : index
    %357 = memref.load %arg7[%c14_174] : memref<64xf32, #tpu.memory_space<smem>>
    %358 = vector.broadcast %357 : f32 to vector<8x128xf32>
    %359 = arith.addf %356, %358 : vector<8x128xf32>
    %cst_175 = arith.constant 0.000000e+00 : f32
    %360 = vector.broadcast %cst_175 : f32 to vector<8x128xf32>
    %361 = arith.maximumf %359, %360 : vector<8x128xf32>
    %c14_176 = arith.constant 14 : index
    %c0_177 = arith.constant 0 : index
    %362 = memref.load %arg8[%c14_176, %c0_177] : memref<64x2xf32, #tpu.memory_space<smem>>
    %c14_178 = arith.constant 14 : index
    %c1_179 = arith.constant 1 : index
    %363 = memref.load %arg8[%c14_178, %c1_179] : memref<64x2xf32, #tpu.memory_space<smem>>
    %364 = vector.broadcast %362 : f32 to vector<8x128xf32>
    %365 = vector.broadcast %363 : f32 to vector<8x128xf32>
    %366 = arith.select %4, %364, %365 : vector<8x128xi1>, vector<8x128xf32>
    %367 = arith.mulf %361, %366 : vector<8x128xf32>
    %368 = arith.addf %345, %367 : vector<8x128xf32>
    %c0_180 = arith.constant 0 : index
    %c15 = arith.constant 15 : index
    %369 = memref.load %arg6[%c0_180, %c15] : memref<3x64xf32, #tpu.memory_space<smem>>
    %370 = vector.broadcast %369 : f32 to vector<8x128xf32>
    %371 = arith.mulf %21, %370 : vector<8x128xf32>
    %c1_181 = arith.constant 1 : index
    %c15_182 = arith.constant 15 : index
    %372 = memref.load %arg6[%c1_181, %c15_182] : memref<3x64xf32, #tpu.memory_space<smem>>
    %373 = vector.broadcast %372 : f32 to vector<8x128xf32>
    %374 = arith.mulf %22, %373 : vector<8x128xf32>
    %375 = arith.addf %371, %374 : vector<8x128xf32>
    %c2_183 = arith.constant 2 : index
    %c15_184 = arith.constant 15 : index
    %376 = memref.load %arg6[%c2_183, %c15_184] : memref<3x64xf32, #tpu.memory_space<smem>>
    %377 = vector.broadcast %376 : f32 to vector<8x128xf32>
    %378 = arith.mulf %23, %377 : vector<8x128xf32>
    %379 = arith.addf %375, %378 : vector<8x128xf32>
    %c15_185 = arith.constant 15 : index
    %380 = memref.load %arg7[%c15_185] : memref<64xf32, #tpu.memory_space<smem>>
    %381 = vector.broadcast %380 : f32 to vector<8x128xf32>
    %382 = arith.addf %379, %381 : vector<8x128xf32>
    %cst_186 = arith.constant 0.000000e+00 : f32
    %383 = vector.broadcast %cst_186 : f32 to vector<8x128xf32>
    %384 = arith.maximumf %382, %383 : vector<8x128xf32>
    %c15_187 = arith.constant 15 : index
    %c0_188 = arith.constant 0 : index
    %385 = memref.load %arg8[%c15_187, %c0_188] : memref<64x2xf32, #tpu.memory_space<smem>>
    %c15_189 = arith.constant 15 : index
    %c1_190 = arith.constant 1 : index
    %386 = memref.load %arg8[%c15_189, %c1_190] : memref<64x2xf32, #tpu.memory_space<smem>>
    %387 = vector.broadcast %385 : f32 to vector<8x128xf32>
    %388 = vector.broadcast %386 : f32 to vector<8x128xf32>
    %389 = arith.select %4, %387, %388 : vector<8x128xi1>, vector<8x128xf32>
    %390 = arith.mulf %384, %389 : vector<8x128xf32>
    %391 = arith.addf %368, %390 : vector<8x128xf32>
    %c0_191 = arith.constant 0 : index
    %c16 = arith.constant 16 : index
    %392 = memref.load %arg6[%c0_191, %c16] : memref<3x64xf32, #tpu.memory_space<smem>>
    %393 = vector.broadcast %392 : f32 to vector<8x128xf32>
    %394 = arith.mulf %21, %393 : vector<8x128xf32>
    %c1_192 = arith.constant 1 : index
    %c16_193 = arith.constant 16 : index
    %395 = memref.load %arg6[%c1_192, %c16_193] : memref<3x64xf32, #tpu.memory_space<smem>>
    %396 = vector.broadcast %395 : f32 to vector<8x128xf32>
    %397 = arith.mulf %22, %396 : vector<8x128xf32>
    %398 = arith.addf %394, %397 : vector<8x128xf32>
    %c2_194 = arith.constant 2 : index
    %c16_195 = arith.constant 16 : index
    %399 = memref.load %arg6[%c2_194, %c16_195] : memref<3x64xf32, #tpu.memory_space<smem>>
    %400 = vector.broadcast %399 : f32 to vector<8x128xf32>
    %401 = arith.mulf %23, %400 : vector<8x128xf32>
    %402 = arith.addf %398, %401 : vector<8x128xf32>
    %c16_196 = arith.constant 16 : index
    %403 = memref.load %arg7[%c16_196] : memref<64xf32, #tpu.memory_space<smem>>
    %404 = vector.broadcast %403 : f32 to vector<8x128xf32>
    %405 = arith.addf %402, %404 : vector<8x128xf32>
    %cst_197 = arith.constant 0.000000e+00 : f32
    %406 = vector.broadcast %cst_197 : f32 to vector<8x128xf32>
    %407 = arith.maximumf %405, %406 : vector<8x128xf32>
    %c16_198 = arith.constant 16 : index
    %c0_199 = arith.constant 0 : index
    %408 = memref.load %arg8[%c16_198, %c0_199] : memref<64x2xf32, #tpu.memory_space<smem>>
    %c16_200 = arith.constant 16 : index
    %c1_201 = arith.constant 1 : index
    %409 = memref.load %arg8[%c16_200, %c1_201] : memref<64x2xf32, #tpu.memory_space<smem>>
    %410 = vector.broadcast %408 : f32 to vector<8x128xf32>
    %411 = vector.broadcast %409 : f32 to vector<8x128xf32>
    %412 = arith.select %4, %410, %411 : vector<8x128xi1>, vector<8x128xf32>
    %413 = arith.mulf %407, %412 : vector<8x128xf32>
    %414 = arith.addf %391, %413 : vector<8x128xf32>
    %c0_202 = arith.constant 0 : index
    %c17 = arith.constant 17 : index
    %415 = memref.load %arg6[%c0_202, %c17] : memref<3x64xf32, #tpu.memory_space<smem>>
    %416 = vector.broadcast %415 : f32 to vector<8x128xf32>
    %417 = arith.mulf %21, %416 : vector<8x128xf32>
    %c1_203 = arith.constant 1 : index
    %c17_204 = arith.constant 17 : index
    %418 = memref.load %arg6[%c1_203, %c17_204] : memref<3x64xf32, #tpu.memory_space<smem>>
    %419 = vector.broadcast %418 : f32 to vector<8x128xf32>
    %420 = arith.mulf %22, %419 : vector<8x128xf32>
    %421 = arith.addf %417, %420 : vector<8x128xf32>
    %c2_205 = arith.constant 2 : index
    %c17_206 = arith.constant 17 : index
    %422 = memref.load %arg6[%c2_205, %c17_206] : memref<3x64xf32, #tpu.memory_space<smem>>
    %423 = vector.broadcast %422 : f32 to vector<8x128xf32>
    %424 = arith.mulf %23, %423 : vector<8x128xf32>
    %425 = arith.addf %421, %424 : vector<8x128xf32>
    %c17_207 = arith.constant 17 : index
    %426 = memref.load %arg7[%c17_207] : memref<64xf32, #tpu.memory_space<smem>>
    %427 = vector.broadcast %426 : f32 to vector<8x128xf32>
    %428 = arith.addf %425, %427 : vector<8x128xf32>
    %cst_208 = arith.constant 0.000000e+00 : f32
    %429 = vector.broadcast %cst_208 : f32 to vector<8x128xf32>
    %430 = arith.maximumf %428, %429 : vector<8x128xf32>
    %c17_209 = arith.constant 17 : index
    %c0_210 = arith.constant 0 : index
    %431 = memref.load %arg8[%c17_209, %c0_210] : memref<64x2xf32, #tpu.memory_space<smem>>
    %c17_211 = arith.constant 17 : index
    %c1_212 = arith.constant 1 : index
    %432 = memref.load %arg8[%c17_211, %c1_212] : memref<64x2xf32, #tpu.memory_space<smem>>
    %433 = vector.broadcast %431 : f32 to vector<8x128xf32>
    %434 = vector.broadcast %432 : f32 to vector<8x128xf32>
    %435 = arith.select %4, %433, %434 : vector<8x128xi1>, vector<8x128xf32>
    %436 = arith.mulf %430, %435 : vector<8x128xf32>
    %437 = arith.addf %414, %436 : vector<8x128xf32>
    %c0_213 = arith.constant 0 : index
    %c18 = arith.constant 18 : index
    %438 = memref.load %arg6[%c0_213, %c18] : memref<3x64xf32, #tpu.memory_space<smem>>
    %439 = vector.broadcast %438 : f32 to vector<8x128xf32>
    %440 = arith.mulf %21, %439 : vector<8x128xf32>
    %c1_214 = arith.constant 1 : index
    %c18_215 = arith.constant 18 : index
    %441 = memref.load %arg6[%c1_214, %c18_215] : memref<3x64xf32, #tpu.memory_space<smem>>
    %442 = vector.broadcast %441 : f32 to vector<8x128xf32>
    %443 = arith.mulf %22, %442 : vector<8x128xf32>
    %444 = arith.addf %440, %443 : vector<8x128xf32>
    %c2_216 = arith.constant 2 : index
    %c18_217 = arith.constant 18 : index
    %445 = memref.load %arg6[%c2_216, %c18_217] : memref<3x64xf32, #tpu.memory_space<smem>>
    %446 = vector.broadcast %445 : f32 to vector<8x128xf32>
    %447 = arith.mulf %23, %446 : vector<8x128xf32>
    %448 = arith.addf %444, %447 : vector<8x128xf32>
    %c18_218 = arith.constant 18 : index
    %449 = memref.load %arg7[%c18_218] : memref<64xf32, #tpu.memory_space<smem>>
    %450 = vector.broadcast %449 : f32 to vector<8x128xf32>
    %451 = arith.addf %448, %450 : vector<8x128xf32>
    %cst_219 = arith.constant 0.000000e+00 : f32
    %452 = vector.broadcast %cst_219 : f32 to vector<8x128xf32>
    %453 = arith.maximumf %451, %452 : vector<8x128xf32>
    %c18_220 = arith.constant 18 : index
    %c0_221 = arith.constant 0 : index
    %454 = memref.load %arg8[%c18_220, %c0_221] : memref<64x2xf32, #tpu.memory_space<smem>>
    %c18_222 = arith.constant 18 : index
    %c1_223 = arith.constant 1 : index
    %455 = memref.load %arg8[%c18_222, %c1_223] : memref<64x2xf32, #tpu.memory_space<smem>>
    %456 = vector.broadcast %454 : f32 to vector<8x128xf32>
    %457 = vector.broadcast %455 : f32 to vector<8x128xf32>
    %458 = arith.select %4, %456, %457 : vector<8x128xi1>, vector<8x128xf32>
    %459 = arith.mulf %453, %458 : vector<8x128xf32>
    %460 = arith.addf %437, %459 : vector<8x128xf32>
    %c0_224 = arith.constant 0 : index
    %c19 = arith.constant 19 : index
    %461 = memref.load %arg6[%c0_224, %c19] : memref<3x64xf32, #tpu.memory_space<smem>>
    %462 = vector.broadcast %461 : f32 to vector<8x128xf32>
    %463 = arith.mulf %21, %462 : vector<8x128xf32>
    %c1_225 = arith.constant 1 : index
    %c19_226 = arith.constant 19 : index
    %464 = memref.load %arg6[%c1_225, %c19_226] : memref<3x64xf32, #tpu.memory_space<smem>>
    %465 = vector.broadcast %464 : f32 to vector<8x128xf32>
    %466 = arith.mulf %22, %465 : vector<8x128xf32>
    %467 = arith.addf %463, %466 : vector<8x128xf32>
    %c2_227 = arith.constant 2 : index
    %c19_228 = arith.constant 19 : index
    %468 = memref.load %arg6[%c2_227, %c19_228] : memref<3x64xf32, #tpu.memory_space<smem>>
    %469 = vector.broadcast %468 : f32 to vector<8x128xf32>
    %470 = arith.mulf %23, %469 : vector<8x128xf32>
    %471 = arith.addf %467, %470 : vector<8x128xf32>
    %c19_229 = arith.constant 19 : index
    %472 = memref.load %arg7[%c19_229] : memref<64xf32, #tpu.memory_space<smem>>
    %473 = vector.broadcast %472 : f32 to vector<8x128xf32>
    %474 = arith.addf %471, %473 : vector<8x128xf32>
    %cst_230 = arith.constant 0.000000e+00 : f32
    %475 = vector.broadcast %cst_230 : f32 to vector<8x128xf32>
    %476 = arith.maximumf %474, %475 : vector<8x128xf32>
    %c19_231 = arith.constant 19 : index
    %c0_232 = arith.constant 0 : index
    %477 = memref.load %arg8[%c19_231, %c0_232] : memref<64x2xf32, #tpu.memory_space<smem>>
    %c19_233 = arith.constant 19 : index
    %c1_234 = arith.constant 1 : index
    %478 = memref.load %arg8[%c19_233, %c1_234] : memref<64x2xf32, #tpu.memory_space<smem>>
    %479 = vector.broadcast %477 : f32 to vector<8x128xf32>
    %480 = vector.broadcast %478 : f32 to vector<8x128xf32>
    %481 = arith.select %4, %479, %480 : vector<8x128xi1>, vector<8x128xf32>
    %482 = arith.mulf %476, %481 : vector<8x128xf32>
    %483 = arith.addf %460, %482 : vector<8x128xf32>
    %c0_235 = arith.constant 0 : index
    %c20 = arith.constant 20 : index
    %484 = memref.load %arg6[%c0_235, %c20] : memref<3x64xf32, #tpu.memory_space<smem>>
    %485 = vector.broadcast %484 : f32 to vector<8x128xf32>
    %486 = arith.mulf %21, %485 : vector<8x128xf32>
    %c1_236 = arith.constant 1 : index
    %c20_237 = arith.constant 20 : index
    %487 = memref.load %arg6[%c1_236, %c20_237] : memref<3x64xf32, #tpu.memory_space<smem>>
    %488 = vector.broadcast %487 : f32 to vector<8x128xf32>
    %489 = arith.mulf %22, %488 : vector<8x128xf32>
    %490 = arith.addf %486, %489 : vector<8x128xf32>
    %c2_238 = arith.constant 2 : index
    %c20_239 = arith.constant 20 : index
    %491 = memref.load %arg6[%c2_238, %c20_239] : memref<3x64xf32, #tpu.memory_space<smem>>
    %492 = vector.broadcast %491 : f32 to vector<8x128xf32>
    %493 = arith.mulf %23, %492 : vector<8x128xf32>
    %494 = arith.addf %490, %493 : vector<8x128xf32>
    %c20_240 = arith.constant 20 : index
    %495 = memref.load %arg7[%c20_240] : memref<64xf32, #tpu.memory_space<smem>>
    %496 = vector.broadcast %495 : f32 to vector<8x128xf32>
    %497 = arith.addf %494, %496 : vector<8x128xf32>
    %cst_241 = arith.constant 0.000000e+00 : f32
    %498 = vector.broadcast %cst_241 : f32 to vector<8x128xf32>
    %499 = arith.maximumf %497, %498 : vector<8x128xf32>
    %c20_242 = arith.constant 20 : index
    %c0_243 = arith.constant 0 : index
    %500 = memref.load %arg8[%c20_242, %c0_243] : memref<64x2xf32, #tpu.memory_space<smem>>
    %c20_244 = arith.constant 20 : index
    %c1_245 = arith.constant 1 : index
    %501 = memref.load %arg8[%c20_244, %c1_245] : memref<64x2xf32, #tpu.memory_space<smem>>
    %502 = vector.broadcast %500 : f32 to vector<8x128xf32>
    %503 = vector.broadcast %501 : f32 to vector<8x128xf32>
    %504 = arith.select %4, %502, %503 : vector<8x128xi1>, vector<8x128xf32>
    %505 = arith.mulf %499, %504 : vector<8x128xf32>
    %506 = arith.addf %483, %505 : vector<8x128xf32>
    %c0_246 = arith.constant 0 : index
    %c21 = arith.constant 21 : index
    %507 = memref.load %arg6[%c0_246, %c21] : memref<3x64xf32, #tpu.memory_space<smem>>
    %508 = vector.broadcast %507 : f32 to vector<8x128xf32>
    %509 = arith.mulf %21, %508 : vector<8x128xf32>
    %c1_247 = arith.constant 1 : index
    %c21_248 = arith.constant 21 : index
    %510 = memref.load %arg6[%c1_247, %c21_248] : memref<3x64xf32, #tpu.memory_space<smem>>
    %511 = vector.broadcast %510 : f32 to vector<8x128xf32>
    %512 = arith.mulf %22, %511 : vector<8x128xf32>
    %513 = arith.addf %509, %512 : vector<8x128xf32>
    %c2_249 = arith.constant 2 : index
    %c21_250 = arith.constant 21 : index
    %514 = memref.load %arg6[%c2_249, %c21_250] : memref<3x64xf32, #tpu.memory_space<smem>>
    %515 = vector.broadcast %514 : f32 to vector<8x128xf32>
    %516 = arith.mulf %23, %515 : vector<8x128xf32>
    %517 = arith.addf %513, %516 : vector<8x128xf32>
    %c21_251 = arith.constant 21 : index
    %518 = memref.load %arg7[%c21_251] : memref<64xf32, #tpu.memory_space<smem>>
    %519 = vector.broadcast %518 : f32 to vector<8x128xf32>
    %520 = arith.addf %517, %519 : vector<8x128xf32>
    %cst_252 = arith.constant 0.000000e+00 : f32
    %521 = vector.broadcast %cst_252 : f32 to vector<8x128xf32>
    %522 = arith.maximumf %520, %521 : vector<8x128xf32>
    %c21_253 = arith.constant 21 : index
    %c0_254 = arith.constant 0 : index
    %523 = memref.load %arg8[%c21_253, %c0_254] : memref<64x2xf32, #tpu.memory_space<smem>>
    %c21_255 = arith.constant 21 : index
    %c1_256 = arith.constant 1 : index
    %524 = memref.load %arg8[%c21_255, %c1_256] : memref<64x2xf32, #tpu.memory_space<smem>>
    %525 = vector.broadcast %523 : f32 to vector<8x128xf32>
    %526 = vector.broadcast %524 : f32 to vector<8x128xf32>
    %527 = arith.select %4, %525, %526 : vector<8x128xi1>, vector<8x128xf32>
    %528 = arith.mulf %522, %527 : vector<8x128xf32>
    %529 = arith.addf %506, %528 : vector<8x128xf32>
    %c0_257 = arith.constant 0 : index
    %c22 = arith.constant 22 : index
    %530 = memref.load %arg6[%c0_257, %c22] : memref<3x64xf32, #tpu.memory_space<smem>>
    %531 = vector.broadcast %530 : f32 to vector<8x128xf32>
    %532 = arith.mulf %21, %531 : vector<8x128xf32>
    %c1_258 = arith.constant 1 : index
    %c22_259 = arith.constant 22 : index
    %533 = memref.load %arg6[%c1_258, %c22_259] : memref<3x64xf32, #tpu.memory_space<smem>>
    %534 = vector.broadcast %533 : f32 to vector<8x128xf32>
    %535 = arith.mulf %22, %534 : vector<8x128xf32>
    %536 = arith.addf %532, %535 : vector<8x128xf32>
    %c2_260 = arith.constant 2 : index
    %c22_261 = arith.constant 22 : index
    %537 = memref.load %arg6[%c2_260, %c22_261] : memref<3x64xf32, #tpu.memory_space<smem>>
    %538 = vector.broadcast %537 : f32 to vector<8x128xf32>
    %539 = arith.mulf %23, %538 : vector<8x128xf32>
    %540 = arith.addf %536, %539 : vector<8x128xf32>
    %c22_262 = arith.constant 22 : index
    %541 = memref.load %arg7[%c22_262] : memref<64xf32, #tpu.memory_space<smem>>
    %542 = vector.broadcast %541 : f32 to vector<8x128xf32>
    %543 = arith.addf %540, %542 : vector<8x128xf32>
    %cst_263 = arith.constant 0.000000e+00 : f32
    %544 = vector.broadcast %cst_263 : f32 to vector<8x128xf32>
    %545 = arith.maximumf %543, %544 : vector<8x128xf32>
    %c22_264 = arith.constant 22 : index
    %c0_265 = arith.constant 0 : index
    %546 = memref.load %arg8[%c22_264, %c0_265] : memref<64x2xf32, #tpu.memory_space<smem>>
    %c22_266 = arith.constant 22 : index
    %c1_267 = arith.constant 1 : index
    %547 = memref.load %arg8[%c22_266, %c1_267] : memref<64x2xf32, #tpu.memory_space<smem>>
    %548 = vector.broadcast %546 : f32 to vector<8x128xf32>
    %549 = vector.broadcast %547 : f32 to vector<8x128xf32>
    %550 = arith.select %4, %548, %549 : vector<8x128xi1>, vector<8x128xf32>
    %551 = arith.mulf %545, %550 : vector<8x128xf32>
    %552 = arith.addf %529, %551 : vector<8x128xf32>
    %c0_268 = arith.constant 0 : index
    %c23 = arith.constant 23 : index
    %553 = memref.load %arg6[%c0_268, %c23] : memref<3x64xf32, #tpu.memory_space<smem>>
    %554 = vector.broadcast %553 : f32 to vector<8x128xf32>
    %555 = arith.mulf %21, %554 : vector<8x128xf32>
    %c1_269 = arith.constant 1 : index
    %c23_270 = arith.constant 23 : index
    %556 = memref.load %arg6[%c1_269, %c23_270] : memref<3x64xf32, #tpu.memory_space<smem>>
    %557 = vector.broadcast %556 : f32 to vector<8x128xf32>
    %558 = arith.mulf %22, %557 : vector<8x128xf32>
    %559 = arith.addf %555, %558 : vector<8x128xf32>
    %c2_271 = arith.constant 2 : index
    %c23_272 = arith.constant 23 : index
    %560 = memref.load %arg6[%c2_271, %c23_272] : memref<3x64xf32, #tpu.memory_space<smem>>
    %561 = vector.broadcast %560 : f32 to vector<8x128xf32>
    %562 = arith.mulf %23, %561 : vector<8x128xf32>
    %563 = arith.addf %559, %562 : vector<8x128xf32>
    %c23_273 = arith.constant 23 : index
    %564 = memref.load %arg7[%c23_273] : memref<64xf32, #tpu.memory_space<smem>>
    %565 = vector.broadcast %564 : f32 to vector<8x128xf32>
    %566 = arith.addf %563, %565 : vector<8x128xf32>
    %cst_274 = arith.constant 0.000000e+00 : f32
    %567 = vector.broadcast %cst_274 : f32 to vector<8x128xf32>
    %568 = arith.maximumf %566, %567 : vector<8x128xf32>
    %c23_275 = arith.constant 23 : index
    %c0_276 = arith.constant 0 : index
    %569 = memref.load %arg8[%c23_275, %c0_276] : memref<64x2xf32, #tpu.memory_space<smem>>
    %c23_277 = arith.constant 23 : index
    %c1_278 = arith.constant 1 : index
    %570 = memref.load %arg8[%c23_277, %c1_278] : memref<64x2xf32, #tpu.memory_space<smem>>
    %571 = vector.broadcast %569 : f32 to vector<8x128xf32>
    %572 = vector.broadcast %570 : f32 to vector<8x128xf32>
    %573 = arith.select %4, %571, %572 : vector<8x128xi1>, vector<8x128xf32>
    %574 = arith.mulf %568, %573 : vector<8x128xf32>
    %575 = arith.addf %552, %574 : vector<8x128xf32>
    %c0_279 = arith.constant 0 : index
    %c24 = arith.constant 24 : index
    %576 = memref.load %arg6[%c0_279, %c24] : memref<3x64xf32, #tpu.memory_space<smem>>
    %577 = vector.broadcast %576 : f32 to vector<8x128xf32>
    %578 = arith.mulf %21, %577 : vector<8x128xf32>
    %c1_280 = arith.constant 1 : index
    %c24_281 = arith.constant 24 : index
    %579 = memref.load %arg6[%c1_280, %c24_281] : memref<3x64xf32, #tpu.memory_space<smem>>
    %580 = vector.broadcast %579 : f32 to vector<8x128xf32>
    %581 = arith.mulf %22, %580 : vector<8x128xf32>
    %582 = arith.addf %578, %581 : vector<8x128xf32>
    %c2_282 = arith.constant 2 : index
    %c24_283 = arith.constant 24 : index
    %583 = memref.load %arg6[%c2_282, %c24_283] : memref<3x64xf32, #tpu.memory_space<smem>>
    %584 = vector.broadcast %583 : f32 to vector<8x128xf32>
    %585 = arith.mulf %23, %584 : vector<8x128xf32>
    %586 = arith.addf %582, %585 : vector<8x128xf32>
    %c24_284 = arith.constant 24 : index
    %587 = memref.load %arg7[%c24_284] : memref<64xf32, #tpu.memory_space<smem>>
    %588 = vector.broadcast %587 : f32 to vector<8x128xf32>
    %589 = arith.addf %586, %588 : vector<8x128xf32>
    %cst_285 = arith.constant 0.000000e+00 : f32
    %590 = vector.broadcast %cst_285 : f32 to vector<8x128xf32>
    %591 = arith.maximumf %589, %590 : vector<8x128xf32>
    %c24_286 = arith.constant 24 : index
    %c0_287 = arith.constant 0 : index
    %592 = memref.load %arg8[%c24_286, %c0_287] : memref<64x2xf32, #tpu.memory_space<smem>>
    %c24_288 = arith.constant 24 : index
    %c1_289 = arith.constant 1 : index
    %593 = memref.load %arg8[%c24_288, %c1_289] : memref<64x2xf32, #tpu.memory_space<smem>>
    %594 = vector.broadcast %592 : f32 to vector<8x128xf32>
    %595 = vector.broadcast %593 : f32 to vector<8x128xf32>
    %596 = arith.select %4, %594, %595 : vector<8x128xi1>, vector<8x128xf32>
    %597 = arith.mulf %591, %596 : vector<8x128xf32>
    %598 = arith.addf %575, %597 : vector<8x128xf32>
    %c0_290 = arith.constant 0 : index
    %c25 = arith.constant 25 : index
    %599 = memref.load %arg6[%c0_290, %c25] : memref<3x64xf32, #tpu.memory_space<smem>>
    %600 = vector.broadcast %599 : f32 to vector<8x128xf32>
    %601 = arith.mulf %21, %600 : vector<8x128xf32>
    %c1_291 = arith.constant 1 : index
    %c25_292 = arith.constant 25 : index
    %602 = memref.load %arg6[%c1_291, %c25_292] : memref<3x64xf32, #tpu.memory_space<smem>>
    %603 = vector.broadcast %602 : f32 to vector<8x128xf32>
    %604 = arith.mulf %22, %603 : vector<8x128xf32>
    %605 = arith.addf %601, %604 : vector<8x128xf32>
    %c2_293 = arith.constant 2 : index
    %c25_294 = arith.constant 25 : index
    %606 = memref.load %arg6[%c2_293, %c25_294] : memref<3x64xf32, #tpu.memory_space<smem>>
    %607 = vector.broadcast %606 : f32 to vector<8x128xf32>
    %608 = arith.mulf %23, %607 : vector<8x128xf32>
    %609 = arith.addf %605, %608 : vector<8x128xf32>
    %c25_295 = arith.constant 25 : index
    %610 = memref.load %arg7[%c25_295] : memref<64xf32, #tpu.memory_space<smem>>
    %611 = vector.broadcast %610 : f32 to vector<8x128xf32>
    %612 = arith.addf %609, %611 : vector<8x128xf32>
    %cst_296 = arith.constant 0.000000e+00 : f32
    %613 = vector.broadcast %cst_296 : f32 to vector<8x128xf32>
    %614 = arith.maximumf %612, %613 : vector<8x128xf32>
    %c25_297 = arith.constant 25 : index
    %c0_298 = arith.constant 0 : index
    %615 = memref.load %arg8[%c25_297, %c0_298] : memref<64x2xf32, #tpu.memory_space<smem>>
    %c25_299 = arith.constant 25 : index
    %c1_300 = arith.constant 1 : index
    %616 = memref.load %arg8[%c25_299, %c1_300] : memref<64x2xf32, #tpu.memory_space<smem>>
    %617 = vector.broadcast %615 : f32 to vector<8x128xf32>
    %618 = vector.broadcast %616 : f32 to vector<8x128xf32>
    %619 = arith.select %4, %617, %618 : vector<8x128xi1>, vector<8x128xf32>
    %620 = arith.mulf %614, %619 : vector<8x128xf32>
    %621 = arith.addf %598, %620 : vector<8x128xf32>
    %c0_301 = arith.constant 0 : index
    %c26 = arith.constant 26 : index
    %622 = memref.load %arg6[%c0_301, %c26] : memref<3x64xf32, #tpu.memory_space<smem>>
    %623 = vector.broadcast %622 : f32 to vector<8x128xf32>
    %624 = arith.mulf %21, %623 : vector<8x128xf32>
    %c1_302 = arith.constant 1 : index
    %c26_303 = arith.constant 26 : index
    %625 = memref.load %arg6[%c1_302, %c26_303] : memref<3x64xf32, #tpu.memory_space<smem>>
    %626 = vector.broadcast %625 : f32 to vector<8x128xf32>
    %627 = arith.mulf %22, %626 : vector<8x128xf32>
    %628 = arith.addf %624, %627 : vector<8x128xf32>
    %c2_304 = arith.constant 2 : index
    %c26_305 = arith.constant 26 : index
    %629 = memref.load %arg6[%c2_304, %c26_305] : memref<3x64xf32, #tpu.memory_space<smem>>
    %630 = vector.broadcast %629 : f32 to vector<8x128xf32>
    %631 = arith.mulf %23, %630 : vector<8x128xf32>
    %632 = arith.addf %628, %631 : vector<8x128xf32>
    %c26_306 = arith.constant 26 : index
    %633 = memref.load %arg7[%c26_306] : memref<64xf32, #tpu.memory_space<smem>>
    %634 = vector.broadcast %633 : f32 to vector<8x128xf32>
    %635 = arith.addf %632, %634 : vector<8x128xf32>
    %cst_307 = arith.constant 0.000000e+00 : f32
    %636 = vector.broadcast %cst_307 : f32 to vector<8x128xf32>
    %637 = arith.maximumf %635, %636 : vector<8x128xf32>
    %c26_308 = arith.constant 26 : index
    %c0_309 = arith.constant 0 : index
    %638 = memref.load %arg8[%c26_308, %c0_309] : memref<64x2xf32, #tpu.memory_space<smem>>
    %c26_310 = arith.constant 26 : index
    %c1_311 = arith.constant 1 : index
    %639 = memref.load %arg8[%c26_310, %c1_311] : memref<64x2xf32, #tpu.memory_space<smem>>
    %640 = vector.broadcast %638 : f32 to vector<8x128xf32>
    %641 = vector.broadcast %639 : f32 to vector<8x128xf32>
    %642 = arith.select %4, %640, %641 : vector<8x128xi1>, vector<8x128xf32>
    %643 = arith.mulf %637, %642 : vector<8x128xf32>
    %644 = arith.addf %621, %643 : vector<8x128xf32>
    %c0_312 = arith.constant 0 : index
    %c27 = arith.constant 27 : index
    %645 = memref.load %arg6[%c0_312, %c27] : memref<3x64xf32, #tpu.memory_space<smem>>
    %646 = vector.broadcast %645 : f32 to vector<8x128xf32>
    %647 = arith.mulf %21, %646 : vector<8x128xf32>
    %c1_313 = arith.constant 1 : index
    %c27_314 = arith.constant 27 : index
    %648 = memref.load %arg6[%c1_313, %c27_314] : memref<3x64xf32, #tpu.memory_space<smem>>
    %649 = vector.broadcast %648 : f32 to vector<8x128xf32>
    %650 = arith.mulf %22, %649 : vector<8x128xf32>
    %651 = arith.addf %647, %650 : vector<8x128xf32>
    %c2_315 = arith.constant 2 : index
    %c27_316 = arith.constant 27 : index
    %652 = memref.load %arg6[%c2_315, %c27_316] : memref<3x64xf32, #tpu.memory_space<smem>>
    %653 = vector.broadcast %652 : f32 to vector<8x128xf32>
    %654 = arith.mulf %23, %653 : vector<8x128xf32>
    %655 = arith.addf %651, %654 : vector<8x128xf32>
    %c27_317 = arith.constant 27 : index
    %656 = memref.load %arg7[%c27_317] : memref<64xf32, #tpu.memory_space<smem>>
    %657 = vector.broadcast %656 : f32 to vector<8x128xf32>
    %658 = arith.addf %655, %657 : vector<8x128xf32>
    %cst_318 = arith.constant 0.000000e+00 : f32
    %659 = vector.broadcast %cst_318 : f32 to vector<8x128xf32>
    %660 = arith.maximumf %658, %659 : vector<8x128xf32>
    %c27_319 = arith.constant 27 : index
    %c0_320 = arith.constant 0 : index
    %661 = memref.load %arg8[%c27_319, %c0_320] : memref<64x2xf32, #tpu.memory_space<smem>>
    %c27_321 = arith.constant 27 : index
    %c1_322 = arith.constant 1 : index
    %662 = memref.load %arg8[%c27_321, %c1_322] : memref<64x2xf32, #tpu.memory_space<smem>>
    %663 = vector.broadcast %661 : f32 to vector<8x128xf32>
    %664 = vector.broadcast %662 : f32 to vector<8x128xf32>
    %665 = arith.select %4, %663, %664 : vector<8x128xi1>, vector<8x128xf32>
    %666 = arith.mulf %660, %665 : vector<8x128xf32>
    %667 = arith.addf %644, %666 : vector<8x128xf32>
    %c0_323 = arith.constant 0 : index
    %c28 = arith.constant 28 : index
    %668 = memref.load %arg6[%c0_323, %c28] : memref<3x64xf32, #tpu.memory_space<smem>>
    %669 = vector.broadcast %668 : f32 to vector<8x128xf32>
    %670 = arith.mulf %21, %669 : vector<8x128xf32>
    %c1_324 = arith.constant 1 : index
    %c28_325 = arith.constant 28 : index
    %671 = memref.load %arg6[%c1_324, %c28_325] : memref<3x64xf32, #tpu.memory_space<smem>>
    %672 = vector.broadcast %671 : f32 to vector<8x128xf32>
    %673 = arith.mulf %22, %672 : vector<8x128xf32>
    %674 = arith.addf %670, %673 : vector<8x128xf32>
    %c2_326 = arith.constant 2 : index
    %c28_327 = arith.constant 28 : index
    %675 = memref.load %arg6[%c2_326, %c28_327] : memref<3x64xf32, #tpu.memory_space<smem>>
    %676 = vector.broadcast %675 : f32 to vector<8x128xf32>
    %677 = arith.mulf %23, %676 : vector<8x128xf32>
    %678 = arith.addf %674, %677 : vector<8x128xf32>
    %c28_328 = arith.constant 28 : index
    %679 = memref.load %arg7[%c28_328] : memref<64xf32, #tpu.memory_space<smem>>
    %680 = vector.broadcast %679 : f32 to vector<8x128xf32>
    %681 = arith.addf %678, %680 : vector<8x128xf32>
    %cst_329 = arith.constant 0.000000e+00 : f32
    %682 = vector.broadcast %cst_329 : f32 to vector<8x128xf32>
    %683 = arith.maximumf %681, %682 : vector<8x128xf32>
    %c28_330 = arith.constant 28 : index
    %c0_331 = arith.constant 0 : index
    %684 = memref.load %arg8[%c28_330, %c0_331] : memref<64x2xf32, #tpu.memory_space<smem>>
    %c28_332 = arith.constant 28 : index
    %c1_333 = arith.constant 1 : index
    %685 = memref.load %arg8[%c28_332, %c1_333] : memref<64x2xf32, #tpu.memory_space<smem>>
    %686 = vector.broadcast %684 : f32 to vector<8x128xf32>
    %687 = vector.broadcast %685 : f32 to vector<8x128xf32>
    %688 = arith.select %4, %686, %687 : vector<8x128xi1>, vector<8x128xf32>
    %689 = arith.mulf %683, %688 : vector<8x128xf32>
    %690 = arith.addf %667, %689 : vector<8x128xf32>
    %c0_334 = arith.constant 0 : index
    %c29 = arith.constant 29 : index
    %691 = memref.load %arg6[%c0_334, %c29] : memref<3x64xf32, #tpu.memory_space<smem>>
    %692 = vector.broadcast %691 : f32 to vector<8x128xf32>
    %693 = arith.mulf %21, %692 : vector<8x128xf32>
    %c1_335 = arith.constant 1 : index
    %c29_336 = arith.constant 29 : index
    %694 = memref.load %arg6[%c1_335, %c29_336] : memref<3x64xf32, #tpu.memory_space<smem>>
    %695 = vector.broadcast %694 : f32 to vector<8x128xf32>
    %696 = arith.mulf %22, %695 : vector<8x128xf32>
    %697 = arith.addf %693, %696 : vector<8x128xf32>
    %c2_337 = arith.constant 2 : index
    %c29_338 = arith.constant 29 : index
    %698 = memref.load %arg6[%c2_337, %c29_338] : memref<3x64xf32, #tpu.memory_space<smem>>
    %699 = vector.broadcast %698 : f32 to vector<8x128xf32>
    %700 = arith.mulf %23, %699 : vector<8x128xf32>
    %701 = arith.addf %697, %700 : vector<8x128xf32>
    %c29_339 = arith.constant 29 : index
    %702 = memref.load %arg7[%c29_339] : memref<64xf32, #tpu.memory_space<smem>>
    %703 = vector.broadcast %702 : f32 to vector<8x128xf32>
    %704 = arith.addf %701, %703 : vector<8x128xf32>
    %cst_340 = arith.constant 0.000000e+00 : f32
    %705 = vector.broadcast %cst_340 : f32 to vector<8x128xf32>
    %706 = arith.maximumf %704, %705 : vector<8x128xf32>
    %c29_341 = arith.constant 29 : index
    %c0_342 = arith.constant 0 : index
    %707 = memref.load %arg8[%c29_341, %c0_342] : memref<64x2xf32, #tpu.memory_space<smem>>
    %c29_343 = arith.constant 29 : index
    %c1_344 = arith.constant 1 : index
    %708 = memref.load %arg8[%c29_343, %c1_344] : memref<64x2xf32, #tpu.memory_space<smem>>
    %709 = vector.broadcast %707 : f32 to vector<8x128xf32>
    %710 = vector.broadcast %708 : f32 to vector<8x128xf32>
    %711 = arith.select %4, %709, %710 : vector<8x128xi1>, vector<8x128xf32>
    %712 = arith.mulf %706, %711 : vector<8x128xf32>
    %713 = arith.addf %690, %712 : vector<8x128xf32>
    %c0_345 = arith.constant 0 : index
    %c30 = arith.constant 30 : index
    %714 = memref.load %arg6[%c0_345, %c30] : memref<3x64xf32, #tpu.memory_space<smem>>
    %715 = vector.broadcast %714 : f32 to vector<8x128xf32>
    %716 = arith.mulf %21, %715 : vector<8x128xf32>
    %c1_346 = arith.constant 1 : index
    %c30_347 = arith.constant 30 : index
    %717 = memref.load %arg6[%c1_346, %c30_347] : memref<3x64xf32, #tpu.memory_space<smem>>
    %718 = vector.broadcast %717 : f32 to vector<8x128xf32>
    %719 = arith.mulf %22, %718 : vector<8x128xf32>
    %720 = arith.addf %716, %719 : vector<8x128xf32>
    %c2_348 = arith.constant 2 : index
    %c30_349 = arith.constant 30 : index
    %721 = memref.load %arg6[%c2_348, %c30_349] : memref<3x64xf32, #tpu.memory_space<smem>>
    %722 = vector.broadcast %721 : f32 to vector<8x128xf32>
    %723 = arith.mulf %23, %722 : vector<8x128xf32>
    %724 = arith.addf %720, %723 : vector<8x128xf32>
    %c30_350 = arith.constant 30 : index
    %725 = memref.load %arg7[%c30_350] : memref<64xf32, #tpu.memory_space<smem>>
    %726 = vector.broadcast %725 : f32 to vector<8x128xf32>
    %727 = arith.addf %724, %726 : vector<8x128xf32>
    %cst_351 = arith.constant 0.000000e+00 : f32
    %728 = vector.broadcast %cst_351 : f32 to vector<8x128xf32>
    %729 = arith.maximumf %727, %728 : vector<8x128xf32>
    %c30_352 = arith.constant 30 : index
    %c0_353 = arith.constant 0 : index
    %730 = memref.load %arg8[%c30_352, %c0_353] : memref<64x2xf32, #tpu.memory_space<smem>>
    %c30_354 = arith.constant 30 : index
    %c1_355 = arith.constant 1 : index
    %731 = memref.load %arg8[%c30_354, %c1_355] : memref<64x2xf32, #tpu.memory_space<smem>>
    %732 = vector.broadcast %730 : f32 to vector<8x128xf32>
    %733 = vector.broadcast %731 : f32 to vector<8x128xf32>
    %734 = arith.select %4, %732, %733 : vector<8x128xi1>, vector<8x128xf32>
    %735 = arith.mulf %729, %734 : vector<8x128xf32>
    %736 = arith.addf %713, %735 : vector<8x128xf32>
    %c0_356 = arith.constant 0 : index
    %c31 = arith.constant 31 : index
    %737 = memref.load %arg6[%c0_356, %c31] : memref<3x64xf32, #tpu.memory_space<smem>>
    %738 = vector.broadcast %737 : f32 to vector<8x128xf32>
    %739 = arith.mulf %21, %738 : vector<8x128xf32>
    %c1_357 = arith.constant 1 : index
    %c31_358 = arith.constant 31 : index
    %740 = memref.load %arg6[%c1_357, %c31_358] : memref<3x64xf32, #tpu.memory_space<smem>>
    %741 = vector.broadcast %740 : f32 to vector<8x128xf32>
    %742 = arith.mulf %22, %741 : vector<8x128xf32>
    %743 = arith.addf %739, %742 : vector<8x128xf32>
    %c2_359 = arith.constant 2 : index
    %c31_360 = arith.constant 31 : index
    %744 = memref.load %arg6[%c2_359, %c31_360] : memref<3x64xf32, #tpu.memory_space<smem>>
    %745 = vector.broadcast %744 : f32 to vector<8x128xf32>
    %746 = arith.mulf %23, %745 : vector<8x128xf32>
    %747 = arith.addf %743, %746 : vector<8x128xf32>
    %c31_361 = arith.constant 31 : index
    %748 = memref.load %arg7[%c31_361] : memref<64xf32, #tpu.memory_space<smem>>
    %749 = vector.broadcast %748 : f32 to vector<8x128xf32>
    %750 = arith.addf %747, %749 : vector<8x128xf32>
    %cst_362 = arith.constant 0.000000e+00 : f32
    %751 = vector.broadcast %cst_362 : f32 to vector<8x128xf32>
    %752 = arith.maximumf %750, %751 : vector<8x128xf32>
    %c31_363 = arith.constant 31 : index
    %c0_364 = arith.constant 0 : index
    %753 = memref.load %arg8[%c31_363, %c0_364] : memref<64x2xf32, #tpu.memory_space<smem>>
    %c31_365 = arith.constant 31 : index
    %c1_366 = arith.constant 1 : index
    %754 = memref.load %arg8[%c31_365, %c1_366] : memref<64x2xf32, #tpu.memory_space<smem>>
    %755 = vector.broadcast %753 : f32 to vector<8x128xf32>
    %756 = vector.broadcast %754 : f32 to vector<8x128xf32>
    %757 = arith.select %4, %755, %756 : vector<8x128xi1>, vector<8x128xf32>
    %758 = arith.mulf %752, %757 : vector<8x128xf32>
    %759 = arith.addf %736, %758 : vector<8x128xf32>
    %c0_367 = arith.constant 0 : index
    %c32 = arith.constant 32 : index
    %760 = memref.load %arg6[%c0_367, %c32] : memref<3x64xf32, #tpu.memory_space<smem>>
    %761 = vector.broadcast %760 : f32 to vector<8x128xf32>
    %762 = arith.mulf %21, %761 : vector<8x128xf32>
    %c1_368 = arith.constant 1 : index
    %c32_369 = arith.constant 32 : index
    %763 = memref.load %arg6[%c1_368, %c32_369] : memref<3x64xf32, #tpu.memory_space<smem>>
    %764 = vector.broadcast %763 : f32 to vector<8x128xf32>
    %765 = arith.mulf %22, %764 : vector<8x128xf32>
    %766 = arith.addf %762, %765 : vector<8x128xf32>
    %c2_370 = arith.constant 2 : index
    %c32_371 = arith.constant 32 : index
    %767 = memref.load %arg6[%c2_370, %c32_371] : memref<3x64xf32, #tpu.memory_space<smem>>
    %768 = vector.broadcast %767 : f32 to vector<8x128xf32>
    %769 = arith.mulf %23, %768 : vector<8x128xf32>
    %770 = arith.addf %766, %769 : vector<8x128xf32>
    %c32_372 = arith.constant 32 : index
    %771 = memref.load %arg7[%c32_372] : memref<64xf32, #tpu.memory_space<smem>>
    %772 = vector.broadcast %771 : f32 to vector<8x128xf32>
    %773 = arith.addf %770, %772 : vector<8x128xf32>
    %cst_373 = arith.constant 0.000000e+00 : f32
    %774 = vector.broadcast %cst_373 : f32 to vector<8x128xf32>
    %775 = arith.maximumf %773, %774 : vector<8x128xf32>
    %c32_374 = arith.constant 32 : index
    %c0_375 = arith.constant 0 : index
    %776 = memref.load %arg8[%c32_374, %c0_375] : memref<64x2xf32, #tpu.memory_space<smem>>
    %c32_376 = arith.constant 32 : index
    %c1_377 = arith.constant 1 : index
    %777 = memref.load %arg8[%c32_376, %c1_377] : memref<64x2xf32, #tpu.memory_space<smem>>
    %778 = vector.broadcast %776 : f32 to vector<8x128xf32>
    %779 = vector.broadcast %777 : f32 to vector<8x128xf32>
    %780 = arith.select %4, %778, %779 : vector<8x128xi1>, vector<8x128xf32>
    %781 = arith.mulf %775, %780 : vector<8x128xf32>
    %782 = arith.addf %759, %781 : vector<8x128xf32>
    %c0_378 = arith.constant 0 : index
    %c33 = arith.constant 33 : index
    %783 = memref.load %arg6[%c0_378, %c33] : memref<3x64xf32, #tpu.memory_space<smem>>
    %784 = vector.broadcast %783 : f32 to vector<8x128xf32>
    %785 = arith.mulf %21, %784 : vector<8x128xf32>
    %c1_379 = arith.constant 1 : index
    %c33_380 = arith.constant 33 : index
    %786 = memref.load %arg6[%c1_379, %c33_380] : memref<3x64xf32, #tpu.memory_space<smem>>
    %787 = vector.broadcast %786 : f32 to vector<8x128xf32>
    %788 = arith.mulf %22, %787 : vector<8x128xf32>
    %789 = arith.addf %785, %788 : vector<8x128xf32>
    %c2_381 = arith.constant 2 : index
    %c33_382 = arith.constant 33 : index
    %790 = memref.load %arg6[%c2_381, %c33_382] : memref<3x64xf32, #tpu.memory_space<smem>>
    %791 = vector.broadcast %790 : f32 to vector<8x128xf32>
    %792 = arith.mulf %23, %791 : vector<8x128xf32>
    %793 = arith.addf %789, %792 : vector<8x128xf32>
    %c33_383 = arith.constant 33 : index
    %794 = memref.load %arg7[%c33_383] : memref<64xf32, #tpu.memory_space<smem>>
    %795 = vector.broadcast %794 : f32 to vector<8x128xf32>
    %796 = arith.addf %793, %795 : vector<8x128xf32>
    %cst_384 = arith.constant 0.000000e+00 : f32
    %797 = vector.broadcast %cst_384 : f32 to vector<8x128xf32>
    %798 = arith.maximumf %796, %797 : vector<8x128xf32>
    %c33_385 = arith.constant 33 : index
    %c0_386 = arith.constant 0 : index
    %799 = memref.load %arg8[%c33_385, %c0_386] : memref<64x2xf32, #tpu.memory_space<smem>>
    %c33_387 = arith.constant 33 : index
    %c1_388 = arith.constant 1 : index
    %800 = memref.load %arg8[%c33_387, %c1_388] : memref<64x2xf32, #tpu.memory_space<smem>>
    %801 = vector.broadcast %799 : f32 to vector<8x128xf32>
    %802 = vector.broadcast %800 : f32 to vector<8x128xf32>
    %803 = arith.select %4, %801, %802 : vector<8x128xi1>, vector<8x128xf32>
    %804 = arith.mulf %798, %803 : vector<8x128xf32>
    %805 = arith.addf %782, %804 : vector<8x128xf32>
    %c0_389 = arith.constant 0 : index
    %c34 = arith.constant 34 : index
    %806 = memref.load %arg6[%c0_389, %c34] : memref<3x64xf32, #tpu.memory_space<smem>>
    %807 = vector.broadcast %806 : f32 to vector<8x128xf32>
    %808 = arith.mulf %21, %807 : vector<8x128xf32>
    %c1_390 = arith.constant 1 : index
    %c34_391 = arith.constant 34 : index
    %809 = memref.load %arg6[%c1_390, %c34_391] : memref<3x64xf32, #tpu.memory_space<smem>>
    %810 = vector.broadcast %809 : f32 to vector<8x128xf32>
    %811 = arith.mulf %22, %810 : vector<8x128xf32>
    %812 = arith.addf %808, %811 : vector<8x128xf32>
    %c2_392 = arith.constant 2 : index
    %c34_393 = arith.constant 34 : index
    %813 = memref.load %arg6[%c2_392, %c34_393] : memref<3x64xf32, #tpu.memory_space<smem>>
    %814 = vector.broadcast %813 : f32 to vector<8x128xf32>
    %815 = arith.mulf %23, %814 : vector<8x128xf32>
    %816 = arith.addf %812, %815 : vector<8x128xf32>
    %c34_394 = arith.constant 34 : index
    %817 = memref.load %arg7[%c34_394] : memref<64xf32, #tpu.memory_space<smem>>
    %818 = vector.broadcast %817 : f32 to vector<8x128xf32>
    %819 = arith.addf %816, %818 : vector<8x128xf32>
    %cst_395 = arith.constant 0.000000e+00 : f32
    %820 = vector.broadcast %cst_395 : f32 to vector<8x128xf32>
    %821 = arith.maximumf %819, %820 : vector<8x128xf32>
    %c34_396 = arith.constant 34 : index
    %c0_397 = arith.constant 0 : index
    %822 = memref.load %arg8[%c34_396, %c0_397] : memref<64x2xf32, #tpu.memory_space<smem>>
    %c34_398 = arith.constant 34 : index
    %c1_399 = arith.constant 1 : index
    %823 = memref.load %arg8[%c34_398, %c1_399] : memref<64x2xf32, #tpu.memory_space<smem>>
    %824 = vector.broadcast %822 : f32 to vector<8x128xf32>
    %825 = vector.broadcast %823 : f32 to vector<8x128xf32>
    %826 = arith.select %4, %824, %825 : vector<8x128xi1>, vector<8x128xf32>
    %827 = arith.mulf %821, %826 : vector<8x128xf32>
    %828 = arith.addf %805, %827 : vector<8x128xf32>
    %c0_400 = arith.constant 0 : index
    %c35 = arith.constant 35 : index
    %829 = memref.load %arg6[%c0_400, %c35] : memref<3x64xf32, #tpu.memory_space<smem>>
    %830 = vector.broadcast %829 : f32 to vector<8x128xf32>
    %831 = arith.mulf %21, %830 : vector<8x128xf32>
    %c1_401 = arith.constant 1 : index
    %c35_402 = arith.constant 35 : index
    %832 = memref.load %arg6[%c1_401, %c35_402] : memref<3x64xf32, #tpu.memory_space<smem>>
    %833 = vector.broadcast %832 : f32 to vector<8x128xf32>
    %834 = arith.mulf %22, %833 : vector<8x128xf32>
    %835 = arith.addf %831, %834 : vector<8x128xf32>
    %c2_403 = arith.constant 2 : index
    %c35_404 = arith.constant 35 : index
    %836 = memref.load %arg6[%c2_403, %c35_404] : memref<3x64xf32, #tpu.memory_space<smem>>
    %837 = vector.broadcast %836 : f32 to vector<8x128xf32>
    %838 = arith.mulf %23, %837 : vector<8x128xf32>
    %839 = arith.addf %835, %838 : vector<8x128xf32>
    %c35_405 = arith.constant 35 : index
    %840 = memref.load %arg7[%c35_405] : memref<64xf32, #tpu.memory_space<smem>>
    %841 = vector.broadcast %840 : f32 to vector<8x128xf32>
    %842 = arith.addf %839, %841 : vector<8x128xf32>
    %cst_406 = arith.constant 0.000000e+00 : f32
    %843 = vector.broadcast %cst_406 : f32 to vector<8x128xf32>
    %844 = arith.maximumf %842, %843 : vector<8x128xf32>
    %c35_407 = arith.constant 35 : index
    %c0_408 = arith.constant 0 : index
    %845 = memref.load %arg8[%c35_407, %c0_408] : memref<64x2xf32, #tpu.memory_space<smem>>
    %c35_409 = arith.constant 35 : index
    %c1_410 = arith.constant 1 : index
    %846 = memref.load %arg8[%c35_409, %c1_410] : memref<64x2xf32, #tpu.memory_space<smem>>
    %847 = vector.broadcast %845 : f32 to vector<8x128xf32>
    %848 = vector.broadcast %846 : f32 to vector<8x128xf32>
    %849 = arith.select %4, %847, %848 : vector<8x128xi1>, vector<8x128xf32>
    %850 = arith.mulf %844, %849 : vector<8x128xf32>
    %851 = arith.addf %828, %850 : vector<8x128xf32>
    %c0_411 = arith.constant 0 : index
    %c36 = arith.constant 36 : index
    %852 = memref.load %arg6[%c0_411, %c36] : memref<3x64xf32, #tpu.memory_space<smem>>
    %853 = vector.broadcast %852 : f32 to vector<8x128xf32>
    %854 = arith.mulf %21, %853 : vector<8x128xf32>
    %c1_412 = arith.constant 1 : index
    %c36_413 = arith.constant 36 : index
    %855 = memref.load %arg6[%c1_412, %c36_413] : memref<3x64xf32, #tpu.memory_space<smem>>
    %856 = vector.broadcast %855 : f32 to vector<8x128xf32>
    %857 = arith.mulf %22, %856 : vector<8x128xf32>
    %858 = arith.addf %854, %857 : vector<8x128xf32>
    %c2_414 = arith.constant 2 : index
    %c36_415 = arith.constant 36 : index
    %859 = memref.load %arg6[%c2_414, %c36_415] : memref<3x64xf32, #tpu.memory_space<smem>>
    %860 = vector.broadcast %859 : f32 to vector<8x128xf32>
    %861 = arith.mulf %23, %860 : vector<8x128xf32>
    %862 = arith.addf %858, %861 : vector<8x128xf32>
    %c36_416 = arith.constant 36 : index
    %863 = memref.load %arg7[%c36_416] : memref<64xf32, #tpu.memory_space<smem>>
    %864 = vector.broadcast %863 : f32 to vector<8x128xf32>
    %865 = arith.addf %862, %864 : vector<8x128xf32>
    %cst_417 = arith.constant 0.000000e+00 : f32
    %866 = vector.broadcast %cst_417 : f32 to vector<8x128xf32>
    %867 = arith.maximumf %865, %866 : vector<8x128xf32>
    %c36_418 = arith.constant 36 : index
    %c0_419 = arith.constant 0 : index
    %868 = memref.load %arg8[%c36_418, %c0_419] : memref<64x2xf32, #tpu.memory_space<smem>>
    %c36_420 = arith.constant 36 : index
    %c1_421 = arith.constant 1 : index
    %869 = memref.load %arg8[%c36_420, %c1_421] : memref<64x2xf32, #tpu.memory_space<smem>>
    %870 = vector.broadcast %868 : f32 to vector<8x128xf32>
    %871 = vector.broadcast %869 : f32 to vector<8x128xf32>
    %872 = arith.select %4, %870, %871 : vector<8x128xi1>, vector<8x128xf32>
    %873 = arith.mulf %867, %872 : vector<8x128xf32>
    %874 = arith.addf %851, %873 : vector<8x128xf32>
    %c0_422 = arith.constant 0 : index
    %c37 = arith.constant 37 : index
    %875 = memref.load %arg6[%c0_422, %c37] : memref<3x64xf32, #tpu.memory_space<smem>>
    %876 = vector.broadcast %875 : f32 to vector<8x128xf32>
    %877 = arith.mulf %21, %876 : vector<8x128xf32>
    %c1_423 = arith.constant 1 : index
    %c37_424 = arith.constant 37 : index
    %878 = memref.load %arg6[%c1_423, %c37_424] : memref<3x64xf32, #tpu.memory_space<smem>>
    %879 = vector.broadcast %878 : f32 to vector<8x128xf32>
    %880 = arith.mulf %22, %879 : vector<8x128xf32>
    %881 = arith.addf %877, %880 : vector<8x128xf32>
    %c2_425 = arith.constant 2 : index
    %c37_426 = arith.constant 37 : index
    %882 = memref.load %arg6[%c2_425, %c37_426] : memref<3x64xf32, #tpu.memory_space<smem>>
    %883 = vector.broadcast %882 : f32 to vector<8x128xf32>
    %884 = arith.mulf %23, %883 : vector<8x128xf32>
    %885 = arith.addf %881, %884 : vector<8x128xf32>
    %c37_427 = arith.constant 37 : index
    %886 = memref.load %arg7[%c37_427] : memref<64xf32, #tpu.memory_space<smem>>
    %887 = vector.broadcast %886 : f32 to vector<8x128xf32>
    %888 = arith.addf %885, %887 : vector<8x128xf32>
    %cst_428 = arith.constant 0.000000e+00 : f32
    %889 = vector.broadcast %cst_428 : f32 to vector<8x128xf32>
    %890 = arith.maximumf %888, %889 : vector<8x128xf32>
    %c37_429 = arith.constant 37 : index
    %c0_430 = arith.constant 0 : index
    %891 = memref.load %arg8[%c37_429, %c0_430] : memref<64x2xf32, #tpu.memory_space<smem>>
    %c37_431 = arith.constant 37 : index
    %c1_432 = arith.constant 1 : index
    %892 = memref.load %arg8[%c37_431, %c1_432] : memref<64x2xf32, #tpu.memory_space<smem>>
    %893 = vector.broadcast %891 : f32 to vector<8x128xf32>
    %894 = vector.broadcast %892 : f32 to vector<8x128xf32>
    %895 = arith.select %4, %893, %894 : vector<8x128xi1>, vector<8x128xf32>
    %896 = arith.mulf %890, %895 : vector<8x128xf32>
    %897 = arith.addf %874, %896 : vector<8x128xf32>
    %c0_433 = arith.constant 0 : index
    %c38 = arith.constant 38 : index
    %898 = memref.load %arg6[%c0_433, %c38] : memref<3x64xf32, #tpu.memory_space<smem>>
    %899 = vector.broadcast %898 : f32 to vector<8x128xf32>
    %900 = arith.mulf %21, %899 : vector<8x128xf32>
    %c1_434 = arith.constant 1 : index
    %c38_435 = arith.constant 38 : index
    %901 = memref.load %arg6[%c1_434, %c38_435] : memref<3x64xf32, #tpu.memory_space<smem>>
    %902 = vector.broadcast %901 : f32 to vector<8x128xf32>
    %903 = arith.mulf %22, %902 : vector<8x128xf32>
    %904 = arith.addf %900, %903 : vector<8x128xf32>
    %c2_436 = arith.constant 2 : index
    %c38_437 = arith.constant 38 : index
    %905 = memref.load %arg6[%c2_436, %c38_437] : memref<3x64xf32, #tpu.memory_space<smem>>
    %906 = vector.broadcast %905 : f32 to vector<8x128xf32>
    %907 = arith.mulf %23, %906 : vector<8x128xf32>
    %908 = arith.addf %904, %907 : vector<8x128xf32>
    %c38_438 = arith.constant 38 : index
    %909 = memref.load %arg7[%c38_438] : memref<64xf32, #tpu.memory_space<smem>>
    %910 = vector.broadcast %909 : f32 to vector<8x128xf32>
    %911 = arith.addf %908, %910 : vector<8x128xf32>
    %cst_439 = arith.constant 0.000000e+00 : f32
    %912 = vector.broadcast %cst_439 : f32 to vector<8x128xf32>
    %913 = arith.maximumf %911, %912 : vector<8x128xf32>
    %c38_440 = arith.constant 38 : index
    %c0_441 = arith.constant 0 : index
    %914 = memref.load %arg8[%c38_440, %c0_441] : memref<64x2xf32, #tpu.memory_space<smem>>
    %c38_442 = arith.constant 38 : index
    %c1_443 = arith.constant 1 : index
    %915 = memref.load %arg8[%c38_442, %c1_443] : memref<64x2xf32, #tpu.memory_space<smem>>
    %916 = vector.broadcast %914 : f32 to vector<8x128xf32>
    %917 = vector.broadcast %915 : f32 to vector<8x128xf32>
    %918 = arith.select %4, %916, %917 : vector<8x128xi1>, vector<8x128xf32>
    %919 = arith.mulf %913, %918 : vector<8x128xf32>
    %920 = arith.addf %897, %919 : vector<8x128xf32>
    %c0_444 = arith.constant 0 : index
    %c39 = arith.constant 39 : index
    %921 = memref.load %arg6[%c0_444, %c39] : memref<3x64xf32, #tpu.memory_space<smem>>
    %922 = vector.broadcast %921 : f32 to vector<8x128xf32>
    %923 = arith.mulf %21, %922 : vector<8x128xf32>
    %c1_445 = arith.constant 1 : index
    %c39_446 = arith.constant 39 : index
    %924 = memref.load %arg6[%c1_445, %c39_446] : memref<3x64xf32, #tpu.memory_space<smem>>
    %925 = vector.broadcast %924 : f32 to vector<8x128xf32>
    %926 = arith.mulf %22, %925 : vector<8x128xf32>
    %927 = arith.addf %923, %926 : vector<8x128xf32>
    %c2_447 = arith.constant 2 : index
    %c39_448 = arith.constant 39 : index
    %928 = memref.load %arg6[%c2_447, %c39_448] : memref<3x64xf32, #tpu.memory_space<smem>>
    %929 = vector.broadcast %928 : f32 to vector<8x128xf32>
    %930 = arith.mulf %23, %929 : vector<8x128xf32>
    %931 = arith.addf %927, %930 : vector<8x128xf32>
    %c39_449 = arith.constant 39 : index
    %932 = memref.load %arg7[%c39_449] : memref<64xf32, #tpu.memory_space<smem>>
    %933 = vector.broadcast %932 : f32 to vector<8x128xf32>
    %934 = arith.addf %931, %933 : vector<8x128xf32>
    %cst_450 = arith.constant 0.000000e+00 : f32
    %935 = vector.broadcast %cst_450 : f32 to vector<8x128xf32>
    %936 = arith.maximumf %934, %935 : vector<8x128xf32>
    %c39_451 = arith.constant 39 : index
    %c0_452 = arith.constant 0 : index
    %937 = memref.load %arg8[%c39_451, %c0_452] : memref<64x2xf32, #tpu.memory_space<smem>>
    %c39_453 = arith.constant 39 : index
    %c1_454 = arith.constant 1 : index
    %938 = memref.load %arg8[%c39_453, %c1_454] : memref<64x2xf32, #tpu.memory_space<smem>>
    %939 = vector.broadcast %937 : f32 to vector<8x128xf32>
    %940 = vector.broadcast %938 : f32 to vector<8x128xf32>
    %941 = arith.select %4, %939, %940 : vector<8x128xi1>, vector<8x128xf32>
    %942 = arith.mulf %936, %941 : vector<8x128xf32>
    %943 = arith.addf %920, %942 : vector<8x128xf32>
    %c0_455 = arith.constant 0 : index
    %c40 = arith.constant 40 : index
    %944 = memref.load %arg6[%c0_455, %c40] : memref<3x64xf32, #tpu.memory_space<smem>>
    %945 = vector.broadcast %944 : f32 to vector<8x128xf32>
    %946 = arith.mulf %21, %945 : vector<8x128xf32>
    %c1_456 = arith.constant 1 : index
    %c40_457 = arith.constant 40 : index
    %947 = memref.load %arg6[%c1_456, %c40_457] : memref<3x64xf32, #tpu.memory_space<smem>>
    %948 = vector.broadcast %947 : f32 to vector<8x128xf32>
    %949 = arith.mulf %22, %948 : vector<8x128xf32>
    %950 = arith.addf %946, %949 : vector<8x128xf32>
    %c2_458 = arith.constant 2 : index
    %c40_459 = arith.constant 40 : index
    %951 = memref.load %arg6[%c2_458, %c40_459] : memref<3x64xf32, #tpu.memory_space<smem>>
    %952 = vector.broadcast %951 : f32 to vector<8x128xf32>
    %953 = arith.mulf %23, %952 : vector<8x128xf32>
    %954 = arith.addf %950, %953 : vector<8x128xf32>
    %c40_460 = arith.constant 40 : index
    %955 = memref.load %arg7[%c40_460] : memref<64xf32, #tpu.memory_space<smem>>
    %956 = vector.broadcast %955 : f32 to vector<8x128xf32>
    %957 = arith.addf %954, %956 : vector<8x128xf32>
    %cst_461 = arith.constant 0.000000e+00 : f32
    %958 = vector.broadcast %cst_461 : f32 to vector<8x128xf32>
    %959 = arith.maximumf %957, %958 : vector<8x128xf32>
    %c40_462 = arith.constant 40 : index
    %c0_463 = arith.constant 0 : index
    %960 = memref.load %arg8[%c40_462, %c0_463] : memref<64x2xf32, #tpu.memory_space<smem>>
    %c40_464 = arith.constant 40 : index
    %c1_465 = arith.constant 1 : index
    %961 = memref.load %arg8[%c40_464, %c1_465] : memref<64x2xf32, #tpu.memory_space<smem>>
    %962 = vector.broadcast %960 : f32 to vector<8x128xf32>
    %963 = vector.broadcast %961 : f32 to vector<8x128xf32>
    %964 = arith.select %4, %962, %963 : vector<8x128xi1>, vector<8x128xf32>
    %965 = arith.mulf %959, %964 : vector<8x128xf32>
    %966 = arith.addf %943, %965 : vector<8x128xf32>
    %c0_466 = arith.constant 0 : index
    %c41 = arith.constant 41 : index
    %967 = memref.load %arg6[%c0_466, %c41] : memref<3x64xf32, #tpu.memory_space<smem>>
    %968 = vector.broadcast %967 : f32 to vector<8x128xf32>
    %969 = arith.mulf %21, %968 : vector<8x128xf32>
    %c1_467 = arith.constant 1 : index
    %c41_468 = arith.constant 41 : index
    %970 = memref.load %arg6[%c1_467, %c41_468] : memref<3x64xf32, #tpu.memory_space<smem>>
    %971 = vector.broadcast %970 : f32 to vector<8x128xf32>
    %972 = arith.mulf %22, %971 : vector<8x128xf32>
    %973 = arith.addf %969, %972 : vector<8x128xf32>
    %c2_469 = arith.constant 2 : index
    %c41_470 = arith.constant 41 : index
    %974 = memref.load %arg6[%c2_469, %c41_470] : memref<3x64xf32, #tpu.memory_space<smem>>
    %975 = vector.broadcast %974 : f32 to vector<8x128xf32>
    %976 = arith.mulf %23, %975 : vector<8x128xf32>
    %977 = arith.addf %973, %976 : vector<8x128xf32>
    %c41_471 = arith.constant 41 : index
    %978 = memref.load %arg7[%c41_471] : memref<64xf32, #tpu.memory_space<smem>>
    %979 = vector.broadcast %978 : f32 to vector<8x128xf32>
    %980 = arith.addf %977, %979 : vector<8x128xf32>
    %cst_472 = arith.constant 0.000000e+00 : f32
    %981 = vector.broadcast %cst_472 : f32 to vector<8x128xf32>
    %982 = arith.maximumf %980, %981 : vector<8x128xf32>
    %c41_473 = arith.constant 41 : index
    %c0_474 = arith.constant 0 : index
    %983 = memref.load %arg8[%c41_473, %c0_474] : memref<64x2xf32, #tpu.memory_space<smem>>
    %c41_475 = arith.constant 41 : index
    %c1_476 = arith.constant 1 : index
    %984 = memref.load %arg8[%c41_475, %c1_476] : memref<64x2xf32, #tpu.memory_space<smem>>
    %985 = vector.broadcast %983 : f32 to vector<8x128xf32>
    %986 = vector.broadcast %984 : f32 to vector<8x128xf32>
    %987 = arith.select %4, %985, %986 : vector<8x128xi1>, vector<8x128xf32>
    %988 = arith.mulf %982, %987 : vector<8x128xf32>
    %989 = arith.addf %966, %988 : vector<8x128xf32>
    %c0_477 = arith.constant 0 : index
    %c42 = arith.constant 42 : index
    %990 = memref.load %arg6[%c0_477, %c42] : memref<3x64xf32, #tpu.memory_space<smem>>
    %991 = vector.broadcast %990 : f32 to vector<8x128xf32>
    %992 = arith.mulf %21, %991 : vector<8x128xf32>
    %c1_478 = arith.constant 1 : index
    %c42_479 = arith.constant 42 : index
    %993 = memref.load %arg6[%c1_478, %c42_479] : memref<3x64xf32, #tpu.memory_space<smem>>
    %994 = vector.broadcast %993 : f32 to vector<8x128xf32>
    %995 = arith.mulf %22, %994 : vector<8x128xf32>
    %996 = arith.addf %992, %995 : vector<8x128xf32>
    %c2_480 = arith.constant 2 : index
    %c42_481 = arith.constant 42 : index
    %997 = memref.load %arg6[%c2_480, %c42_481] : memref<3x64xf32, #tpu.memory_space<smem>>
    %998 = vector.broadcast %997 : f32 to vector<8x128xf32>
    %999 = arith.mulf %23, %998 : vector<8x128xf32>
    %1000 = arith.addf %996, %999 : vector<8x128xf32>
    %c42_482 = arith.constant 42 : index
    %1001 = memref.load %arg7[%c42_482] : memref<64xf32, #tpu.memory_space<smem>>
    %1002 = vector.broadcast %1001 : f32 to vector<8x128xf32>
    %1003 = arith.addf %1000, %1002 : vector<8x128xf32>
    %cst_483 = arith.constant 0.000000e+00 : f32
    %1004 = vector.broadcast %cst_483 : f32 to vector<8x128xf32>
    %1005 = arith.maximumf %1003, %1004 : vector<8x128xf32>
    %c42_484 = arith.constant 42 : index
    %c0_485 = arith.constant 0 : index
    %1006 = memref.load %arg8[%c42_484, %c0_485] : memref<64x2xf32, #tpu.memory_space<smem>>
    %c42_486 = arith.constant 42 : index
    %c1_487 = arith.constant 1 : index
    %1007 = memref.load %arg8[%c42_486, %c1_487] : memref<64x2xf32, #tpu.memory_space<smem>>
    %1008 = vector.broadcast %1006 : f32 to vector<8x128xf32>
    %1009 = vector.broadcast %1007 : f32 to vector<8x128xf32>
    %1010 = arith.select %4, %1008, %1009 : vector<8x128xi1>, vector<8x128xf32>
    %1011 = arith.mulf %1005, %1010 : vector<8x128xf32>
    %1012 = arith.addf %989, %1011 : vector<8x128xf32>
    %c0_488 = arith.constant 0 : index
    %c43 = arith.constant 43 : index
    %1013 = memref.load %arg6[%c0_488, %c43] : memref<3x64xf32, #tpu.memory_space<smem>>
    %1014 = vector.broadcast %1013 : f32 to vector<8x128xf32>
    %1015 = arith.mulf %21, %1014 : vector<8x128xf32>
    %c1_489 = arith.constant 1 : index
    %c43_490 = arith.constant 43 : index
    %1016 = memref.load %arg6[%c1_489, %c43_490] : memref<3x64xf32, #tpu.memory_space<smem>>
    %1017 = vector.broadcast %1016 : f32 to vector<8x128xf32>
    %1018 = arith.mulf %22, %1017 : vector<8x128xf32>
    %1019 = arith.addf %1015, %1018 : vector<8x128xf32>
    %c2_491 = arith.constant 2 : index
    %c43_492 = arith.constant 43 : index
    %1020 = memref.load %arg6[%c2_491, %c43_492] : memref<3x64xf32, #tpu.memory_space<smem>>
    %1021 = vector.broadcast %1020 : f32 to vector<8x128xf32>
    %1022 = arith.mulf %23, %1021 : vector<8x128xf32>
    %1023 = arith.addf %1019, %1022 : vector<8x128xf32>
    %c43_493 = arith.constant 43 : index
    %1024 = memref.load %arg7[%c43_493] : memref<64xf32, #tpu.memory_space<smem>>
    %1025 = vector.broadcast %1024 : f32 to vector<8x128xf32>
    %1026 = arith.addf %1023, %1025 : vector<8x128xf32>
    %cst_494 = arith.constant 0.000000e+00 : f32
    %1027 = vector.broadcast %cst_494 : f32 to vector<8x128xf32>
    %1028 = arith.maximumf %1026, %1027 : vector<8x128xf32>
    %c43_495 = arith.constant 43 : index
    %c0_496 = arith.constant 0 : index
    %1029 = memref.load %arg8[%c43_495, %c0_496] : memref<64x2xf32, #tpu.memory_space<smem>>
    %c43_497 = arith.constant 43 : index
    %c1_498 = arith.constant 1 : index
    %1030 = memref.load %arg8[%c43_497, %c1_498] : memref<64x2xf32, #tpu.memory_space<smem>>
    %1031 = vector.broadcast %1029 : f32 to vector<8x128xf32>
    %1032 = vector.broadcast %1030 : f32 to vector<8x128xf32>
    %1033 = arith.select %4, %1031, %1032 : vector<8x128xi1>, vector<8x128xf32>
    %1034 = arith.mulf %1028, %1033 : vector<8x128xf32>
    %1035 = arith.addf %1012, %1034 : vector<8x128xf32>
    %c0_499 = arith.constant 0 : index
    %c44 = arith.constant 44 : index
    %1036 = memref.load %arg6[%c0_499, %c44] : memref<3x64xf32, #tpu.memory_space<smem>>
    %1037 = vector.broadcast %1036 : f32 to vector<8x128xf32>
    %1038 = arith.mulf %21, %1037 : vector<8x128xf32>
    %c1_500 = arith.constant 1 : index
    %c44_501 = arith.constant 44 : index
    %1039 = memref.load %arg6[%c1_500, %c44_501] : memref<3x64xf32, #tpu.memory_space<smem>>
    %1040 = vector.broadcast %1039 : f32 to vector<8x128xf32>
    %1041 = arith.mulf %22, %1040 : vector<8x128xf32>
    %1042 = arith.addf %1038, %1041 : vector<8x128xf32>
    %c2_502 = arith.constant 2 : index
    %c44_503 = arith.constant 44 : index
    %1043 = memref.load %arg6[%c2_502, %c44_503] : memref<3x64xf32, #tpu.memory_space<smem>>
    %1044 = vector.broadcast %1043 : f32 to vector<8x128xf32>
    %1045 = arith.mulf %23, %1044 : vector<8x128xf32>
    %1046 = arith.addf %1042, %1045 : vector<8x128xf32>
    %c44_504 = arith.constant 44 : index
    %1047 = memref.load %arg7[%c44_504] : memref<64xf32, #tpu.memory_space<smem>>
    %1048 = vector.broadcast %1047 : f32 to vector<8x128xf32>
    %1049 = arith.addf %1046, %1048 : vector<8x128xf32>
    %cst_505 = arith.constant 0.000000e+00 : f32
    %1050 = vector.broadcast %cst_505 : f32 to vector<8x128xf32>
    %1051 = arith.maximumf %1049, %1050 : vector<8x128xf32>
    %c44_506 = arith.constant 44 : index
    %c0_507 = arith.constant 0 : index
    %1052 = memref.load %arg8[%c44_506, %c0_507] : memref<64x2xf32, #tpu.memory_space<smem>>
    %c44_508 = arith.constant 44 : index
    %c1_509 = arith.constant 1 : index
    %1053 = memref.load %arg8[%c44_508, %c1_509] : memref<64x2xf32, #tpu.memory_space<smem>>
    %1054 = vector.broadcast %1052 : f32 to vector<8x128xf32>
    %1055 = vector.broadcast %1053 : f32 to vector<8x128xf32>
    %1056 = arith.select %4, %1054, %1055 : vector<8x128xi1>, vector<8x128xf32>
    %1057 = arith.mulf %1051, %1056 : vector<8x128xf32>
    %1058 = arith.addf %1035, %1057 : vector<8x128xf32>
    %c0_510 = arith.constant 0 : index
    %c45 = arith.constant 45 : index
    %1059 = memref.load %arg6[%c0_510, %c45] : memref<3x64xf32, #tpu.memory_space<smem>>
    %1060 = vector.broadcast %1059 : f32 to vector<8x128xf32>
    %1061 = arith.mulf %21, %1060 : vector<8x128xf32>
    %c1_511 = arith.constant 1 : index
    %c45_512 = arith.constant 45 : index
    %1062 = memref.load %arg6[%c1_511, %c45_512] : memref<3x64xf32, #tpu.memory_space<smem>>
    %1063 = vector.broadcast %1062 : f32 to vector<8x128xf32>
    %1064 = arith.mulf %22, %1063 : vector<8x128xf32>
    %1065 = arith.addf %1061, %1064 : vector<8x128xf32>
    %c2_513 = arith.constant 2 : index
    %c45_514 = arith.constant 45 : index
    %1066 = memref.load %arg6[%c2_513, %c45_514] : memref<3x64xf32, #tpu.memory_space<smem>>
    %1067 = vector.broadcast %1066 : f32 to vector<8x128xf32>
    %1068 = arith.mulf %23, %1067 : vector<8x128xf32>
    %1069 = arith.addf %1065, %1068 : vector<8x128xf32>
    %c45_515 = arith.constant 45 : index
    %1070 = memref.load %arg7[%c45_515] : memref<64xf32, #tpu.memory_space<smem>>
    %1071 = vector.broadcast %1070 : f32 to vector<8x128xf32>
    %1072 = arith.addf %1069, %1071 : vector<8x128xf32>
    %cst_516 = arith.constant 0.000000e+00 : f32
    %1073 = vector.broadcast %cst_516 : f32 to vector<8x128xf32>
    %1074 = arith.maximumf %1072, %1073 : vector<8x128xf32>
    %c45_517 = arith.constant 45 : index
    %c0_518 = arith.constant 0 : index
    %1075 = memref.load %arg8[%c45_517, %c0_518] : memref<64x2xf32, #tpu.memory_space<smem>>
    %c45_519 = arith.constant 45 : index
    %c1_520 = arith.constant 1 : index
    %1076 = memref.load %arg8[%c45_519, %c1_520] : memref<64x2xf32, #tpu.memory_space<smem>>
    %1077 = vector.broadcast %1075 : f32 to vector<8x128xf32>
    %1078 = vector.broadcast %1076 : f32 to vector<8x128xf32>
    %1079 = arith.select %4, %1077, %1078 : vector<8x128xi1>, vector<8x128xf32>
    %1080 = arith.mulf %1074, %1079 : vector<8x128xf32>
    %1081 = arith.addf %1058, %1080 : vector<8x128xf32>
    %c0_521 = arith.constant 0 : index
    %c46 = arith.constant 46 : index
    %1082 = memref.load %arg6[%c0_521, %c46] : memref<3x64xf32, #tpu.memory_space<smem>>
    %1083 = vector.broadcast %1082 : f32 to vector<8x128xf32>
    %1084 = arith.mulf %21, %1083 : vector<8x128xf32>
    %c1_522 = arith.constant 1 : index
    %c46_523 = arith.constant 46 : index
    %1085 = memref.load %arg6[%c1_522, %c46_523] : memref<3x64xf32, #tpu.memory_space<smem>>
    %1086 = vector.broadcast %1085 : f32 to vector<8x128xf32>
    %1087 = arith.mulf %22, %1086 : vector<8x128xf32>
    %1088 = arith.addf %1084, %1087 : vector<8x128xf32>
    %c2_524 = arith.constant 2 : index
    %c46_525 = arith.constant 46 : index
    %1089 = memref.load %arg6[%c2_524, %c46_525] : memref<3x64xf32, #tpu.memory_space<smem>>
    %1090 = vector.broadcast %1089 : f32 to vector<8x128xf32>
    %1091 = arith.mulf %23, %1090 : vector<8x128xf32>
    %1092 = arith.addf %1088, %1091 : vector<8x128xf32>
    %c46_526 = arith.constant 46 : index
    %1093 = memref.load %arg7[%c46_526] : memref<64xf32, #tpu.memory_space<smem>>
    %1094 = vector.broadcast %1093 : f32 to vector<8x128xf32>
    %1095 = arith.addf %1092, %1094 : vector<8x128xf32>
    %cst_527 = arith.constant 0.000000e+00 : f32
    %1096 = vector.broadcast %cst_527 : f32 to vector<8x128xf32>
    %1097 = arith.maximumf %1095, %1096 : vector<8x128xf32>
    %c46_528 = arith.constant 46 : index
    %c0_529 = arith.constant 0 : index
    %1098 = memref.load %arg8[%c46_528, %c0_529] : memref<64x2xf32, #tpu.memory_space<smem>>
    %c46_530 = arith.constant 46 : index
    %c1_531 = arith.constant 1 : index
    %1099 = memref.load %arg8[%c46_530, %c1_531] : memref<64x2xf32, #tpu.memory_space<smem>>
    %1100 = vector.broadcast %1098 : f32 to vector<8x128xf32>
    %1101 = vector.broadcast %1099 : f32 to vector<8x128xf32>
    %1102 = arith.select %4, %1100, %1101 : vector<8x128xi1>, vector<8x128xf32>
    %1103 = arith.mulf %1097, %1102 : vector<8x128xf32>
    %1104 = arith.addf %1081, %1103 : vector<8x128xf32>
    %c0_532 = arith.constant 0 : index
    %c47 = arith.constant 47 : index
    %1105 = memref.load %arg6[%c0_532, %c47] : memref<3x64xf32, #tpu.memory_space<smem>>
    %1106 = vector.broadcast %1105 : f32 to vector<8x128xf32>
    %1107 = arith.mulf %21, %1106 : vector<8x128xf32>
    %c1_533 = arith.constant 1 : index
    %c47_534 = arith.constant 47 : index
    %1108 = memref.load %arg6[%c1_533, %c47_534] : memref<3x64xf32, #tpu.memory_space<smem>>
    %1109 = vector.broadcast %1108 : f32 to vector<8x128xf32>
    %1110 = arith.mulf %22, %1109 : vector<8x128xf32>
    %1111 = arith.addf %1107, %1110 : vector<8x128xf32>
    %c2_535 = arith.constant 2 : index
    %c47_536 = arith.constant 47 : index
    %1112 = memref.load %arg6[%c2_535, %c47_536] : memref<3x64xf32, #tpu.memory_space<smem>>
    %1113 = vector.broadcast %1112 : f32 to vector<8x128xf32>
    %1114 = arith.mulf %23, %1113 : vector<8x128xf32>
    %1115 = arith.addf %1111, %1114 : vector<8x128xf32>
    %c47_537 = arith.constant 47 : index
    %1116 = memref.load %arg7[%c47_537] : memref<64xf32, #tpu.memory_space<smem>>
    %1117 = vector.broadcast %1116 : f32 to vector<8x128xf32>
    %1118 = arith.addf %1115, %1117 : vector<8x128xf32>
    %cst_538 = arith.constant 0.000000e+00 : f32
    %1119 = vector.broadcast %cst_538 : f32 to vector<8x128xf32>
    %1120 = arith.maximumf %1118, %1119 : vector<8x128xf32>
    %c47_539 = arith.constant 47 : index
    %c0_540 = arith.constant 0 : index
    %1121 = memref.load %arg8[%c47_539, %c0_540] : memref<64x2xf32, #tpu.memory_space<smem>>
    %c47_541 = arith.constant 47 : index
    %c1_542 = arith.constant 1 : index
    %1122 = memref.load %arg8[%c47_541, %c1_542] : memref<64x2xf32, #tpu.memory_space<smem>>
    %1123 = vector.broadcast %1121 : f32 to vector<8x128xf32>
    %1124 = vector.broadcast %1122 : f32 to vector<8x128xf32>
    %1125 = arith.select %4, %1123, %1124 : vector<8x128xi1>, vector<8x128xf32>
    %1126 = arith.mulf %1120, %1125 : vector<8x128xf32>
    %1127 = arith.addf %1104, %1126 : vector<8x128xf32>
    %c0_543 = arith.constant 0 : index
    %c48 = arith.constant 48 : index
    %1128 = memref.load %arg6[%c0_543, %c48] : memref<3x64xf32, #tpu.memory_space<smem>>
    %1129 = vector.broadcast %1128 : f32 to vector<8x128xf32>
    %1130 = arith.mulf %21, %1129 : vector<8x128xf32>
    %c1_544 = arith.constant 1 : index
    %c48_545 = arith.constant 48 : index
    %1131 = memref.load %arg6[%c1_544, %c48_545] : memref<3x64xf32, #tpu.memory_space<smem>>
    %1132 = vector.broadcast %1131 : f32 to vector<8x128xf32>
    %1133 = arith.mulf %22, %1132 : vector<8x128xf32>
    %1134 = arith.addf %1130, %1133 : vector<8x128xf32>
    %c2_546 = arith.constant 2 : index
    %c48_547 = arith.constant 48 : index
    %1135 = memref.load %arg6[%c2_546, %c48_547] : memref<3x64xf32, #tpu.memory_space<smem>>
    %1136 = vector.broadcast %1135 : f32 to vector<8x128xf32>
    %1137 = arith.mulf %23, %1136 : vector<8x128xf32>
    %1138 = arith.addf %1134, %1137 : vector<8x128xf32>
    %c48_548 = arith.constant 48 : index
    %1139 = memref.load %arg7[%c48_548] : memref<64xf32, #tpu.memory_space<smem>>
    %1140 = vector.broadcast %1139 : f32 to vector<8x128xf32>
    %1141 = arith.addf %1138, %1140 : vector<8x128xf32>
    %cst_549 = arith.constant 0.000000e+00 : f32
    %1142 = vector.broadcast %cst_549 : f32 to vector<8x128xf32>
    %1143 = arith.maximumf %1141, %1142 : vector<8x128xf32>
    %c48_550 = arith.constant 48 : index
    %c0_551 = arith.constant 0 : index
    %1144 = memref.load %arg8[%c48_550, %c0_551] : memref<64x2xf32, #tpu.memory_space<smem>>
    %c48_552 = arith.constant 48 : index
    %c1_553 = arith.constant 1 : index
    %1145 = memref.load %arg8[%c48_552, %c1_553] : memref<64x2xf32, #tpu.memory_space<smem>>
    %1146 = vector.broadcast %1144 : f32 to vector<8x128xf32>
    %1147 = vector.broadcast %1145 : f32 to vector<8x128xf32>
    %1148 = arith.select %4, %1146, %1147 : vector<8x128xi1>, vector<8x128xf32>
    %1149 = arith.mulf %1143, %1148 : vector<8x128xf32>
    %1150 = arith.addf %1127, %1149 : vector<8x128xf32>
    %c0_554 = arith.constant 0 : index
    %c49 = arith.constant 49 : index
    %1151 = memref.load %arg6[%c0_554, %c49] : memref<3x64xf32, #tpu.memory_space<smem>>
    %1152 = vector.broadcast %1151 : f32 to vector<8x128xf32>
    %1153 = arith.mulf %21, %1152 : vector<8x128xf32>
    %c1_555 = arith.constant 1 : index
    %c49_556 = arith.constant 49 : index
    %1154 = memref.load %arg6[%c1_555, %c49_556] : memref<3x64xf32, #tpu.memory_space<smem>>
    %1155 = vector.broadcast %1154 : f32 to vector<8x128xf32>
    %1156 = arith.mulf %22, %1155 : vector<8x128xf32>
    %1157 = arith.addf %1153, %1156 : vector<8x128xf32>
    %c2_557 = arith.constant 2 : index
    %c49_558 = arith.constant 49 : index
    %1158 = memref.load %arg6[%c2_557, %c49_558] : memref<3x64xf32, #tpu.memory_space<smem>>
    %1159 = vector.broadcast %1158 : f32 to vector<8x128xf32>
    %1160 = arith.mulf %23, %1159 : vector<8x128xf32>
    %1161 = arith.addf %1157, %1160 : vector<8x128xf32>
    %c49_559 = arith.constant 49 : index
    %1162 = memref.load %arg7[%c49_559] : memref<64xf32, #tpu.memory_space<smem>>
    %1163 = vector.broadcast %1162 : f32 to vector<8x128xf32>
    %1164 = arith.addf %1161, %1163 : vector<8x128xf32>
    %cst_560 = arith.constant 0.000000e+00 : f32
    %1165 = vector.broadcast %cst_560 : f32 to vector<8x128xf32>
    %1166 = arith.maximumf %1164, %1165 : vector<8x128xf32>
    %c49_561 = arith.constant 49 : index
    %c0_562 = arith.constant 0 : index
    %1167 = memref.load %arg8[%c49_561, %c0_562] : memref<64x2xf32, #tpu.memory_space<smem>>
    %c49_563 = arith.constant 49 : index
    %c1_564 = arith.constant 1 : index
    %1168 = memref.load %arg8[%c49_563, %c1_564] : memref<64x2xf32, #tpu.memory_space<smem>>
    %1169 = vector.broadcast %1167 : f32 to vector<8x128xf32>
    %1170 = vector.broadcast %1168 : f32 to vector<8x128xf32>
    %1171 = arith.select %4, %1169, %1170 : vector<8x128xi1>, vector<8x128xf32>
    %1172 = arith.mulf %1166, %1171 : vector<8x128xf32>
    %1173 = arith.addf %1150, %1172 : vector<8x128xf32>
    %c0_565 = arith.constant 0 : index
    %c50 = arith.constant 50 : index
    %1174 = memref.load %arg6[%c0_565, %c50] : memref<3x64xf32, #tpu.memory_space<smem>>
    %1175 = vector.broadcast %1174 : f32 to vector<8x128xf32>
    %1176 = arith.mulf %21, %1175 : vector<8x128xf32>
    %c1_566 = arith.constant 1 : index
    %c50_567 = arith.constant 50 : index
    %1177 = memref.load %arg6[%c1_566, %c50_567] : memref<3x64xf32, #tpu.memory_space<smem>>
    %1178 = vector.broadcast %1177 : f32 to vector<8x128xf32>
    %1179 = arith.mulf %22, %1178 : vector<8x128xf32>
    %1180 = arith.addf %1176, %1179 : vector<8x128xf32>
    %c2_568 = arith.constant 2 : index
    %c50_569 = arith.constant 50 : index
    %1181 = memref.load %arg6[%c2_568, %c50_569] : memref<3x64xf32, #tpu.memory_space<smem>>
    %1182 = vector.broadcast %1181 : f32 to vector<8x128xf32>
    %1183 = arith.mulf %23, %1182 : vector<8x128xf32>
    %1184 = arith.addf %1180, %1183 : vector<8x128xf32>
    %c50_570 = arith.constant 50 : index
    %1185 = memref.load %arg7[%c50_570] : memref<64xf32, #tpu.memory_space<smem>>
    %1186 = vector.broadcast %1185 : f32 to vector<8x128xf32>
    %1187 = arith.addf %1184, %1186 : vector<8x128xf32>
    %cst_571 = arith.constant 0.000000e+00 : f32
    %1188 = vector.broadcast %cst_571 : f32 to vector<8x128xf32>
    %1189 = arith.maximumf %1187, %1188 : vector<8x128xf32>
    %c50_572 = arith.constant 50 : index
    %c0_573 = arith.constant 0 : index
    %1190 = memref.load %arg8[%c50_572, %c0_573] : memref<64x2xf32, #tpu.memory_space<smem>>
    %c50_574 = arith.constant 50 : index
    %c1_575 = arith.constant 1 : index
    %1191 = memref.load %arg8[%c50_574, %c1_575] : memref<64x2xf32, #tpu.memory_space<smem>>
    %1192 = vector.broadcast %1190 : f32 to vector<8x128xf32>
    %1193 = vector.broadcast %1191 : f32 to vector<8x128xf32>
    %1194 = arith.select %4, %1192, %1193 : vector<8x128xi1>, vector<8x128xf32>
    %1195 = arith.mulf %1189, %1194 : vector<8x128xf32>
    %1196 = arith.addf %1173, %1195 : vector<8x128xf32>
    %c0_576 = arith.constant 0 : index
    %c51 = arith.constant 51 : index
    %1197 = memref.load %arg6[%c0_576, %c51] : memref<3x64xf32, #tpu.memory_space<smem>>
    %1198 = vector.broadcast %1197 : f32 to vector<8x128xf32>
    %1199 = arith.mulf %21, %1198 : vector<8x128xf32>
    %c1_577 = arith.constant 1 : index
    %c51_578 = arith.constant 51 : index
    %1200 = memref.load %arg6[%c1_577, %c51_578] : memref<3x64xf32, #tpu.memory_space<smem>>
    %1201 = vector.broadcast %1200 : f32 to vector<8x128xf32>
    %1202 = arith.mulf %22, %1201 : vector<8x128xf32>
    %1203 = arith.addf %1199, %1202 : vector<8x128xf32>
    %c2_579 = arith.constant 2 : index
    %c51_580 = arith.constant 51 : index
    %1204 = memref.load %arg6[%c2_579, %c51_580] : memref<3x64xf32, #tpu.memory_space<smem>>
    %1205 = vector.broadcast %1204 : f32 to vector<8x128xf32>
    %1206 = arith.mulf %23, %1205 : vector<8x128xf32>
    %1207 = arith.addf %1203, %1206 : vector<8x128xf32>
    %c51_581 = arith.constant 51 : index
    %1208 = memref.load %arg7[%c51_581] : memref<64xf32, #tpu.memory_space<smem>>
    %1209 = vector.broadcast %1208 : f32 to vector<8x128xf32>
    %1210 = arith.addf %1207, %1209 : vector<8x128xf32>
    %cst_582 = arith.constant 0.000000e+00 : f32
    %1211 = vector.broadcast %cst_582 : f32 to vector<8x128xf32>
    %1212 = arith.maximumf %1210, %1211 : vector<8x128xf32>
    %c51_583 = arith.constant 51 : index
    %c0_584 = arith.constant 0 : index
    %1213 = memref.load %arg8[%c51_583, %c0_584] : memref<64x2xf32, #tpu.memory_space<smem>>
    %c51_585 = arith.constant 51 : index
    %c1_586 = arith.constant 1 : index
    %1214 = memref.load %arg8[%c51_585, %c1_586] : memref<64x2xf32, #tpu.memory_space<smem>>
    %1215 = vector.broadcast %1213 : f32 to vector<8x128xf32>
    %1216 = vector.broadcast %1214 : f32 to vector<8x128xf32>
    %1217 = arith.select %4, %1215, %1216 : vector<8x128xi1>, vector<8x128xf32>
    %1218 = arith.mulf %1212, %1217 : vector<8x128xf32>
    %1219 = arith.addf %1196, %1218 : vector<8x128xf32>
    %c0_587 = arith.constant 0 : index
    %c52 = arith.constant 52 : index
    %1220 = memref.load %arg6[%c0_587, %c52] : memref<3x64xf32, #tpu.memory_space<smem>>
    %1221 = vector.broadcast %1220 : f32 to vector<8x128xf32>
    %1222 = arith.mulf %21, %1221 : vector<8x128xf32>
    %c1_588 = arith.constant 1 : index
    %c52_589 = arith.constant 52 : index
    %1223 = memref.load %arg6[%c1_588, %c52_589] : memref<3x64xf32, #tpu.memory_space<smem>>
    %1224 = vector.broadcast %1223 : f32 to vector<8x128xf32>
    %1225 = arith.mulf %22, %1224 : vector<8x128xf32>
    %1226 = arith.addf %1222, %1225 : vector<8x128xf32>
    %c2_590 = arith.constant 2 : index
    %c52_591 = arith.constant 52 : index
    %1227 = memref.load %arg6[%c2_590, %c52_591] : memref<3x64xf32, #tpu.memory_space<smem>>
    %1228 = vector.broadcast %1227 : f32 to vector<8x128xf32>
    %1229 = arith.mulf %23, %1228 : vector<8x128xf32>
    %1230 = arith.addf %1226, %1229 : vector<8x128xf32>
    %c52_592 = arith.constant 52 : index
    %1231 = memref.load %arg7[%c52_592] : memref<64xf32, #tpu.memory_space<smem>>
    %1232 = vector.broadcast %1231 : f32 to vector<8x128xf32>
    %1233 = arith.addf %1230, %1232 : vector<8x128xf32>
    %cst_593 = arith.constant 0.000000e+00 : f32
    %1234 = vector.broadcast %cst_593 : f32 to vector<8x128xf32>
    %1235 = arith.maximumf %1233, %1234 : vector<8x128xf32>
    %c52_594 = arith.constant 52 : index
    %c0_595 = arith.constant 0 : index
    %1236 = memref.load %arg8[%c52_594, %c0_595] : memref<64x2xf32, #tpu.memory_space<smem>>
    %c52_596 = arith.constant 52 : index
    %c1_597 = arith.constant 1 : index
    %1237 = memref.load %arg8[%c52_596, %c1_597] : memref<64x2xf32, #tpu.memory_space<smem>>
    %1238 = vector.broadcast %1236 : f32 to vector<8x128xf32>
    %1239 = vector.broadcast %1237 : f32 to vector<8x128xf32>
    %1240 = arith.select %4, %1238, %1239 : vector<8x128xi1>, vector<8x128xf32>
    %1241 = arith.mulf %1235, %1240 : vector<8x128xf32>
    %1242 = arith.addf %1219, %1241 : vector<8x128xf32>
    %c0_598 = arith.constant 0 : index
    %c53 = arith.constant 53 : index
    %1243 = memref.load %arg6[%c0_598, %c53] : memref<3x64xf32, #tpu.memory_space<smem>>
    %1244 = vector.broadcast %1243 : f32 to vector<8x128xf32>
    %1245 = arith.mulf %21, %1244 : vector<8x128xf32>
    %c1_599 = arith.constant 1 : index
    %c53_600 = arith.constant 53 : index
    %1246 = memref.load %arg6[%c1_599, %c53_600] : memref<3x64xf32, #tpu.memory_space<smem>>
    %1247 = vector.broadcast %1246 : f32 to vector<8x128xf32>
    %1248 = arith.mulf %22, %1247 : vector<8x128xf32>
    %1249 = arith.addf %1245, %1248 : vector<8x128xf32>
    %c2_601 = arith.constant 2 : index
    %c53_602 = arith.constant 53 : index
    %1250 = memref.load %arg6[%c2_601, %c53_602] : memref<3x64xf32, #tpu.memory_space<smem>>
    %1251 = vector.broadcast %1250 : f32 to vector<8x128xf32>
    %1252 = arith.mulf %23, %1251 : vector<8x128xf32>
    %1253 = arith.addf %1249, %1252 : vector<8x128xf32>
    %c53_603 = arith.constant 53 : index
    %1254 = memref.load %arg7[%c53_603] : memref<64xf32, #tpu.memory_space<smem>>
    %1255 = vector.broadcast %1254 : f32 to vector<8x128xf32>
    %1256 = arith.addf %1253, %1255 : vector<8x128xf32>
    %cst_604 = arith.constant 0.000000e+00 : f32
    %1257 = vector.broadcast %cst_604 : f32 to vector<8x128xf32>
    %1258 = arith.maximumf %1256, %1257 : vector<8x128xf32>
    %c53_605 = arith.constant 53 : index
    %c0_606 = arith.constant 0 : index
    %1259 = memref.load %arg8[%c53_605, %c0_606] : memref<64x2xf32, #tpu.memory_space<smem>>
    %c53_607 = arith.constant 53 : index
    %c1_608 = arith.constant 1 : index
    %1260 = memref.load %arg8[%c53_607, %c1_608] : memref<64x2xf32, #tpu.memory_space<smem>>
    %1261 = vector.broadcast %1259 : f32 to vector<8x128xf32>
    %1262 = vector.broadcast %1260 : f32 to vector<8x128xf32>
    %1263 = arith.select %4, %1261, %1262 : vector<8x128xi1>, vector<8x128xf32>
    %1264 = arith.mulf %1258, %1263 : vector<8x128xf32>
    %1265 = arith.addf %1242, %1264 : vector<8x128xf32>
    %c0_609 = arith.constant 0 : index
    %c54 = arith.constant 54 : index
    %1266 = memref.load %arg6[%c0_609, %c54] : memref<3x64xf32, #tpu.memory_space<smem>>
    %1267 = vector.broadcast %1266 : f32 to vector<8x128xf32>
    %1268 = arith.mulf %21, %1267 : vector<8x128xf32>
    %c1_610 = arith.constant 1 : index
    %c54_611 = arith.constant 54 : index
    %1269 = memref.load %arg6[%c1_610, %c54_611] : memref<3x64xf32, #tpu.memory_space<smem>>
    %1270 = vector.broadcast %1269 : f32 to vector<8x128xf32>
    %1271 = arith.mulf %22, %1270 : vector<8x128xf32>
    %1272 = arith.addf %1268, %1271 : vector<8x128xf32>
    %c2_612 = arith.constant 2 : index
    %c54_613 = arith.constant 54 : index
    %1273 = memref.load %arg6[%c2_612, %c54_613] : memref<3x64xf32, #tpu.memory_space<smem>>
    %1274 = vector.broadcast %1273 : f32 to vector<8x128xf32>
    %1275 = arith.mulf %23, %1274 : vector<8x128xf32>
    %1276 = arith.addf %1272, %1275 : vector<8x128xf32>
    %c54_614 = arith.constant 54 : index
    %1277 = memref.load %arg7[%c54_614] : memref<64xf32, #tpu.memory_space<smem>>
    %1278 = vector.broadcast %1277 : f32 to vector<8x128xf32>
    %1279 = arith.addf %1276, %1278 : vector<8x128xf32>
    %cst_615 = arith.constant 0.000000e+00 : f32
    %1280 = vector.broadcast %cst_615 : f32 to vector<8x128xf32>
    %1281 = arith.maximumf %1279, %1280 : vector<8x128xf32>
    %c54_616 = arith.constant 54 : index
    %c0_617 = arith.constant 0 : index
    %1282 = memref.load %arg8[%c54_616, %c0_617] : memref<64x2xf32, #tpu.memory_space<smem>>
    %c54_618 = arith.constant 54 : index
    %c1_619 = arith.constant 1 : index
    %1283 = memref.load %arg8[%c54_618, %c1_619] : memref<64x2xf32, #tpu.memory_space<smem>>
    %1284 = vector.broadcast %1282 : f32 to vector<8x128xf32>
    %1285 = vector.broadcast %1283 : f32 to vector<8x128xf32>
    %1286 = arith.select %4, %1284, %1285 : vector<8x128xi1>, vector<8x128xf32>
    %1287 = arith.mulf %1281, %1286 : vector<8x128xf32>
    %1288 = arith.addf %1265, %1287 : vector<8x128xf32>
    %c0_620 = arith.constant 0 : index
    %c55 = arith.constant 55 : index
    %1289 = memref.load %arg6[%c0_620, %c55] : memref<3x64xf32, #tpu.memory_space<smem>>
    %1290 = vector.broadcast %1289 : f32 to vector<8x128xf32>
    %1291 = arith.mulf %21, %1290 : vector<8x128xf32>
    %c1_621 = arith.constant 1 : index
    %c55_622 = arith.constant 55 : index
    %1292 = memref.load %arg6[%c1_621, %c55_622] : memref<3x64xf32, #tpu.memory_space<smem>>
    %1293 = vector.broadcast %1292 : f32 to vector<8x128xf32>
    %1294 = arith.mulf %22, %1293 : vector<8x128xf32>
    %1295 = arith.addf %1291, %1294 : vector<8x128xf32>
    %c2_623 = arith.constant 2 : index
    %c55_624 = arith.constant 55 : index
    %1296 = memref.load %arg6[%c2_623, %c55_624] : memref<3x64xf32, #tpu.memory_space<smem>>
    %1297 = vector.broadcast %1296 : f32 to vector<8x128xf32>
    %1298 = arith.mulf %23, %1297 : vector<8x128xf32>
    %1299 = arith.addf %1295, %1298 : vector<8x128xf32>
    %c55_625 = arith.constant 55 : index
    %1300 = memref.load %arg7[%c55_625] : memref<64xf32, #tpu.memory_space<smem>>
    %1301 = vector.broadcast %1300 : f32 to vector<8x128xf32>
    %1302 = arith.addf %1299, %1301 : vector<8x128xf32>
    %cst_626 = arith.constant 0.000000e+00 : f32
    %1303 = vector.broadcast %cst_626 : f32 to vector<8x128xf32>
    %1304 = arith.maximumf %1302, %1303 : vector<8x128xf32>
    %c55_627 = arith.constant 55 : index
    %c0_628 = arith.constant 0 : index
    %1305 = memref.load %arg8[%c55_627, %c0_628] : memref<64x2xf32, #tpu.memory_space<smem>>
    %c55_629 = arith.constant 55 : index
    %c1_630 = arith.constant 1 : index
    %1306 = memref.load %arg8[%c55_629, %c1_630] : memref<64x2xf32, #tpu.memory_space<smem>>
    %1307 = vector.broadcast %1305 : f32 to vector<8x128xf32>
    %1308 = vector.broadcast %1306 : f32 to vector<8x128xf32>
    %1309 = arith.select %4, %1307, %1308 : vector<8x128xi1>, vector<8x128xf32>
    %1310 = arith.mulf %1304, %1309 : vector<8x128xf32>
    %1311 = arith.addf %1288, %1310 : vector<8x128xf32>
    %c0_631 = arith.constant 0 : index
    %c56 = arith.constant 56 : index
    %1312 = memref.load %arg6[%c0_631, %c56] : memref<3x64xf32, #tpu.memory_space<smem>>
    %1313 = vector.broadcast %1312 : f32 to vector<8x128xf32>
    %1314 = arith.mulf %21, %1313 : vector<8x128xf32>
    %c1_632 = arith.constant 1 : index
    %c56_633 = arith.constant 56 : index
    %1315 = memref.load %arg6[%c1_632, %c56_633] : memref<3x64xf32, #tpu.memory_space<smem>>
    %1316 = vector.broadcast %1315 : f32 to vector<8x128xf32>
    %1317 = arith.mulf %22, %1316 : vector<8x128xf32>
    %1318 = arith.addf %1314, %1317 : vector<8x128xf32>
    %c2_634 = arith.constant 2 : index
    %c56_635 = arith.constant 56 : index
    %1319 = memref.load %arg6[%c2_634, %c56_635] : memref<3x64xf32, #tpu.memory_space<smem>>
    %1320 = vector.broadcast %1319 : f32 to vector<8x128xf32>
    %1321 = arith.mulf %23, %1320 : vector<8x128xf32>
    %1322 = arith.addf %1318, %1321 : vector<8x128xf32>
    %c56_636 = arith.constant 56 : index
    %1323 = memref.load %arg7[%c56_636] : memref<64xf32, #tpu.memory_space<smem>>
    %1324 = vector.broadcast %1323 : f32 to vector<8x128xf32>
    %1325 = arith.addf %1322, %1324 : vector<8x128xf32>
    %cst_637 = arith.constant 0.000000e+00 : f32
    %1326 = vector.broadcast %cst_637 : f32 to vector<8x128xf32>
    %1327 = arith.maximumf %1325, %1326 : vector<8x128xf32>
    %c56_638 = arith.constant 56 : index
    %c0_639 = arith.constant 0 : index
    %1328 = memref.load %arg8[%c56_638, %c0_639] : memref<64x2xf32, #tpu.memory_space<smem>>
    %c56_640 = arith.constant 56 : index
    %c1_641 = arith.constant 1 : index
    %1329 = memref.load %arg8[%c56_640, %c1_641] : memref<64x2xf32, #tpu.memory_space<smem>>
    %1330 = vector.broadcast %1328 : f32 to vector<8x128xf32>
    %1331 = vector.broadcast %1329 : f32 to vector<8x128xf32>
    %1332 = arith.select %4, %1330, %1331 : vector<8x128xi1>, vector<8x128xf32>
    %1333 = arith.mulf %1327, %1332 : vector<8x128xf32>
    %1334 = arith.addf %1311, %1333 : vector<8x128xf32>
    %c0_642 = arith.constant 0 : index
    %c57 = arith.constant 57 : index
    %1335 = memref.load %arg6[%c0_642, %c57] : memref<3x64xf32, #tpu.memory_space<smem>>
    %1336 = vector.broadcast %1335 : f32 to vector<8x128xf32>
    %1337 = arith.mulf %21, %1336 : vector<8x128xf32>
    %c1_643 = arith.constant 1 : index
    %c57_644 = arith.constant 57 : index
    %1338 = memref.load %arg6[%c1_643, %c57_644] : memref<3x64xf32, #tpu.memory_space<smem>>
    %1339 = vector.broadcast %1338 : f32 to vector<8x128xf32>
    %1340 = arith.mulf %22, %1339 : vector<8x128xf32>
    %1341 = arith.addf %1337, %1340 : vector<8x128xf32>
    %c2_645 = arith.constant 2 : index
    %c57_646 = arith.constant 57 : index
    %1342 = memref.load %arg6[%c2_645, %c57_646] : memref<3x64xf32, #tpu.memory_space<smem>>
    %1343 = vector.broadcast %1342 : f32 to vector<8x128xf32>
    %1344 = arith.mulf %23, %1343 : vector<8x128xf32>
    %1345 = arith.addf %1341, %1344 : vector<8x128xf32>
    %c57_647 = arith.constant 57 : index
    %1346 = memref.load %arg7[%c57_647] : memref<64xf32, #tpu.memory_space<smem>>
    %1347 = vector.broadcast %1346 : f32 to vector<8x128xf32>
    %1348 = arith.addf %1345, %1347 : vector<8x128xf32>
    %cst_648 = arith.constant 0.000000e+00 : f32
    %1349 = vector.broadcast %cst_648 : f32 to vector<8x128xf32>
    %1350 = arith.maximumf %1348, %1349 : vector<8x128xf32>
    %c57_649 = arith.constant 57 : index
    %c0_650 = arith.constant 0 : index
    %1351 = memref.load %arg8[%c57_649, %c0_650] : memref<64x2xf32, #tpu.memory_space<smem>>
    %c57_651 = arith.constant 57 : index
    %c1_652 = arith.constant 1 : index
    %1352 = memref.load %arg8[%c57_651, %c1_652] : memref<64x2xf32, #tpu.memory_space<smem>>
    %1353 = vector.broadcast %1351 : f32 to vector<8x128xf32>
    %1354 = vector.broadcast %1352 : f32 to vector<8x128xf32>
    %1355 = arith.select %4, %1353, %1354 : vector<8x128xi1>, vector<8x128xf32>
    %1356 = arith.mulf %1350, %1355 : vector<8x128xf32>
    %1357 = arith.addf %1334, %1356 : vector<8x128xf32>
    %c0_653 = arith.constant 0 : index
    %c58 = arith.constant 58 : index
    %1358 = memref.load %arg6[%c0_653, %c58] : memref<3x64xf32, #tpu.memory_space<smem>>
    %1359 = vector.broadcast %1358 : f32 to vector<8x128xf32>
    %1360 = arith.mulf %21, %1359 : vector<8x128xf32>
    %c1_654 = arith.constant 1 : index
    %c58_655 = arith.constant 58 : index
    %1361 = memref.load %arg6[%c1_654, %c58_655] : memref<3x64xf32, #tpu.memory_space<smem>>
    %1362 = vector.broadcast %1361 : f32 to vector<8x128xf32>
    %1363 = arith.mulf %22, %1362 : vector<8x128xf32>
    %1364 = arith.addf %1360, %1363 : vector<8x128xf32>
    %c2_656 = arith.constant 2 : index
    %c58_657 = arith.constant 58 : index
    %1365 = memref.load %arg6[%c2_656, %c58_657] : memref<3x64xf32, #tpu.memory_space<smem>>
    %1366 = vector.broadcast %1365 : f32 to vector<8x128xf32>
    %1367 = arith.mulf %23, %1366 : vector<8x128xf32>
    %1368 = arith.addf %1364, %1367 : vector<8x128xf32>
    %c58_658 = arith.constant 58 : index
    %1369 = memref.load %arg7[%c58_658] : memref<64xf32, #tpu.memory_space<smem>>
    %1370 = vector.broadcast %1369 : f32 to vector<8x128xf32>
    %1371 = arith.addf %1368, %1370 : vector<8x128xf32>
    %cst_659 = arith.constant 0.000000e+00 : f32
    %1372 = vector.broadcast %cst_659 : f32 to vector<8x128xf32>
    %1373 = arith.maximumf %1371, %1372 : vector<8x128xf32>
    %c58_660 = arith.constant 58 : index
    %c0_661 = arith.constant 0 : index
    %1374 = memref.load %arg8[%c58_660, %c0_661] : memref<64x2xf32, #tpu.memory_space<smem>>
    %c58_662 = arith.constant 58 : index
    %c1_663 = arith.constant 1 : index
    %1375 = memref.load %arg8[%c58_662, %c1_663] : memref<64x2xf32, #tpu.memory_space<smem>>
    %1376 = vector.broadcast %1374 : f32 to vector<8x128xf32>
    %1377 = vector.broadcast %1375 : f32 to vector<8x128xf32>
    %1378 = arith.select %4, %1376, %1377 : vector<8x128xi1>, vector<8x128xf32>
    %1379 = arith.mulf %1373, %1378 : vector<8x128xf32>
    %1380 = arith.addf %1357, %1379 : vector<8x128xf32>
    %c0_664 = arith.constant 0 : index
    %c59 = arith.constant 59 : index
    %1381 = memref.load %arg6[%c0_664, %c59] : memref<3x64xf32, #tpu.memory_space<smem>>
    %1382 = vector.broadcast %1381 : f32 to vector<8x128xf32>
    %1383 = arith.mulf %21, %1382 : vector<8x128xf32>
    %c1_665 = arith.constant 1 : index
    %c59_666 = arith.constant 59 : index
    %1384 = memref.load %arg6[%c1_665, %c59_666] : memref<3x64xf32, #tpu.memory_space<smem>>
    %1385 = vector.broadcast %1384 : f32 to vector<8x128xf32>
    %1386 = arith.mulf %22, %1385 : vector<8x128xf32>
    %1387 = arith.addf %1383, %1386 : vector<8x128xf32>
    %c2_667 = arith.constant 2 : index
    %c59_668 = arith.constant 59 : index
    %1388 = memref.load %arg6[%c2_667, %c59_668] : memref<3x64xf32, #tpu.memory_space<smem>>
    %1389 = vector.broadcast %1388 : f32 to vector<8x128xf32>
    %1390 = arith.mulf %23, %1389 : vector<8x128xf32>
    %1391 = arith.addf %1387, %1390 : vector<8x128xf32>
    %c59_669 = arith.constant 59 : index
    %1392 = memref.load %arg7[%c59_669] : memref<64xf32, #tpu.memory_space<smem>>
    %1393 = vector.broadcast %1392 : f32 to vector<8x128xf32>
    %1394 = arith.addf %1391, %1393 : vector<8x128xf32>
    %cst_670 = arith.constant 0.000000e+00 : f32
    %1395 = vector.broadcast %cst_670 : f32 to vector<8x128xf32>
    %1396 = arith.maximumf %1394, %1395 : vector<8x128xf32>
    %c59_671 = arith.constant 59 : index
    %c0_672 = arith.constant 0 : index
    %1397 = memref.load %arg8[%c59_671, %c0_672] : memref<64x2xf32, #tpu.memory_space<smem>>
    %c59_673 = arith.constant 59 : index
    %c1_674 = arith.constant 1 : index
    %1398 = memref.load %arg8[%c59_673, %c1_674] : memref<64x2xf32, #tpu.memory_space<smem>>
    %1399 = vector.broadcast %1397 : f32 to vector<8x128xf32>
    %1400 = vector.broadcast %1398 : f32 to vector<8x128xf32>
    %1401 = arith.select %4, %1399, %1400 : vector<8x128xi1>, vector<8x128xf32>
    %1402 = arith.mulf %1396, %1401 : vector<8x128xf32>
    %1403 = arith.addf %1380, %1402 : vector<8x128xf32>
    %c0_675 = arith.constant 0 : index
    %c60 = arith.constant 60 : index
    %1404 = memref.load %arg6[%c0_675, %c60] : memref<3x64xf32, #tpu.memory_space<smem>>
    %1405 = vector.broadcast %1404 : f32 to vector<8x128xf32>
    %1406 = arith.mulf %21, %1405 : vector<8x128xf32>
    %c1_676 = arith.constant 1 : index
    %c60_677 = arith.constant 60 : index
    %1407 = memref.load %arg6[%c1_676, %c60_677] : memref<3x64xf32, #tpu.memory_space<smem>>
    %1408 = vector.broadcast %1407 : f32 to vector<8x128xf32>
    %1409 = arith.mulf %22, %1408 : vector<8x128xf32>
    %1410 = arith.addf %1406, %1409 : vector<8x128xf32>
    %c2_678 = arith.constant 2 : index
    %c60_679 = arith.constant 60 : index
    %1411 = memref.load %arg6[%c2_678, %c60_679] : memref<3x64xf32, #tpu.memory_space<smem>>
    %1412 = vector.broadcast %1411 : f32 to vector<8x128xf32>
    %1413 = arith.mulf %23, %1412 : vector<8x128xf32>
    %1414 = arith.addf %1410, %1413 : vector<8x128xf32>
    %c60_680 = arith.constant 60 : index
    %1415 = memref.load %arg7[%c60_680] : memref<64xf32, #tpu.memory_space<smem>>
    %1416 = vector.broadcast %1415 : f32 to vector<8x128xf32>
    %1417 = arith.addf %1414, %1416 : vector<8x128xf32>
    %cst_681 = arith.constant 0.000000e+00 : f32
    %1418 = vector.broadcast %cst_681 : f32 to vector<8x128xf32>
    %1419 = arith.maximumf %1417, %1418 : vector<8x128xf32>
    %c60_682 = arith.constant 60 : index
    %c0_683 = arith.constant 0 : index
    %1420 = memref.load %arg8[%c60_682, %c0_683] : memref<64x2xf32, #tpu.memory_space<smem>>
    %c60_684 = arith.constant 60 : index
    %c1_685 = arith.constant 1 : index
    %1421 = memref.load %arg8[%c60_684, %c1_685] : memref<64x2xf32, #tpu.memory_space<smem>>
    %1422 = vector.broadcast %1420 : f32 to vector<8x128xf32>
    %1423 = vector.broadcast %1421 : f32 to vector<8x128xf32>
    %1424 = arith.select %4, %1422, %1423 : vector<8x128xi1>, vector<8x128xf32>
    %1425 = arith.mulf %1419, %1424 : vector<8x128xf32>
    %1426 = arith.addf %1403, %1425 : vector<8x128xf32>
    %c0_686 = arith.constant 0 : index
    %c61 = arith.constant 61 : index
    %1427 = memref.load %arg6[%c0_686, %c61] : memref<3x64xf32, #tpu.memory_space<smem>>
    %1428 = vector.broadcast %1427 : f32 to vector<8x128xf32>
    %1429 = arith.mulf %21, %1428 : vector<8x128xf32>
    %c1_687 = arith.constant 1 : index
    %c61_688 = arith.constant 61 : index
    %1430 = memref.load %arg6[%c1_687, %c61_688] : memref<3x64xf32, #tpu.memory_space<smem>>
    %1431 = vector.broadcast %1430 : f32 to vector<8x128xf32>
    %1432 = arith.mulf %22, %1431 : vector<8x128xf32>
    %1433 = arith.addf %1429, %1432 : vector<8x128xf32>
    %c2_689 = arith.constant 2 : index
    %c61_690 = arith.constant 61 : index
    %1434 = memref.load %arg6[%c2_689, %c61_690] : memref<3x64xf32, #tpu.memory_space<smem>>
    %1435 = vector.broadcast %1434 : f32 to vector<8x128xf32>
    %1436 = arith.mulf %23, %1435 : vector<8x128xf32>
    %1437 = arith.addf %1433, %1436 : vector<8x128xf32>
    %c61_691 = arith.constant 61 : index
    %1438 = memref.load %arg7[%c61_691] : memref<64xf32, #tpu.memory_space<smem>>
    %1439 = vector.broadcast %1438 : f32 to vector<8x128xf32>
    %1440 = arith.addf %1437, %1439 : vector<8x128xf32>
    %cst_692 = arith.constant 0.000000e+00 : f32
    %1441 = vector.broadcast %cst_692 : f32 to vector<8x128xf32>
    %1442 = arith.maximumf %1440, %1441 : vector<8x128xf32>
    %c61_693 = arith.constant 61 : index
    %c0_694 = arith.constant 0 : index
    %1443 = memref.load %arg8[%c61_693, %c0_694] : memref<64x2xf32, #tpu.memory_space<smem>>
    %c61_695 = arith.constant 61 : index
    %c1_696 = arith.constant 1 : index
    %1444 = memref.load %arg8[%c61_695, %c1_696] : memref<64x2xf32, #tpu.memory_space<smem>>
    %1445 = vector.broadcast %1443 : f32 to vector<8x128xf32>
    %1446 = vector.broadcast %1444 : f32 to vector<8x128xf32>
    %1447 = arith.select %4, %1445, %1446 : vector<8x128xi1>, vector<8x128xf32>
    %1448 = arith.mulf %1442, %1447 : vector<8x128xf32>
    %1449 = arith.addf %1426, %1448 : vector<8x128xf32>
    %c0_697 = arith.constant 0 : index
    %c62 = arith.constant 62 : index
    %1450 = memref.load %arg6[%c0_697, %c62] : memref<3x64xf32, #tpu.memory_space<smem>>
    %1451 = vector.broadcast %1450 : f32 to vector<8x128xf32>
    %1452 = arith.mulf %21, %1451 : vector<8x128xf32>
    %c1_698 = arith.constant 1 : index
    %c62_699 = arith.constant 62 : index
    %1453 = memref.load %arg6[%c1_698, %c62_699] : memref<3x64xf32, #tpu.memory_space<smem>>
    %1454 = vector.broadcast %1453 : f32 to vector<8x128xf32>
    %1455 = arith.mulf %22, %1454 : vector<8x128xf32>
    %1456 = arith.addf %1452, %1455 : vector<8x128xf32>
    %c2_700 = arith.constant 2 : index
    %c62_701 = arith.constant 62 : index
    %1457 = memref.load %arg6[%c2_700, %c62_701] : memref<3x64xf32, #tpu.memory_space<smem>>
    %1458 = vector.broadcast %1457 : f32 to vector<8x128xf32>
    %1459 = arith.mulf %23, %1458 : vector<8x128xf32>
    %1460 = arith.addf %1456, %1459 : vector<8x128xf32>
    %c62_702 = arith.constant 62 : index
    %1461 = memref.load %arg7[%c62_702] : memref<64xf32, #tpu.memory_space<smem>>
    %1462 = vector.broadcast %1461 : f32 to vector<8x128xf32>
    %1463 = arith.addf %1460, %1462 : vector<8x128xf32>
    %cst_703 = arith.constant 0.000000e+00 : f32
    %1464 = vector.broadcast %cst_703 : f32 to vector<8x128xf32>
    %1465 = arith.maximumf %1463, %1464 : vector<8x128xf32>
    %c62_704 = arith.constant 62 : index
    %c0_705 = arith.constant 0 : index
    %1466 = memref.load %arg8[%c62_704, %c0_705] : memref<64x2xf32, #tpu.memory_space<smem>>
    %c62_706 = arith.constant 62 : index
    %c1_707 = arith.constant 1 : index
    %1467 = memref.load %arg8[%c62_706, %c1_707] : memref<64x2xf32, #tpu.memory_space<smem>>
    %1468 = vector.broadcast %1466 : f32 to vector<8x128xf32>
    %1469 = vector.broadcast %1467 : f32 to vector<8x128xf32>
    %1470 = arith.select %4, %1468, %1469 : vector<8x128xi1>, vector<8x128xf32>
    %1471 = arith.mulf %1465, %1470 : vector<8x128xf32>
    %1472 = arith.addf %1449, %1471 : vector<8x128xf32>
    %c0_708 = arith.constant 0 : index
    %c63 = arith.constant 63 : index
    %1473 = memref.load %arg6[%c0_708, %c63] : memref<3x64xf32, #tpu.memory_space<smem>>
    %1474 = vector.broadcast %1473 : f32 to vector<8x128xf32>
    %1475 = arith.mulf %21, %1474 : vector<8x128xf32>
    %c1_709 = arith.constant 1 : index
    %c63_710 = arith.constant 63 : index
    %1476 = memref.load %arg6[%c1_709, %c63_710] : memref<3x64xf32, #tpu.memory_space<smem>>
    %1477 = vector.broadcast %1476 : f32 to vector<8x128xf32>
    %1478 = arith.mulf %22, %1477 : vector<8x128xf32>
    %1479 = arith.addf %1475, %1478 : vector<8x128xf32>
    %c2_711 = arith.constant 2 : index
    %c63_712 = arith.constant 63 : index
    %1480 = memref.load %arg6[%c2_711, %c63_712] : memref<3x64xf32, #tpu.memory_space<smem>>
    %1481 = vector.broadcast %1480 : f32 to vector<8x128xf32>
    %1482 = arith.mulf %23, %1481 : vector<8x128xf32>
    %1483 = arith.addf %1479, %1482 : vector<8x128xf32>
    %c63_713 = arith.constant 63 : index
    %1484 = memref.load %arg7[%c63_713] : memref<64xf32, #tpu.memory_space<smem>>
    %1485 = vector.broadcast %1484 : f32 to vector<8x128xf32>
    %1486 = arith.addf %1483, %1485 : vector<8x128xf32>
    %cst_714 = arith.constant 0.000000e+00 : f32
    %1487 = vector.broadcast %cst_714 : f32 to vector<8x128xf32>
    %1488 = arith.maximumf %1486, %1487 : vector<8x128xf32>
    %c63_715 = arith.constant 63 : index
    %c0_716 = arith.constant 0 : index
    %1489 = memref.load %arg8[%c63_715, %c0_716] : memref<64x2xf32, #tpu.memory_space<smem>>
    %c63_717 = arith.constant 63 : index
    %c1_718 = arith.constant 1 : index
    %1490 = memref.load %arg8[%c63_717, %c1_718] : memref<64x2xf32, #tpu.memory_space<smem>>
    %1491 = vector.broadcast %1489 : f32 to vector<8x128xf32>
    %1492 = vector.broadcast %1490 : f32 to vector<8x128xf32>
    %1493 = arith.select %4, %1491, %1492 : vector<8x128xi1>, vector<8x128xf32>
    %1494 = arith.mulf %1488, %1493 : vector<8x128xf32>
    %1495 = arith.addf %1472, %1494 : vector<8x128xf32>
    %1496 = arith.index_cast %16 : i32 to index
    %c0_719 = arith.constant 0 : index
    %1497 = vector.load %arg10[%1496, %c0_719] : memref<8x128xf32, #tpu.memory_space<vmem>>, vector<8x128xf32>
    tpu.vector_store %arg10[%1496, %c0_719], %1495 {strides = array<i32>} : memref<8x128xf32, #tpu.memory_space<vmem>>, vector<8x128xf32>,
    %c1_i32_720 = arith.constant 1 : i32
    return
  }
  func.func @transform_0(%arg0: i32) -> (i32, i32) {
    %c0_i32 = arith.constant 0 : i32
    %c0_i32_0 = arith.constant 0 : i32
    return %arg0, %c0_i32 : i32, i32
  }
  func.func @transform_1(%arg0: i32) -> (i32, i32) {
    %c0_i32 = arith.constant 0 : i32
    %c0_i32_0 = arith.constant 0 : i32
    return %arg0, %c0_i32 : i32, i32
  }
  func.func @transform_2(%arg0: i32) -> (i32, i32) {
    %c0_i32 = arith.constant 0 : i32
    %c0_i32_0 = arith.constant 0 : i32
    %c0_i32_1 = arith.constant 0 : i32
    return %c0_i32, %c0_i32_0 : i32, i32
  }
  func.func @transform_3(%arg0: i32) -> (i32, i32) {
    %c0_i32 = arith.constant 0 : i32
    %c0_i32_0 = arith.constant 0 : i32
    %c0_i32_1 = arith.constant 0 : i32
    return %c0_i32, %c0_i32_0 : i32, i32
  }
  func.func @transform_4(%arg0: i32) -> (i32, i32) {
    %c0_i32 = arith.constant 0 : i32
    %c0_i32_0 = arith.constant 0 : i32
    %c0_i32_1 = arith.constant 0 : i32
    return %c0_i32, %c0_i32_0 : i32, i32
  }
  func.func @transform_5(%arg0: i32) -> (i32, i32) {
    %c0_i32 = arith.constant 0 : i32
    %c0_i32_0 = arith.constant 0 : i32
    %c0_i32_1 = arith.constant 0 : i32
    return %c0_i32, %c0_i32_0 : i32, i32
  }
  func.func @transform_6(%arg0: i32) -> i32 {
    %c0_i32 = arith.constant 0 : i32
    %c0_i32_0 = arith.constant 0 : i32
    return %c0_i32 : i32
  }
  func.func @transform_7(%arg0: i32) -> (i32, i32) {
    %c0_i32 = arith.constant 0 : i32
    %c0_i32_0 = arith.constant 0 : i32
    %c0_i32_1 = arith.constant 0 : i32
    return %c0_i32, %c0_i32_0 : i32, i32
  }
  func.func @transform_8(%arg0: i32) -> i32 {
    %c0_i32 = arith.constant 0 : i32
    %c0_i32_0 = arith.constant 0 : i32
    return %c0_i32 : i32
  }
  func.func @transform_9(%arg0: i32) -> (i32, i32) {
    %c0_i32 = arith.constant 0 : i32
    %c0_i32_0 = arith.constant 0 : i32
    return %arg0, %c0_i32 : i32, i32
  }
}

</mosaic_0001>

<bundles_post_ra>
// kernel: tpu_custom_call.1
= control target key start
LH: loop header
LB: loop body
LE: loop exit
PB: predicated region body
PF: predicated region fallthrough
CT: control target
= control target key end

     0   :  { %s5596_s0 = inlined_call_operand.hbm [shape: f32[8,128], index: 0, kind: input, shape index: {}]   ;;  %s5597_s1 = inlined_call_operand.hbm [shape: f32[8,64], index: 1, kind: input, shape index: {}]   ;;  %s5598_s2 = inlined_call_operand.hbm [shape: f32[128,128], index: 2, kind: input, shape index: {}]   ;;  %s5599_s3 = inlined_call_operand.hbm [shape: f32[128,128], index: 3, kind: input, shape index: {}]   ;;  %s5600_s4 = inlined_call_operand.vmem [shape: f32[64,128], index: 4, kind: input, shape index: {}]   ;;  %s5601_s5 = inlined_call_operand.hbm [shape: f32[3,64], index: 5, kind: input, shape index: {}]   ;;  %s5602_s6 = inlined_call_operand.vmem [shape: f32[64], index: 6, kind: input, shape index: {}]   ;;  %s5603_s7 = inlined_call_operand.vmem [shape: f32[64,2], index: 7, kind: input, shape index: {}]   ;;  %s5604_s8 = inlined_call_operand.vmem [shape: f32[2], index: 8, kind: input, shape index: {}]   ;;  %s5605_s9 = inlined_call_operand.hbm [shape: f32[8,128], index: 9, kind: output, shape index: {}]  }
   0x1   :  { %5680 = sst [smem:[#allocation139_spill]] %s5605_s9 }
   0x2   :  { %14 = vsyncpa [#allocation3], 0 }
   0x3   :  { %15 = vsyncpa [#allocation8], 0 }
   0x4   :  { %16 = vsyncpa [#allocation11], 0 }
   0x5   :  { %17 = vsyncpa [#allocation5], 0 }
   0x6   :  { %18 = vsyncpa [#allocation6], 0 }
   0x7   :  { %19 = vsyncpa [#allocation15], 0  ;;  %s37_s11 = sshll.u32 %s5597_s1, 4  ;;  %s38_s11 = int_to_ptr.hbm [resolvable:$true] %s37_s11 }
   0x8   :  { %20 = vsyncpa [#allocation4], 0  ;;  %s3122_s12 = smov [#allocation7]   ;;  %s93_s16 = sshll.u32 %s5603_s7, 4  ;;  %s94_s16 = int_to_ptr.vmem [resolvable:$true] %s93_s16 }
   0x9   :  { %s39_s13 = sshll.u32 %s3122_s12, 4  ;;  %s3123_s17 = smov [#allocation14]   ;;  %s40_s13 = int_to_ptr.vmem [resolvable:$true] %s39_s13 }
   0xa   :  { %42 = dma.hbm_to_vmem [thread:$0]  %s38_s11, 128, %s40_s13, [#allocation8]  }
   0xb   :  { %s3124_s18 = smov 128   ;;  %s3125_s19 = smov 8  }
   0xc   :  { %99 = dma.vmem_to_smem %s94_s16, 1024, %s3123_s17, [#allocation15], %s3124_s18, %s3124_s18, %s3125_s19  }
   0xd   :  { %s26_s22 = sshll.u32 %s5596_s0, 4  ;;  %s3126_s1 = smov [#allocation2]   ;;  %s27_s22 = int_to_ptr.hbm [resolvable:$true] %s26_s22 }
   0xe   :  { %s28_s23 = sshll.u32 %s3126_s1, 4  ;;  %s47_s26 = sshll.u32 %s5598_s2, 4  ;;  %s29_s23 = int_to_ptr.vmem [resolvable:$true] %s28_s23  ;;  %s48_s26 = int_to_ptr.hbm [resolvable:$true] %s47_s26 }
   0xf   :  { %31 = dma.hbm_to_vmem [thread:$0]  %s27_s22, 128, %s29_s23, [#allocation3]  }
  0x10   :  { %s3127_s7 = smov [#allocation9]   ;;  %s60_s30 = sshll.u32 %s5599_s3, 4  ;;  %s61_s30 = int_to_ptr.hbm [resolvable:$true] %s60_s30 }
  0x11   :  { %s49_s27 = sshll.u32 %s3127_s7, 4  ;;  %s76_s11 = sshll.u32 %s5601_s5, 4  ;;  %s50_s27 = int_to_ptr.vmem [resolvable:$true] %s49_s27  ;;  %s77_s11 = int_to_ptr.hbm [resolvable:$true] %s76_s11 }
  0x12   :  { %55 = dma.hbm_to_vmem [thread:$0]  %s48_s26, 2048, %s50_s27, [#allocation8], %s3124_s18, %s3124_s18, %s3125_s19  }
  0x13   :  { %s3128_s12 = smov [#allocation10]   ;;  %s3129_s2 = smov [#allocation12]  }
  0x14   :  { %s62_s13 = sshll.u32 %s3128_s12, 4  ;;  %s85_s16 = sshll.u32 %s5602_s6, 4  ;;  %s63_s13 = int_to_ptr.vmem [resolvable:$true] %s62_s13  ;;  %s86_s16 = int_to_ptr.vmem [resolvable:$true] %s85_s16 }
  0x15   :  { %68 = dma.hbm_to_vmem [thread:$0]  %s61_s30, 2048, %s63_s13, [#allocation11], %s3124_s18, %s3124_s18, %s3125_s19  }
  0x16   :  { %79 = dma.hbm_to_smem %s77_s11, 64, %s3129_s2, [#allocation5]  }
  0x17   :  { %s105_s20 = sshll.u32 %s5604_s8, 4  ;;  %s3130_s21 = smov [#allocation13]   ;;  %s106_s20 = int_to_ptr.vmem [resolvable:$true] %s105_s20 }
  0x18   :  { %88 = dma.vmem_to_smem %s86_s16, 16, %s3130_s21, [#allocation6]  }
  0x19   :  { %s3131_s5 = smov [#allocation16]  }
  0x1a   :  { %108 = dma.vmem_to_smem %s106_s20, 16, %s3131_s5, [#allocation15]  }
  0x1b   :  { %3108 = dma.done.wait [#allocation3], 128  }
  0x1c   :  { %3109 = vsyncadd [#allocation3], 4294967168 }
  0x1d   :  { %3110 = dma.done.wait [#allocation8], 2176  }
  0x1e   :  { %3111 = vsyncadd [#allocation8], 4294965120 }
  0x1f   :  { %3112 = dma.done.wait [#allocation11], 2048  }
  0x20   :  { %3113 = vsyncadd [#allocation11], 4294965248 }
  0x21   :  { %3114 = dma.done.wait [#allocation5], 64  }
  0x22   :  { %3115 = vsyncadd [#allocation5], 4294967232 }
  0x23   :  { %3116 = dma.done.wait [#allocation6], 16  }
  0x24   :  { %3117 = vsyncadd [#allocation6], 4294967280 }
  0x25   :  { %3118 = dma.done.wait [#allocation15], 1040  }
  0x26   :  { %3119 = vsyncadd [#allocation15], 4294966256 }
  0x27   :  { %141 = sfence }
  0x28   :  { %v166_v0 = vld [vmem:[#allocation9 + $0x78] sm:$0xff]  ;;  %v165_v1 = vld [vmem:[#allocation9 + $0x70] sm:$0xff]  ;;  %v164_v2 = vld [vmem:[#allocation9 + $0x68] sm:$0xff]  ;;  %s3713_s7 = sld [smem:[#allocation12]]  ;;  %vm875_vm0 = vcmask 523264  }
  0x29   :  { %v3207_v3 = vand.u32 4294901760, %v166_v0  ;;  %v3209_v4 = vand.u32 4294901760, %v165_v1  ;;  %v3211_v5 = vand.u32 4294901760, %v164_v2  ;;  %v163_v6 = vld [vmem:[#allocation9 + $0x60] sm:$0xff]  ;;  %v162_v7 = vld [vmem:[#allocation9 + $0x58] sm:$0xff]  ;;  %v161_v8 = vld [vmem:[#allocation9 + $0x50] sm:$0xff] }
  0x2a   :  { %v3213_v9 = vand.u32 4294901760, %v163_v6  ;;  %v3215_v10 = vand.u32 4294901760, %v162_v7  ;;  %v3217_v11 = vand.u32 4294901760, %v161_v8  ;;  %v160_v12 = vld [vmem:[#allocation9 + $0x48] sm:$0xff]  ;;  %v159_v13 = vld [vmem:[#allocation9 + $0x40] sm:$0xff]  ;;  %v158_v21 = vld [vmem:[#allocation9 + $0x38] sm:$0xff] }
  0x2b   :  { %194 = vmatpush.msra.mxu0 %v3207_v3  ;;  %v3221_v14 = vsub.f32 %v166_v0, %v3207_v3  ;;  %v3224_v15 = vsub.f32 %v165_v1, %v3209_v4  ;;  %390 = vmatpush.msra.mxu3 %v3207_v3  ;;  %v3228_v16 = vsub.f32 %v164_v2, %v3211_v5  ;;  %v3230_v17 = vand.u32 4294901760, %v160_v12  ;;  %v157_v34 = vld [vmem:[#allocation9 + $0x30] sm:$0xff]  ;;  %v156_v35 = vld [vmem:[#allocation9 + $0x28] sm:$0xff]  ;;  %v155_v40 = vld [vmem:[#allocation9 + $0x20] sm:$0xff]  ;;  %s3722_s29 = sld [smem:[#allocation12 + $0x1]] }
  0x2c   :  { %v3233_v18 = vsub.f32 %v163_v6, %v3213_v9  ;;  %v3236_v19 = vsub.f32 %v162_v7, %v3215_v10  ;;  %v3239_v20 = vsub.f32 %v161_v8, %v3217_v11  ;;  %v3246_v25 = vand.u32 4294901760, %v159_v13  ;;  %v154_v48 = vld [vmem:[#allocation9 + $0x18] sm:$0xff]  ;;  %v153_v53 = vld [vmem:[#allocation9 + $0x10] sm:$0xff]  ;;  %v152_v60 = vld [vmem:[#allocation9 + $0x8] sm:$0xff]  ;;  %s3731_s30 = sld [smem:[#allocation12 + $0x2]] }
  0x2d   :  { %337 = vmatpush.msra.mxu2 %v3221_v14  ;;  %196 = vmatpush.msra.mxu0 %v3209_v4  ;;  %v5620_v22 = vand.u32 4294901760, %v3221_v14  ;;  %v5619_v23 = vand.u32 4294901760, %v3224_v15  ;;  %v5618_v24 = vand.u32 4294901760, %v3228_v16  ;;  %v3252_v28 = vsub.f32 %v160_v12, %v3230_v17  ;;  %v182_v55 = vld [vmem:[#allocation10 + $0x78] sm:$0xff]  ;;  %v181_v63 = vld [vmem:[#allocation10 + $0x70] sm:$0xff]  ;;  %v151_v6 = vld [vmem:[#allocation9] sm:$0xff] }
  0x2e   :  { %392 = vmatpush.msra.mxu3 %v3209_v4  ;;  %v5615_v26 = vand.u32 4294901760, %v3233_v18  ;;  %v5614_v27 = vand.u32 4294901760, %v3236_v19  ;;  %v3265_v32 = vand.u32 4294901760, %v158_v21  ;;  %v5612_v33 = vand.u32 4294901760, %v3239_v20  ;;  %s3739_s11 = sld [smem:[#allocation12 + $0x3]] }
  0x2f   :  { %340 = vmatpush.msra.mxu2 %v3224_v15  ;;  %198 = vmatpush.msra.mxu0 %v3211_v5  ;;  %v237_v29 = vsub.f32 %v3221_v14, %v5620_v22  ;;  %v243_v30 = vsub.f32 %v3224_v15, %v5619_v23  ;;  %v249_v31 = vsub.f32 %v3228_v16, %v5618_v24  ;;  %v5611_v44 = vand.u32 4294901760, %v3252_v28  ;;  %s3749_s12 = sld [smem:[#allocation12 + $0x4]] }
  0x30   :  { %394 = vmatpush.msra.mxu3 %v3211_v5  ;;  %v255_v38 = vsub.f32 %v3233_v18, %v5615_v26  ;;  %v3275_v39 = vsub.f32 %v159_v13, %v3246_v25  ;;  %v261_v41 = vsub.f32 %v3236_v19, %v5614_v27  ;;  %v3282_v42 = vsub.f32 %v158_v21, %v3265_v32  ;;  %v180_v13 = vld [vmem:[#allocation10 + $0x68] sm:$0xff]  ;;  %s3759_s14 = sld [smem:[#allocation12 + $0x5]] }
  0x31   :  { %v238_v36 = vand.u32 4294901760, %v237_v29  ;;  %343 = vmatpush.msra.mxu2 %v3228_v16  ;;  %200 = vmatpush.msra.mxu0 %v3213_v9  ;;  %v244_v37 = vand.u32 4294901760, %v243_v30  ;;  %v250_v43 = vand.u32 4294901760, %v249_v31  ;;  %v3286_v45 = vand.u32 4294901760, %v157_v34  ;;  %s3770_s15 = sld [smem:[#allocation12 + $0x6]] }
  0x32   :  { %396 = vmatpush.msra.mxu3 %v3213_v9  ;;  %v3288_v46 = vand.u32 4294901760, %v156_v35  ;;  %v3292_v47 = vand.u32 4294901760, %v155_v40  ;;  %v256_v49 = vand.u32 4294901760, %v255_v38  ;;  %v267_v50 = vsub.f32 %v3239_v20, %v5612_v33  ;;  %v175_v33 = vld [vmem:[#allocation10 + $0x40] sm:$0xff]  ;;  %s3788_s16 = sld [smem:[#allocation12 + $0x8]] }
  0x33   :  { %239 = vmatpush.msra.mxu1 %v238_v36  ;;  %346 = vmatpush.msra.mxu2 %v3233_v18  ;;  %v5610_v51 = vand.u32 4294901760, %v3275_v39  ;;  %v3300_v52 = vsub.f32 %v157_v34, %v3286_v45  ;;  %v5608_v54 = vand.u32 4294901760, %v3282_v42  ;;  %v262_v56 = vand.u32 4294901760, %v261_v41  ;;  %s3792_s3 = sld [smem:[#allocation12 + $0x9]] }
  0x34   :  { %202 = vmatpush.msra.mxu0 %v3215_v10  ;;  %398 = vmatpush.msra.mxu3 %v3215_v10  ;;  %v273_v57 = vsub.f32 %v3252_v28, %v5611_v44  ;;  %v3310_v58 = vsub.f32 %v156_v35, %v3288_v46  ;;  %v3312_v59 = vand.u32 4294901760, %v154_v48  ;;  %v3317_v61 = vsub.f32 %v155_v40, %v3292_v47  ;;  %s3803_s17 = sld [smem:[#allocation12 + $0xa]] }
  0x35   :  { %245 = vmatpush.msra.mxu1 %v244_v37  ;;  %349 = vmatpush.msra.mxu2 %v3236_v19  ;;  %v3319_v62 = vand.u32 4294901760, %v153_v53  ;;  %v268_v0 = vand.u32 4294901760, %v267_v50  ;;  %v279_v1 = vsub.f32 %v3275_v39, %v5610_v51  ;;  %v5607_v2 = vand.u32 4294901760, %v3300_v52  ;;  %v179_v37 = vld [vmem:[#allocation10 + $0x60] sm:$0xff]  ;;  %v178_v50 = vld [vmem:[#allocation10 + $0x58] sm:$0xff]  ;;  %s3807_s20 = sld [smem:[#allocation12 + $0xb]] }
  0x36   :  { %204 = vmatpush.msra.mxu0 %v3217_v11  ;;  %400 = vmatpush.msra.mxu3 %v3217_v11  ;;  %v3326_v7 = vand.u32 4294901760, %v182_v55  ;;  %v285_v8 = vsub.f32 %v3282_v42, %v5608_v54  ;;  %v3333_v12 = vand.u32 4294901760, %v152_v60  ;;  %v274_v21 = vand.u32 4294901760, %v273_v57  ;;  %v176_v54 = vld [vmem:[#allocation10 + $0x48] sm:$0xff]  ;;  %s3820_s21 = sld [smem:[#allocation12 + $0xc]] }
  0x37   :  { %251 = vmatpush.msra.mxu1 %v250_v43  ;;  %352 = vmatpush.msra.mxu2 %v3239_v20  ;;  %v5606_v29 = vand.u32 4294901760, %v3310_v58  ;;  %v3338_v30 = vsub.f32 %v154_v48, %v3312_v59  ;;  %v3340_v31 = vand.u32 4294901760, %v181_v63  ;;  %v5609_v34 = vand.u32 4294901760, %v3317_v61  ;;  %s3824_s5 = sld [smem:[#allocation12 + $0xd]] }
  0x38   :  { %206 = vmatpush.msra.mxu0 %v3230_v17  ;;  %402 = vmatpush.msra.mxu3 %v3230_v17  ;;  %5681 = vst [vmem:[#allocation25_spill] sm:$0xff] %v3333_v12  ;;  %v3346_v35 = vsub.f32 %v153_v53, %v3319_v62  ;;  %v3348_v36 = vand.u32 4294901760, %v151_v6  ;;  %v280_v38 = vand.u32 4294901760, %v279_v1  ;;  %v291_v40 = vsub.f32 %v3300_v52, %v5607_v2  ;;  %s3831_s6 = sld [smem:[#allocation12 + $0xe]] }
  0x39   :  { %257 = vmatpush.msra.mxu1 %v256_v49  ;;  %355 = vmatpush.msra.mxu2 %v3252_v28  ;;  %v3355_v41 = vsub.f32 %v182_v55, %v3326_v7  ;;  %v3357_v43 = vand.u32 4294901760, %v180_v13  ;;  %v286_v48 = vand.u32 4294901760, %v285_v8  ;;  %v3362_v49 = vsub.f32 %v152_v60, %v3333_v12  ;;  %s3835_s8 = sld [smem:[#allocation12 + $0xf]] }
  0x3a   :  { %208 = vmatpush.msra.mxu0 %v3246_v25  ;;  %404 = vmatpush.msra.mxu3 %v3246_v25  ;;  %5682 = vst [vmem:[#allocation26_spill] sm:$0xff] %v3348_v36  ;;  %v297_v53 = vsub.f32 %v3310_v58, %v5606_v29  ;;  %v5613_v55 = vand.u32 4294901760, %v3338_v30  ;;  %v3372_v57 = vand.u32 4294901760, %v179_v37  ;;  %v303_v60 = vsub.f32 %v3317_v61, %v5609_v34  ;;  %s3843_s18 = sld [smem:[#allocation12 + $0x10]] }
  0x3b   :  { %263 = vmatpush.msra.mxu1 %v262_v56  ;;  %358 = vmatpush.msra.mxu2 %v3275_v39  ;;  %v3370_v56 = vsub.f32 %v181_v63, %v3340_v31  ;;  %v5616_v1 = vand.u32 4294901760, %v3346_v35  ;;  %v3381_v8 = vsub.f32 %v151_v6, %v3348_v36  ;;  %v292_v63 = vand.u32 4294901760, %v291_v40  ;;  %s3847_s19 = sld [smem:[#allocation12 + $0x80]] }
  0x3c   :  { %210 = vmatpush.msra.mxu0 %v3265_v32  ;;  %406 = vmatpush.msra.mxu3 %v3265_v32  ;;  %v3386_v29 = vsub.f32 %v180_v13, %v3357_v43  ;;  %v3388_v2 = vand.u32 4294901760, %v178_v50  ;;  %v5622_v34 = vand.u32 4294901760, %v3362_v49  ;;  %v309_v13 = vsub.f32 %v3338_v30, %v5613_v55  ;;  %s3853_s22 = sld [smem:[#allocation12 + $0x81]] }
  0x3d   :  { %269 = vmatpush.msra.mxu1 %v268_v0  ;;  %361 = vmatpush.msra.mxu2 %v3282_v42  ;;  %5683 = vst [vmem:[#allocation27_spill] sm:$0xff] %v3370_v56  ;;  %v177_v0 = vld [vmem:[#allocation10 + $0x50] sm:$0xff]  ;;  %v5621_v40 = vand.u32 4294901760, %v3370_v56  ;;  %v3401_v51 = vsub.f32 %v179_v37, %v3372_v57  ;;  %v5625_v44 = vand.u32 4294901760, %v3381_v8  ;;  %v304_v55 = vand.u32 4294901760, %v303_v60  ;;  %v174_v60 = vld [vmem:[#allocation10 + $0x38] sm:$0xff] }
  0x3e   :  { %212 = vmatpush.msra.mxu0 %v3286_v45  ;;  %408 = vmatpush.msra.mxu3 %v3286_v45  ;;  %5684 = vst [vmem:[#allocation28_spill] sm:$0xff] %v3386_v29  ;;  %v3393_v6 = vand.u32 4294901760, %v177_v0  ;;  %v5626_v27 = vand.u32 4294901760, %v3386_v29  ;;  %v3417_v26 = vsub.f32 %v178_v50, %v3388_v2  ;;  %v3432_v23 = vand.u32 4294901760, %v175_v33  ;;  %s3857_s1 = sld [smem:[#allocation12 + $0x82]] }
  0x3f   :  { %275 = vmatpush.msra.mxu1 %v274_v21  ;;  %364 = vmatpush.msra.mxu2 %v3300_v52  ;;  %v5617_v21 = vand.u32 4294901760, %v3355_v41  ;;  %5685 = vst [vmem:[#allocation29_spill] sm:$0xff] %v3401_v51  ;;  %v584_v50 = vsub.f32 %v3370_v56, %v5621_v40  ;;  %v3447_v24 = vand.u32 4294901760, %v174_v60  ;;  %s3863_s23 = sld [smem:[#allocation12 + $0x83]] }
  0x40   :  { %214 = vmatpush.msra.mxu0 %v3288_v46  ;;  %410 = vmatpush.msra.mxu3 %v3288_v46  ;;  %s3867_s24 = sld [smem:[#allocation12 + $0x84]] }
  0x41   :  { %281 = vmatpush.msra.mxu1 %v280_v38  ;;  %367 = vmatpush.msra.mxu2 %v3310_v58  ;;  %v298_v38 = vand.u32 4294901760, %v297_v53  ;;  %v3409_v53 = vand.u32 4294901760, %v176_v54  ;;  %v578_v37 = vsub.f32 %v3355_v41, %v5617_v21  ;;  %v310_v21 = vand.u32 4294901760, %v309_v13  ;;  %v173_v13 = vld [vmem:[#allocation10 + $0x30] sm:$0xff]  ;;  %s3870_s25 = sld [smem:[#allocation12 + $0x85]] }
  0x42   :  { %216 = vmatpush.msra.mxu0 %v3292_v47  ;;  %412 = vmatpush.msra.mxu3 %v3292_v47  ;;  %s3874_s26 = sld [smem:[#allocation12 + $0x86]] }
  0x43   :  { %287 = vmatpush.msra.mxu1 %v286_v48  ;;  %370 = vmatpush.msra.mxu2 %v3317_v61  ;;  %v315_v48 = vsub.f32 %v3346_v35, %v5616_v1  ;;  %v3425_v1 = vsub.f32 %v177_v0, %v3393_v6  ;;  %v327_v0 = vsub.f32 %v3381_v8, %v5625_v44  ;;  %v579_v40 = vand.u32 4294901760, %v578_v37  ;;  %v172_v44 = vld [vmem:[#allocation10 + $0x28] sm:$0xff]  ;;  %s3877_s27 = sld [smem:[#allocation12 + $0x87]] }
  0x44   :  { %218 = vmatpush.msra.mxu0 %v3312_v59  ;;  %414 = vmatpush.msra.mxu3 %v3312_v59  ;;  %v5686_v37 = vand.u32 4294901760, %v3401_v51  ;;  %s3882_s28 = sld [smem:[#allocation12 + $0x88]] }
  0x45   :  { %293 = vmatpush.msra.mxu1 %v292_v63  ;;  %373 = vmatpush.msra.mxu2 %v3338_v30  ;;  %v321_v63 = vsub.f32 %v3362_v49, %v5622_v34  ;;  %v316_v22 = vand.u32 4294901760, %v315_v48  ;;  %v590_v34 = vsub.f32 %v3386_v29, %v5626_v27  ;;  %v3457_v48 = vsub.f32 %v175_v33, %v3432_v23  ;;  %5719 = sst [smem:[#allocation30_spill]] %s3863_s23 }
  0x46   :  { %220 = vmatpush.msra.mxu0 %v3319_v62  ;;  %416 = vmatpush.msra.mxu3 %v3319_v62  ;;  %v596_v27 = vsub.f32 %v3401_v51, %v5686_v37  ;;  %v3459_v29 = vand.u32 4294901760, %v173_v13  ;;  %v3469_v33 = vsub.f32 %v174_v60, %v3447_v24  ;;  %v3471_v51 = vand.u32 4294901760, %v172_v44  ;;  %5720 = sst [smem:[#allocation31_spill]] %s3867_s24 }
  0x47   :  { %299 = vmatpush.msra.mxu1 %v298_v38  ;;  %376 = vmatpush.msra.mxu2 %v3346_v35  ;;  %v3440_v38 = vsub.f32 %v176_v54, %v3409_v53  ;;  %v322_v56 = vand.u32 4294901760, %v321_v63  ;;  %v5687_v63 = vand.u32 4294901760, %v3221_v14  ;;  %v328_v54 = vand.u32 4294901760, %v327_v0  ;;  %5721 = sst [smem:[#allocation32_spill]] %s3870_s25 }
  0x48   :  { %222 = vmatpush.msra.mxu0 %v3333_v12  ;;  %418 = vmatpush.msra.mxu3 %v3333_v12  ;;  %v5688_v12 = vand.u32 4294901760, %v3417_v26  ;;  %v5689_v14 = vand.u32 4294901760, %v3224_v15  ;;  %v5690_v0 = vand.u32 4294901760, %v3425_v1  ;;  %v3481_v60 = vsub.f32 %v173_v13, %v3459_v29  ;;  %5722 = sst [smem:[#allocation33_spill]] %s3874_s26 }
  0x49   :  { %305 = vmatpush.msra.mxu1 %v304_v55  ;;  %379 = vmatpush.msra.mxu2 %v3362_v49  ;;  %v585_v55 = vand.u32 4294901760, %v584_v50  ;;  %v591_v50 = vand.u32 4294901760, %v590_v34  ;;  %v597_v34 = vand.u32 4294901760, %v596_v27  ;;  %v5691_v15 = vand.u32 4294901760, %v3228_v16  ;;  %5723 = sst [smem:[#allocation34_spill]] %s3877_s27 }
  0x4a   :  { %224 = vmatpush.msra.mxu0 %v3348_v36  ;;  %420 = vmatpush.msra.mxu3 %v3348_v36  ;;  %v171_v36 = vld [vmem:[#allocation10 + $0x20] sm:$0xff]  ;;  %v602_v37 = vsub.f32 %v3417_v26, %v5688_v12  ;;  %v3493_v13 = vsub.f32 %v172_v44, %v3471_v51  ;;  %v5692_v16 = vand.u32 4294901760, %v3233_v18  ;;  %v168_v12 = vld [vmem:[#allocation10 + $0x8] sm:$0xff]  ;;  %5724 = sst [smem:[#allocation35_spill]] %s3882_s28 }
  0x4b   :  { %311 = vmatpush.msra.mxu1 %v310_v21  ;;  %382 = vmatpush.msra.mxu2 %v3381_v8  ;;  %v5633_v21 = vand.u32 4294901760, %v3440_v38  ;;  %s3885_s0 = sld [smem:[#allocation12 + $0x89]] }
  0x4c   :  { %431 = vmatpush.msrb.mxu0 %v5687_v63  ;;  %580 = vmatpush.msrb.mxu3 %v579_v40  ;;  %v170_v40 = vld [vmem:[#allocation10 + $0x18] sm:$0xff]  ;;  %v3483_v63 = vand.u32 4294901760, %v171_v36  ;;  %v603_v27 = vand.u32 4294901760, %v602_v37  ;;  %v631_v37 = vand.u32 4294901760, %v3481_v60  ;;  %s3890_s10 = sld [smem:[#allocation12 + $0x8a]] }
  0x4d   :  { %535 = vmatpush.msrb.mxu2 %v3326_v7  ;;  %317 = vmatpush.msra.mxu1 %v316_v22  ;;  %v608_v22 = vsub.f32 %v3425_v1, %v5690_v0  ;;  %v169_v0 = vld [vmem:[#allocation10 + $0x10] sm:$0xff]  ;;  %s3893_s13 = sld [smem:[#allocation12 + $0x8b]] }
  0x4e   :  { %435 = vmatpush.msrb.mxu0 %v5689_v14  ;;  %586 = vmatpush.msrb.mxu3 %v585_v55  ;;  %v614_v14 = vsub.f32 %v3440_v38, %v5633_v21  ;;  %v3495_v55 = vand.u32 4294901760, %v170_v40  ;;  %v3506_v44 = vsub.f32 %v171_v36, %v3483_v63  ;;  %v3508_v21 = vand.u32 4294901760, %v169_v0  ;;  %s3898_s2 = sld [smem:[#allocation12 + $0x8c]] }
  0x4f   :  { %537 = vmatpush.msrb.mxu2 %v3340_v31  ;;  %323 = vmatpush.msra.mxu1 %v322_v56  ;;  %v625_v56 = vand.u32 4294901760, %v3469_v33  ;;  %s3901_s9 = sld [smem:[#allocation12 + $0x11]] }
  0x50   :  { %439 = vmatpush.msrb.mxu0 %v5691_v15  ;;  %592 = vmatpush.msrb.mxu3 %v591_v50  ;;  %v609_v15 = vand.u32 4294901760, %v608_v22  ;;  %v615_v18 = vand.u32 4294901760, %v614_v14  ;;  %v3519_v36 = vsub.f32 %v170_v40, %v3495_v55  ;;  %v632_v14 = vsub.f32 %v3481_v60, %v631_v37  ;;  %s3923_s28 = sld [smem:[#allocation12 + $0x13]] }
  0x51   :  { %539 = vmatpush.msrb.mxu2 %v3357_v43  ;;  %329 = vmatpush.msra.mxu1 %v328_v54  ;;  %v5693_v54 = vand.u32 4294901760, %v3457_v48  ;;  %v626_v22 = vsub.f32 %v3469_v33, %v625_v56  ;;  %v3532_v40 = vsub.f32 %v169_v0, %v3508_v21  ;;  %5725 = sst [smem:[#allocation36_spill]] %s3885_s0 }
  0x52   :  { %443 = vmatpush.msrb.mxu0 %v5692_v16  ;;  %598 = vmatpush.msrb.mxu3 %v597_v34  ;;  %v637_v34 = vand.u32 4294901760, %v3493_v13  ;;  %v3521_v16 = vand.u32 4294901760, %v168_v12  ;;  %5726 = sst [smem:[#allocation37_spill]] %s3890_s10 }
  0x53   :  { %498 = vmatpush.msrb.mxu1 %v3207_v3  ;;  %541 = vmatpush.msrb.mxu2 %v3372_v57  ;;  %v620_v50 = vsub.f32 %v3457_v48, %v5693_v54  ;;  %v5694_v3 = vand.u32 4294901760, %v3236_v19  ;;  %v191_v54 = vld [vmem:[#allocation2] sm:$0xff]  ;;  %5727 = sst [smem:[#allocation38_spill]] %s3893_s13 }
  0x54   :  { %604 = vmatpush.msrb.mxu3 %v603_v27  ;;  %v643_v27 = vand.u32 4294901760, %v3506_v44  ;;  %v3545_v0 = vsub.f32 %v168_v12, %v3521_v16  ;;  %v5698_v12 = vand.u32 4294901760, %v3282_v42  ;;  %5728 = sst [smem:[#allocation39_spill]] %s3898_s2 }
  0x55   :  { %500 = vmatpush.msrb.mxu1 %v3209_v4  ;;  %447 = vmatpush.msrb.mxu0 %v5694_v3  ;;  %v5695_v4 = vand.u32 4294901760, %v3239_v20  ;;  %v621_v19 = vand.u32 4294901760, %v620_v50  ;;  %v3537_v20 = vand.u32 4294901760, %v191_v54  ;;  %v167_v3 = vld [vmem:[#allocation10] sm:$0xff]  ;;  %v638_v50 = vsub.f32 %v3493_v13, %v637_v34  ;;  %5729 = sst [smem:[#allocation40_spill]] %s3901_s9 }
  0x56   :  { %543 = vmatpush.msrb.mxu2 %v3388_v2  ;;  %610 = vmatpush.msrb.mxu3 %v609_v15  ;;  %v627_v15 = vand.u32 4294901760, %v626_v22  ;;  %v655_v22 = vand.u32 4294901760, %v3532_v40  ;;  %s3906_s10 = sld [smem:[#allocation12 + $0x8d]] }
  0x57   :  { %502 = vmatpush.msrb.mxu1 %v3211_v5  ;;  %451 = vmatpush.msrb.mxu0 %v5695_v4  ;;  %v5696_v5 = vand.u32 4294901760, %v3252_v28  ;;  %v649_v4 = vand.u32 4294901760, %v3519_v36  ;;  %v633_v28 = vand.u32 4294901760, %v632_v14  ;;  %v661_v14 = vand.u32 4294901760, %v3545_v0  ;;  %s3908_s13 = sld [smem:[#allocation12 + $0x8e]] }
  0x58   :  { %545 = vmatpush.msrb.mxu2 %v3393_v6  ;;  %616 = vmatpush.msrb.mxu3 %v615_v18  ;;  %v644_v18 = vsub.f32 %v3506_v44, %v643_v27  ;;  %s3913_s2 = sld [smem:[#allocation12 + $0x12]] }
  0x59   :  { %504 = vmatpush.msrb.mxu1 %v3213_v9  ;;  %455 = vmatpush.msrb.mxu0 %v5696_v5  ;;  %v5697_v9 = vand.u32 4294901760, %v3275_v39  ;;  %v3555_v5 = vand.u32 4294901760, %v167_v3  ;;  %v639_v39 = vand.u32 4294901760, %v638_v50  ;;  %v5700_v50 = vand.u32 4294901760, %v3310_v58  ;;  %s3916_s0 = sld [smem:[#allocation12 + $0x8f]] }
  0x5a   :  { %547 = vmatpush.msrb.mxu2 %v3409_v53  ;;  %622 = vmatpush.msrb.mxu3 %v621_v19  ;;  %v650_v19 = vsub.f32 %v3519_v36, %v649_v4  ;;  %v645_v42 = vand.u32 4294901760, %v644_v18  ;;  %5735 = sst [smem:[#allocation46_spill]] %s3923_s28 }
  0x5b   :  { %506 = vmatpush.msrb.mxu1 %v3215_v10  ;;  %459 = vmatpush.msrb.mxu0 %v5697_v9  ;;  %v3561_v10 = vsub.f32 %v191_v54, %v3537_v20  ;;  %v656_v54 = vsub.f32 %v3532_v40, %v655_v22  ;;  %v662_v9 = vsub.f32 %v3545_v0, %v661_v14  ;;  %s3941_s28 = sld [smem:[#allocation13]] }
  0x5c   :  { %549 = vmatpush.msrb.mxu2 %v3432_v23  ;;  %628 = vmatpush.msrb.mxu3 %v627_v15  ;;  %v3576_v15 = vsub.f32 %v167_v3, %v3555_v5  ;;  %v5701_v3 = vand.u32 4294901760, %v3317_v61  ;;  %v5703_v61 = vand.u32 4294901760, %v3346_v35  ;;  %5730 = sst [smem:[#allocation41_spill]] %s3906_s10 }
  0x5d   :  { %508 = vmatpush.msrb.mxu1 %v3217_v11  ;;  %463 = vmatpush.msrb.mxu0 %v5698_v12  ;;  %v5699_v11 = vand.u32 4294901760, %v3300_v52  ;;  %v651_v52 = vand.u32 4294901760, %v650_v19  ;;  %v5713_v19 = vld [vmem:[#allocation29_spill] sm:$0xff]  ;;  %5731 = sst [smem:[#allocation42_spill]] %s3908_s13 }
  0x5e   :  { %551 = vmatpush.msrb.mxu2 %v3447_v24  ;;  %634 = vmatpush.msrb.mxu3 %v633_v28  ;;  %v667_v58 = vand.u32 4294901760, %v3576_v15  ;;  %v5702_v28 = vand.u32 4294901760, %v3338_v30  ;;  %v5704_v30 = vand.u32 4294901760, %v3362_v49  ;;  %v5708_v49 = vld [vmem:[#allocation27_spill] sm:$0xff]  ;;  %5732 = sst [smem:[#allocation43_spill]] %s3913_s2 }
  0x5f   :  { %510 = vmatpush.msrb.mxu1 %v3230_v17  ;;  %467 = vmatpush.msrb.mxu0 %v5699_v11  ;;  %v3582_v17 = vand.u32 4294901760, %v3561_v10  ;;  %v5714_v11 = vand.u32 4294901760, %v5713_v19  ;;  %5733 = sst [smem:[#allocation44_spill]] %s3916_s0 }
  0x60   :  { %553 = vmatpush.msrb.mxu2 %v3459_v29  ;;  %640 = vmatpush.msrb.mxu3 %v639_v39  ;;  %v5711_v39 = vld [vmem:[#allocation28_spill] sm:$0xff]  ;;  %s3921_s10 = sld [smem:[#allocation12 + $0x90]] }
  0x61   :  { %512 = vmatpush.msrb.mxu1 %v3246_v25  ;;  %471 = vmatpush.msrb.mxu0 %v5700_v50  ;;  %v657_v25 = vand.u32 4294901760, %v656_v54  ;;  %v228_v18 = vsub.f32 %v3561_v10, %v3582_v17  ;;  %s3928_s13 = sld [smem:[#allocation12 + $0x100]] }
  0x62   :  { %555 = vmatpush.msrb.mxu2 %v3471_v51  ;;  %646 = vmatpush.msrb.mxu3 %v645_v42  ;;  %s3930_s2 = sld [smem:[#allocation12 + $0x101]] }
  0x63   :  { %514 = vmatpush.msrb.mxu1 %v3265_v32  ;;  %475 = vmatpush.msrb.mxu0 %v5701_v3  ;;  %v663_v32 = vand.u32 4294901760, %v662_v9  ;;  %v3609_v12 = vand.u32 4294901760, %v228_v18  ;;  %s3935_s0 = sld [smem:[#allocation12 + $0x102]] }
  0x64   :  { %557 = vmatpush.msrb.mxu2 %v3483_v63  ;;  %652 = vmatpush.msrb.mxu3 %v651_v52  ;;  %5740 = sst [smem:[#allocation51_spill]] %s3941_s28 }
  0x65   :  { %516 = vmatpush.msrb.mxu1 %v3286_v45  ;;  %479 = vmatpush.msrb.mxu0 %v5702_v28  ;;  %v668_v45 = vsub.f32 %v3576_v15, %v667_v58  ;;  %s3943_s9 = sld [smem:[#allocation16]] }
  0x66   :  { %559 = vmatpush.msrb.mxu2 %v3495_v55  ;;  %658 = vmatpush.msrb.mxu3 %v657_v25  ;;  %5734 = sst [smem:[#allocation45_spill]] %s3921_s10 }
  0x67   :  { %518 = vmatpush.msrb.mxu1 %v3288_v46  ;;  %483 = vmatpush.msrb.mxu0 %v5703_v61  ;;  %v5705_v46 = vand.u32 4294901760, %v3381_v8  ;;  %v669_v35 = vand.u32 4294901760, %v668_v45  ;;  %v5709_v8 = vand.u32 4294901760, %v5708_v49  ;;  %5736 = sst [smem:[#allocation47_spill]] %s3928_s13 }
  0x68   :  { %561 = vmatpush.msrb.mxu2 %v3508_v21  ;;  %664 = vmatpush.msrb.mxu3 %v663_v32  ;;  %5737 = sst [smem:[#allocation48_spill]] %s3930_s2 }
  0x69   :  { %520 = vmatpush.msrb.mxu1 %v3292_v47  ;;  %487 = vmatpush.msrb.mxu0 %v5704_v30  ;;  %v5706_v47 = vand.u32 4294901760, %v3355_v41  ;;  %5738 = sst [smem:[#allocation49_spill]] %s3935_s0 }
  0x6a   :  { %563 = vmatpush.msrb.mxu2 %v3521_v16  ;;  %230 = vmatmul.f32.vlgmr.msra.gmra.mxu0 %v3609_v12  ;;  %s3938_s10 = sld [smem:[#allocation12 + $0x103]] }
  0x6b   :  { %522 = vmatpush.msrb.mxu1 %v3312_v59  ;;  %385 = vmatmul.f32.vlgmr.msra.gmra.mxu2 %v3561_v10  ;;  %v5707_v59 = vld [vmem:[#allocation25_spill] sm:$0xff]  ;;  %5741 = sst [smem:[#allocation52_spill]] %s3943_s9 }
  0x6c   :  { %491 = vmatpush.msrb.mxu0 %v5705_v46  ;;  %565 = vmatpush.msrb.mxu2 %v3555_v5  ;;  %s3946_s2 = sld [smem:[#allocation16 + $0x1]] }
  0x6d   :  { %524 = vmatpush.msrb.mxu1 %v3319_v62  ;;  %424 = vmatmul.f32.vlgmr.msra.gmra.mxu3 %v3582_v17  ;;  %v5710_v62 = vld [vmem:[#allocation26_spill] sm:$0xff]  ;;  %s3949_s13 = sld [smem:[#allocation14]] }
  0x6e   :  { %678 = vmatpush.msra.mxu0 %v3355_v41  ;;  %772 = vmatpush.msra.mxu2 %v5706_v47  ;;  %v5712_v41 = vand.u32 4294901760, %v5711_v39  ;;  %s3951_s27 = sld [smem:[#allocation14 + $0x1]] }
  0x6f   :  { %526 = vmatpush.msrb.mxu1 %v5707_v59  ;;  %670 = vmatpush.msrb.mxu3 %v669_v35  ;;  %s3953_s0 = sld [smem:[#allocation13 + $0x1]] }
  0x70   :  { %331 = vmatmul.f32.vlgmr.msra.gmra.mxu1 %v3537_v20  ;;  %681 = vmatpush.msra.mxu0 %v5708_v49  ;;  %5739 = sst [smem:[#allocation50_spill]] %s3938_s10 }
  0x71   :  { %776 = vmatpush.msra.mxu2 %v5709_v8  ;;  %839 = vmatpush.msra.mxu3 %v3326_v7  ;;  %s3955_s26 = sld [smem:[#allocation14 + $0x80]] }
  0x72   :  { %528 = vmatpush.msrb.mxu1 %v5710_v62  ;;  %684 = vmatpush.msra.mxu0 %v5711_v39  ;;  %5742 = sst [smem:[#allocation53_spill]] %s3946_s2 }
  0x73   :  { %780 = vmatpush.msra.mxu2 %v5712_v41  ;;  %841 = vmatpush.msra.mxu3 %v3340_v31  ;;  %5743 = sst [smem:[#allocation54_spill]] %s3949_s13 }
  0x74   :  { %731 = vmatpush.msra.mxu1 %v3326_v7  ;;  %687 = vmatpush.msra.mxu0 %v5713_v19  ;;  %v5715_v7 = vand.u32 4294901760, %v3417_v26  ;;  %5744 = sst [smem:[#allocation55_spill]] %s3951_s27 }
  0x75   :  { %784 = vmatpush.msra.mxu2 %v5714_v11  ;;  %843 = vmatpush.msra.mxu3 %v3357_v43  ;;  %5745 = sst [smem:[#allocation56_spill]] %s3953_s0 }
  0x76   :  { %733 = vmatpush.msra.mxu1 %v3340_v31  ;;  %493 = vmatmul.f32.vlgmr.msrb.gmra.mxu0 %v3537_v20  ;;  %v5716_v31 = vand.u32 4294901760, %v3425_v1  ;;  %s3957_s10 = sld [smem:[#allocation14 + $0x81]] }
  0x77   :  { %690 = vmatpush.msra.mxu0 %v3417_v26  ;;  %788 = vmatpush.msra.mxu2 %v5715_v7  ;;  %v5717_v26 = vand.u32 4294901760, %v3440_v38  ;;  %5746 = sst [smem:[#allocation57_spill]] %s3955_s26 }
  0x78   :  { %735 = vmatpush.msra.mxu1 %v3357_v43  ;;  %845 = vmatpush.msra.mxu3 %v3372_v57  ;;  %v190_v43 = vld [vmem:[%s5600_s4 + $0x38] sm:$0xff]  ;;  %s3959_s25 = sld [smem:[#allocation13 + $0x2]] }
  0x79   :  { %530 = vmatmul.f32.vlgmr.msrb.gmra.mxu1 %v3537_v20  ;;  %693 = vmatpush.msra.mxu0 %v3425_v1  ;;  %v3673_v1 = vand.u32 4294901760, %v190_v43  ;;  %s3961_s28 = sld [smem:[#allocation14 + $0x100]] }
  0x7a   :  { %737 = vmatpush.msra.mxu1 %v3372_v57  ;;  %792 = vmatpush.msra.mxu2 %v5716_v31  ;;  %v5718_v57 = vand.u32 4294901760, %v3457_v48  ;;  %s3963_s9 = sld [smem:[#allocation14 + $0x101]] }
  0x7b   :  { %847 = vmatpush.msra.mxu3 %v3388_v2  ;;  %696 = vmatpush.msra.mxu0 %v3440_v38  ;;  %v187_v38 = vld [vmem:[%s5600_s4 + $0x20] sm:$0xff]  ;;  %s3965_s24 = sld [smem:[#allocation13 + $0x3]] }
  0x7c   :  { %739 = vmatpush.msra.mxu1 %v3388_v2  ;;  %796 = vmatpush.msra.mxu2 %v5717_v26  ;;  %v189_v2 = vld [vmem:[%s5600_s4 + $0x30] sm:$0xff]  ;;  %5747 = sst [smem:[#allocation58_spill]] %s3957_s10 }
  0x7d   :  { %849 = vmatpush.msra.mxu3 %v3393_v6  ;;  %699 = vmatpush.msra.mxu0 %v3457_v48  ;;  %s3967_s2 = sld [smem:[#allocation14 + $0x180]] }
  0x7e   :  { %741 = vmatpush.msra.mxu1 %v3393_v6  ;;  %800 = vmatpush.msra.mxu2 %v5718_v57  ;;  %v3680_v6 = vand.u32 4294901760, %v189_v2  ;;  %5748 = sst [smem:[#allocation59_spill]] %s3959_s25 }
  0x7f   :  { %851 = vmatpush.msra.mxu3 %v3409_v53  ;;  %702 = vmatpush.msra.mxu0 %v3469_v33  ;;  %v186_v33 = vld [vmem:[%s5600_s4 + $0x18] sm:$0xff]  ;;  %5749 = sst [smem:[#allocation60_spill]] %s3961_s28 }
  0x80   :  { %743 = vmatpush.msra.mxu1 %v3409_v53  ;;  %804 = vmatpush.msra.mxu2 %v625_v56  ;;  %v188_v53 = vld [vmem:[%s5600_s4 + $0x28] sm:$0xff]  ;;  %v185_v56 = vld [vmem:[%s5600_s4 + $0x10] sm:$0xff]  ;;  %5750 = sst [smem:[#allocation61_spill]] %s3963_s9 }
  0x81   :  { %853 = vmatpush.msra.mxu3 %v3432_v23  ;;  %705 = vmatpush.msra.mxu0 %v3481_v60  ;;  %v3698_v48 = vand.u32 4294901760, %v188_v53  ;;  %v3711_v60 = vand.u32 4294901760, %v187_v38  ;;  %5751 = sst [smem:[#allocation62_spill]] %s3965_s24 }
  0x82   :  { %745 = vmatpush.msra.mxu1 %v3432_v23  ;;  %808 = vmatpush.msra.mxu2 %v631_v37  ;;  %v3691_v23 = vsub.f32 %v190_v43, %v3673_v1  ;;  %s3969_s23 = sld [smem:[#allocation14 + $0x181]] }
  0x83   :  { %855 = vmatpush.msra.mxu3 %v3447_v24  ;;  %708 = vmatpush.msra.mxu0 %v3493_v13  ;;  %v3726_v13 = vand.u32 4294901760, %v186_v33  ;;  %v3729_v37 = vsub.f32 %v188_v53, %v3698_v48  ;;  %5752 = sst [smem:[#allocation63_spill]] %s3967_s2  ;;  %v1161_v53 = vstv %s3731_s30 }
  0x84   :  { %747 = vmatpush.msra.mxu1 %v3447_v24  ;;  %812 = vmatpush.msra.mxu2 %v637_v34  ;;  %v3704_v24 = vsub.f32 %v189_v2, %v3680_v6  ;;  %v3744_v34 = vand.u32 4294901760, %v185_v56  ;;  %s3971_s13 = sld [smem:[#allocation12 + $0x104]]  ;;  %v1117_v2 = vstv %s3713_s7 }
  0x85   :  { %857 = vmatpush.msra.mxu3 %v3459_v29  ;;  %711 = vmatpush.msra.mxu0 %v3506_v44  ;;  %v184_v44 = vld [vmem:[%s5600_s4 + $0x8] sm:$0xff]  ;;  %s3973_s27 = sld [smem:[#allocation13 + $0x4]] }
  0x86   :  { %749 = vmatpush.msra.mxu1 %v3459_v29  ;;  %816 = vmatpush.msra.mxu2 %v643_v27  ;;  %v922_v29 = vand.u32 4294901760, %v3691_v23  ;;  %v183_v27 = vld [vmem:[%s5600_s4] sm:$0xff]  ;;  %s3777_s4 = sld [smem:[#allocation12 + $0x7]]  ;;  %v3786_v54 = vsub.f32 %v185_v56, %v3744_v34  ;;  %v1337_v56 = vstv %s3803_s17 }
  0x87   :  { %859 = vmatpush.msra.mxu3 %v3471_v51  ;;  %571 = vmatmul.f32.vlgmr.msrb.gmra.mxu2 %v3609_v12  ;;  %v3783_v42 = vand.u32 4294901760, %v183_v27  ;;  %s3975_s0 = sld [smem:[#allocation14 + $0x200]] }
  0x88   :  { %714 = vmatpush.msra.mxu0 %v3519_v36  ;;  %751 = vmatpush.msra.mxu1 %v3471_v51  ;;  %v928_v51 = vand.u32 4294901760, %v3704_v24  ;;  %v3747_v36 = vsub.f32 %v187_v38, %v3711_v60  ;;  %v952_v25 = vand.u32 4294901760, %v3786_v54  ;;  %5753 = sst [smem:[#allocation64_spill]] %s3969_s23  ;;  %v1205_v38 = vstv %s3749_s12 }
  0x89   :  { %820 = vmatpush.msra.mxu2 %v649_v4  ;;  %861 = vmatpush.msra.mxu3 %v3483_v63  ;;  %v3765_v4 = vand.u32 4294901760, %v184_v44  ;;  %s3977_s26 = sld [smem:[#allocation14 + $0x201]] }
  0x8a   :  { %717 = vmatpush.msra.mxu0 %v3532_v40  ;;  %672 = vmatmul.f32.vlgmr.msrb.gmra.mxu3 %v3537_v20  ;;  %v934_v40 = vand.u32 4294901760, %v3729_v37  ;;  %v953_v18 = vsub.f32 %v3786_v54, %v952_v25  ;;  %5754 = sst [smem:[#allocation65_spill]] %s3971_s13 }
  0x8b   :  { %753 = vmatpush.msra.mxu1 %v3483_v63  ;;  %824 = vmatpush.msra.mxu2 %v655_v22  ;;  %v923_v63 = vsub.f32 %v3691_v23, %v922_v29  ;;  %v192_v22 = vld [vmem:[#allocation7] sm:$0xff]  ;;  %v3801_v9 = vsub.f32 %v184_v44, %v3765_v4  ;;  %5755 = sst [smem:[#allocation66_spill]] %s3973_s27  ;;  %v1425_v44 = vstv %s3831_s6 }
  0x8c   :  { %863 = vmatpush.msra.mxu3 %v3495_v55  ;;  %720 = vmatpush.msra.mxu0 %v3545_v0  ;;  %v929_v0 = vsub.f32 %v3704_v24, %v928_v51  ;;  %v935_v50 = vsub.f32 %v3729_v37, %v934_v40  ;;  %v954_v12 = vand.u32 4294901760, %v953_v18  ;;  %s3979_s10 = sld [smem:[#allocation12 + $0x105]] }
  0x8d   :  { %755 = vmatpush.msra.mxu1 %v3495_v55  ;;  %828 = vmatpush.msra.mxu2 %v661_v14  ;;  %v3768_v55 = vsub.f32 %v186_v33, %v3726_v13  ;;  %v940_v14 = vand.u32 4294901760, %v3747_v36  ;;  %5756 = sst [smem:[#allocation67_spill]] %s3975_s0  ;;  %v1271_v33 = vstv %s3777_s4 }
  0x8e   :  { %865 = vmatpush.msra.mxu3 %v3508_v21  ;;  %723 = vmatpush.msra.mxu0 %v3576_v15  ;;  %v924_v15 = vand.u32 4294901760, %v923_v63  ;;  %v930_v3 = vand.u32 4294901760, %v929_v0  ;;  %s3981_s25 = sld [smem:[#allocation13 + $0x5]]  ;;  %v1164_v0 = vstv %s3857_s1 }
  0x8f   :  { %757 = vmatpush.msra.mxu1 %v3508_v21  ;;  %832 = vmatpush.msra.mxu2 %v667_v58  ;;  %v877_v21 = vsel %vm875_vm0, %v192_v22, 0  ;;  %v946_v52 = vand.u32 4294901760, %v3768_v55  ;;  %v3816_v58 = vsub.f32 %v183_v27, %v3783_v42  ;;  %5757 = sst [smem:[#allocation68_spill]] %s3977_s26 }
  0x90   :  { %867 = vmatpush.msra.mxu3 %v3521_v16  ;;  %834 = vmatmul.f32.vlgmr.msra.gmra.mxu2 %v3537_v20  ;;  %v3818_v28 = vand.u32 4294901760, %v877_v21  ;;  %s3983_s28 = sld [smem:[#allocation14 + $0x280]] }
  0x91   :  { %888 = vmatpush.msrb.mxu0 %v3673_v1  ;;  %759 = vmatpush.msra.mxu1 %v3521_v16  ;;  %v941_v16 = vsub.f32 %v3747_v36, %v940_v14  ;;  %v964_v32 = vand.u32 4294901760, %v3816_v58  ;;  %s3985_s9 = sld [smem:[#allocation14 + $0x281]] }
  0x92   :  { %869 = vmatpush.msra.mxu3 %v3555_v5  ;;  %726 = vmatmul.f32.vlgmr.msra.gmra.mxu0 %v3561_v10  ;;  %v958_v10 = vand.u32 4294901760, %v3801_v9  ;;  %v904_v61 = vsub.f32 %v877_v21, %v3818_v28  ;;  %5758 = sst [smem:[#allocation69_spill]] %s3979_s10 }
  0x93   :  { %871 = vmatmul.f32.vlgmr.msra.gmra.mxu3 %v3537_v20  ;;  %890 = vmatpush.msrb.mxu0 %v3680_v6  ;;  %v936_v20 = vand.u32 4294901760, %v935_v50  ;;  %v965_v46 = vsub.f32 %v3816_v58, %v964_v32  ;;  %s3987_s24 = sld [smem:[#allocation12 + $0x106]] }
  0x94   :  { %761 = vmatpush.msra.mxu1 %v3555_v5  ;;  %983 = vmatpush.msrb.mxu2 %v3691_v23  ;;  %v947_v5 = vsub.f32 %v3768_v55, %v946_v52  ;;  %v959_v30 = vsub.f32 %v3801_v9, %v958_v10  ;;  %v905_v35 = vand.u32 4294901760, %v904_v61  ;;  %5759 = sst [smem:[#allocation70_spill]] %s3981_s25  ;;  %v1183_v23 = vstv %s3739_s11 }
  0x95   :  { %765 = vmatmul.f32.vlgmr.msra.gmra.mxu1 %v3582_v17  ;;  %892 = vmatpush.msrb.mxu0 %v3698_v48  ;;  %v942_v17 = vand.u32 4294901760, %v941_v16  ;;  %v966_v59 = vand.u32 4294901760, %v965_v46  ;;  %s3989_s2 = sld [smem:[#allocation13 + $0x6]] }
  0x96   :  { %925 = vmatpush.msrb.mxu1 %v924_v15  ;;  %986 = vmatpush.msrb.mxu2 %v3704_v24  ;;  %v948_v45 = vand.u32 4294901760, %v947_v5  ;;  %v960_v47 = vand.u32 4294901760, %v959_v30  ;;  %v906_v49 = vsub.f32 %v904_v61, %v905_v35  ;;  %5760 = sst [smem:[#allocation71_spill]] %s3983_s28  ;;  %v1249_v24 = vstv %s3770_s15 }
  0x97   :  { %1020 = vmatpush.msrb.mxu3 %v3673_v1  ;;  %894 = vmatpush.msrb.mxu0 %v3711_v60  ;;  %5761 = sst [smem:[#allocation72_spill]] %s3985_s9 }
  0x98   :  { %931 = vmatpush.msrb.mxu1 %v930_v3  ;;  %989 = vmatpush.msrb.mxu2 %v3729_v37  ;;  %v907_v8 = vand.u32 4294901760, %v906_v49  ;;  %s3991_s23 = sld [smem:[#allocation14 + $0x300]]  ;;  %v1381_v37 = vstv %s3820_s21 }
  0x99   :  { %1022 = vmatpush.msrb.mxu3 %v3680_v6  ;;  %896 = vmatpush.msrb.mxu0 %v3726_v13  ;;  %5762 = sst [smem:[#allocation73_spill]] %s3987_s24 }
  0x9a   :  { %937 = vmatpush.msrb.mxu1 %v936_v20  ;;  %992 = vmatpush.msrb.mxu2 %v3747_v36  ;;  %s3993_s13 = sld [smem:[#allocation14 + $0x301]]  ;;  %v1469_v36 = vstv %s3843_s18 }
  0x9b   :  { %1024 = vmatpush.msrb.mxu3 %v3698_v48  ;;  %898 = vmatpush.msrb.mxu0 %v3744_v34  ;;  %5763 = sst [smem:[#allocation74_spill]] %s3989_s2 }
  0x9c   :  { %943 = vmatpush.msrb.mxu1 %v942_v17  ;;  %995 = vmatpush.msrb.mxu2 %v3768_v55  ;;  %s3995_s27 = sld [smem:[#allocation12 + $0x107]]  ;;  %v1142_v55 = vstv %s3853_s22 }
  0x9d   :  { %1026 = vmatpush.msrb.mxu3 %v3711_v60  ;;  %900 = vmatpush.msrb.mxu0 %v3765_v4  ;;  %s3997_s0 = sld [smem:[#allocation13 + $0x7]] }
  0x9e   :  { %949 = vmatpush.msrb.mxu1 %v948_v45  ;;  %998 = vmatpush.msrb.mxu2 %v3786_v54  ;;  %5764 = sst [smem:[#allocation75_spill]] %s3991_s23 }
  0x9f   :  { %1028 = vmatpush.msrb.mxu3 %v3726_v13  ;;  %902 = vmatpush.msrb.mxu0 %v3783_v42  ;;  %s3999_s26 = sld [smem:[#allocation14 + $0x380]] }
  0xa0   :  { %955 = vmatpush.msrb.mxu1 %v954_v12  ;;  %1001 = vmatpush.msrb.mxu2 %v3801_v9  ;;  %5765 = sst [smem:[#allocation76_spill]] %s3993_s13 }
  0xa1   :  { %1053 = vmatpush.msra.mxu0 %v922_v29  ;;  %1030 = vmatpush.msrb.mxu3 %v3744_v34  ;;  %s4001_s10 = sld [smem:[#allocation14 + $0x381]]  ;;  %v1315_v29 = vstv %s3792_s3 }
  0xa2   :  { %961 = vmatpush.msrb.mxu1 %v960_v47  ;;  %1004 = vmatpush.msrb.mxu2 %v3816_v58  ;;  %5766 = sst [smem:[#allocation77_spill]] %s3995_s27  ;;  %v142_v47 = vlaneseq }
  0xa3   :  { %1057 = vmatpush.msra.mxu0 %v928_v51  ;;  %1032 = vmatpush.msrb.mxu3 %v3765_v4  ;;  %5767 = sst [smem:[#allocation78_spill]] %s3997_s0  ;;  %v1403_v51 = vstv %s3824_s5 }
  0xa4   :  { %967 = vmatpush.msrb.mxu1 %v966_v59  ;;  %1007 = vmatmul.f32.vlgmr.msrb.gmra.mxu2 %v904_v61  ;;  %s4003_s25 = sld [smem:[#allocation12 + $0x108]] }
  0xa5   :  { %1061 = vmatpush.msra.mxu0 %v934_v40  ;;  %1034 = vmatpush.msrb.mxu3 %v3783_v42  ;;  %5768 = sst [smem:[#allocation79_spill]] %s3999_s26  ;;  %v1120_v40 = vstv %s3847_s19 }
  0xa6   :  { %1096 = vmatpush.msra.mxu1 %v3673_v1  ;;  %908 = vmatmul.f32.vlgmr.msrb.gmra.mxu0 %v907_v8  ;;  %s4005_s28 = sld [smem:[#allocation13 + $0x8]]  ;;  %v1139_v1 = vstv %s3722_s29 }
  0xa7   :  { %1065 = vmatpush.msra.mxu0 %v940_v14  ;;  %1038 = vmatmul.f32.vlgmr.msrb.gmra.mxu3 %v905_v35  ;;  %5769 = sst [smem:[#allocation80_spill]] %s4001_s10 }
  0xa8   :  { %1098 = vmatpush.msra.mxu1 %v3680_v6  ;;  %s4007_s9 = sld [smem:[#allocation14 + $0x400]] }
  0xa9   :  { %1069 = vmatpush.msra.mxu0 %v946_v52  ;;  %969 = vmatmul.f32.vlgmr.msrb.gmra.mxu1 %v3818_v28  ;;  %s4009_s24 = sld [smem:[#allocation14 + $0x401]] }
  0xaa   :  { %1100 = vmatpush.msra.mxu1 %v3698_v48  ;;  %5770 = sst [smem:[#allocation81_spill]] %s4003_s25  ;;  %v1227_v48 = vstv %s3759_s14 }
  0xab   :  { %1073 = vmatpush.msra.mxu0 %v952_v25  ;;  %s4011_s2 = sld [smem:[#allocation12 + $0x109]] }
  0xac   :  { %1102 = vmatpush.msra.mxu1 %v3711_v60  ;;  %5771 = sst [smem:[#allocation82_spill]] %s4005_s28  ;;  %v1293_v60 = vstv %s3788_s16 }
  0xad   :  { %1077 = vmatpush.msra.mxu0 %v958_v10  ;;  %s4013_s23 = sld [smem:[#allocation13 + $0x9]] }
  0xae   :  { %1104 = vmatpush.msra.mxu1 %v3726_v13  ;;  %5772 = sst [smem:[#allocation83_spill]] %s4007_s9  ;;  %v1359_v13 = vstv %s3807_s20 }
  0xaf   :  { %1081 = vmatpush.msra.mxu0 %v964_v32  ;;  %5773 = sst [smem:[#allocation84_spill]] %s4009_s24 }
  0xb0   :  { %1106 = vmatpush.msra.mxu1 %v3744_v34  ;;  %1083 = vmatmul.f32.vlgmr.msra.gmra.mxu0 %v3818_v28  ;;  %s4015_s13 = sld [smem:[#allocation14 + $0x480]]  ;;  %v1447_v34 = vstv %s3835_s8 }
  0xb1   :  { %5774 = sst [smem:[#allocation85_spill]] %s4011_s2 }
  0xb2   :  { %1108 = vmatpush.msra.mxu1 %v3765_v4  ;;  %s4017_s27 = sld [smem:[#allocation14 + $0x481]] }
  0xb3   :  { %5775 = sst [smem:[#allocation86_spill]] %s4013_s23 }
  0xb4   :  { %1110 = vmatpush.msra.mxu1 %v3783_v42  ;;  %s4019_s0 = sld [smem:[#allocation12 + $0x10a]] }
  0xb5   :  { %1112 = vmatmul.f32.vlgmr.msra.gmra.mxu1 %v3818_v28  ;;  %s4021_s26 = sld [smem:[#allocation13 + $0xa]] }
  0xb6   :  { %5776 = sst [smem:[#allocation87_spill]] %s4015_s13 }
  0xb7   :  { %s4023_s10 = sld [smem:[#allocation14 + $0x500]] }
  0xb8   :  { %5777 = sst [smem:[#allocation88_spill]] %s4017_s27 }
  0xb9   :  { %s4025_s25 = sld [smem:[#allocation14 + $0x501]] }
  0xba   :  { %5778 = sst [smem:[#allocation89_spill]] %s4019_s0 }
  0xbb   :  { %5779 = sst [smem:[#allocation90_spill]] %s4021_s26 }
  0xbc   :  { %s4027_s28 = sld [smem:[#allocation12 + $0x10b]] }
  0xbd   :  { %5780 = sst [smem:[#allocation91_spill]] %s4023_s10 }
  0xbe   :  { %s4029_s9 = sld [smem:[#allocation13 + $0xb]] }
  0xbf   :  { %5781 = sst [smem:[#allocation92_spill]] %s4025_s25 }
  0xc0   :  { %s4031_s24 = sld [smem:[#allocation14 + $0x580]] }
  0xc1   :  { %s4033_s2 = sld [smem:[#allocation14 + $0x581]] }
  0xc2   :  { %5782 = sst [smem:[#allocation93_spill]] %s4027_s28 }
  0xc3   :  { %s4035_s23 = sld [smem:[#allocation12 + $0x10c]] }
  0xc4   :  { %5783 = sst [smem:[#allocation94_spill]] %s4029_s9 }
  0xc5   :  { %s4037_s13 = sld [smem:[#allocation13 + $0xc]] }
  0xc6   :  { %5784 = sst [smem:[#allocation95_spill]] %s4031_s24 }
  0xc7   :  { %5785 = sst [smem:[#allocation96_spill]] %s4033_s2 }
  0xc8   :  { %s4039_s27 = sld [smem:[#allocation14 + $0x600]] }
  0xc9   :  { %5786 = sst [smem:[#allocation97_spill]] %s4035_s23 }
  0xca   :  { %s4041_s0 = sld [smem:[#allocation14 + $0x601]] }
  0xcb   :  { %5787 = sst [smem:[#allocation98_spill]] %s4037_s13 }
  0xcc   :  { %s4043_s26 = sld [smem:[#allocation12 + $0x10d]] }
  0xcd   :  { %s4045_s10 = sld [smem:[#allocation13 + $0xd]] }
  0xce   :  { %5788 = sst [smem:[#allocation99_spill]] %s4039_s27 }
  0xcf   :  { %s4047_s25 = sld [smem:[#allocation14 + $0x680]] }
  0xd0   :  { %5789 = sst [smem:[#allocation100_spill]] %s4041_s0 }
  0xd1   :  { %s4049_s28 = sld [smem:[#allocation14 + $0x681]] }
  0xd2   :  { %5790 = sst [smem:[#allocation101_spill]] %s4043_s26 }
  0xd3   :  { %5791 = sst [smem:[#allocation102_spill]] %s4045_s10 }
  0xd4   :  { %s4051_s9 = sld [smem:[#allocation12 + $0x10e]] }
  0xd5   :  { %5792 = sst [smem:[#allocation103_spill]] %s4047_s25 }
  0xd6   :  { %s4053_s24 = sld [smem:[#allocation13 + $0xe]] }
  0xd7   :  { %5793 = sst [smem:[#allocation104_spill]] %s4049_s28 }
  0xd8   :  { %s4055_s2 = sld [smem:[#allocation14 + $0x700]] }
  0xd9   :  { %s4057_s23 = sld [smem:[#allocation14 + $0x701]] }
  0xda   :  { %5794 = sst [smem:[#allocation105_spill]] %s4051_s9 }
  0xdb   :  { %s4059_s13 = sld [smem:[#allocation12 + $0x10f]] }
  0xdc   :  { %5795 = sst [smem:[#allocation106_spill]] %s4053_s24 }
  0xdd   :  { %s4061_s27 = sld [smem:[#allocation13 + $0xf]] }
  0xde   :  { %5796 = sst [smem:[#allocation107_spill]] %s4055_s2 }
  0xdf   :  { %5797 = sst [smem:[#allocation108_spill]] %s4057_s23 }
  0xe0   :  { %s4063_s0 = sld [smem:[#allocation14 + $0x780]] }
  0xe1   :  { %5798 = sst [smem:[#allocation109_spill]] %s4059_s13 }
  0xe2   :  { %s4065_s26 = sld [smem:[#allocation14 + $0x781]] }
  0xe3   :  { %5799 = sst [smem:[#allocation110_spill]] %s4061_s27 }
  0xe4   :  { %s4067_s10 = sld [smem:[#allocation12 + $0x110]] }
  0xe5   :  { %s4069_s25 = sld [smem:[#allocation13 + $0x10]] }
  0xe6   :  { %5800 = sst [smem:[#allocation111_spill]] %s4063_s0 }
  0xe7   :  { %s4071_s28 = sld [smem:[#allocation14 + $0x800]]  ;;  %v231_v39 = vpop.f32.mrf.mxu0 }
  0xe8   :  { %5801 = sst [smem:[#allocation112_spill]] %s4065_s26 }
  0xe9   :  { %s4073_s9 = sld [smem:[#allocation14 + $0x801]] }
  0xea   :  { %5802 = sst [smem:[#allocation113_spill]] %s4067_s10 }
  0xeb   :  { %5803 = sst [smem:[#allocation114_spill]] %s4069_s25 }
  0xec   :  { %s4075_s24 = sld [smem:[#allocation12 + $0x91]] }
  0xed   :  { %5804 = sst [smem:[#allocation115_spill]] %s4071_s28  ;;  %v332_v62 = vpop.f32.mrf.mxu1 }
  0xee   :  { %s4077_s23 = sld [smem:[#allocation12 + $0x111]]  ;;  %v333_v41 = vadd.f32 %v332_v62, %v231_v39  ;;  %v386_v19 = vpop.f32.mrf.mxu2 }
  0xef   :  { %5805 = sst [smem:[#allocation116_spill]] %s4073_s9 }
  0xf0   :  { %s4079_s13 = sld [smem:[#allocation13 + $0x11]]  ;;  %v387_v11 = vadd.f32 %v386_v19, %v333_v41  ;;  %v425_v7 = vpop.f32.mrf.mxu3 }
  0xf1   :  { %s4081_s27 = sld [smem:[#allocation14 + $0x880]] }
  0xf2   :  { %5806 = sst [smem:[#allocation117_spill]] %s4075_s24  ;;  %v426_v31 = vadd.f32 %v425_v7, %v387_v11  ;;  %v143_v7 = vand.u32 127, %v142_v47 }
  0xf3   :  { %s4083_s26 = sld [smem:[#allocation14 + $0x881]]  ;;  %v494_v26 = vpop.f32.mrf.mxu0 }
  0xf4   :  { %5807 = sst [smem:[#allocation118_spill]] %s4077_s23  ;;  %v495_v43 = vadd.f32 %v494_v26, %v426_v31 }
  0xf5   :  { %s4085_s10 = sld [smem:[#allocation12 + $0x92]] }
  0xf6   :  { %5808 = sst [smem:[#allocation119_spill]] %s4079_s13  ;;  %v531_v57 = vpop.f32.mrf.mxu1 }
  0xf7   :  { %5809 = sst [smem:[#allocation120_spill]] %s4081_s27  ;;  %v4117_v6 = vadd.f32 %v531_v57, %v495_v43 }
  0xf8   :  { %s4087_s25 = sld [smem:[#allocation12 + $0x112]] }
  0xf9   :  { %5810 = sst [smem:[#allocation121_spill]] %s4083_s26  ;;  %v4143_v27 = vmul.f32 %v1117_v2, %v4117_v6  ;;  %v4147_v4 = vmul.f32 %v1139_v1, %v4117_v6  ;;  %v4153_v22 = vmul.f32 %v1161_v53, %v4117_v6  ;;  %v4157_v14 = vmul.f32 %v1183_v23, %v4117_v6 }
  0xfa   :  { %s4089_s28 = sld [smem:[#allocation13 + $0x12]]  ;;  %v4163_v54 = vmul.f32 %v1205_v38, %v4117_v6  ;;  %v4167_v15 = vmul.f32 %v1227_v48, %v4117_v6  ;;  %v4170_v50 = vmul.f32 %v1249_v24, %v4117_v6  ;;  %v4175_v9 = vmul.f32 %v1271_v33, %v4117_v6 }
  0xfb   :  { %5811 = sst [smem:[#allocation122_spill]] %s4085_s10  ;;  %v4178_v3 = vmul.f32 %v1293_v60, %v4117_v6  ;;  %v4181_v16 = vmul.f32 %v1315_v29, %v4117_v6  ;;  %v4184_v25 = vmul.f32 %v1337_v56, %v4117_v6  ;;  %v4190_v20 = vmul.f32 %v1359_v13, %v4117_v6 }
  0xfc   :  { %s4091_s9 = sld [smem:[#allocation14 + $0x900]]  ;;  %v4193_v5 = vmul.f32 %v1381_v37, %v4117_v6  ;;  %v4199_v18 = vmul.f32 %v1403_v51, %v4117_v6  ;;  %v4202_v32 = vmul.f32 %v1425_v44, %v4117_v6  ;;  %v4205_v61 = vmul.f32 %v1447_v34, %v4117_v6 }
  0xfd   :  { %s4093_s13 = sld [smem:[#allocation14 + $0x901]]  ;;  %v4211_v12 = vmul.f32 %v1469_v36, %v4117_v6  ;;  %v144_v38 = vand.u32 1, %v143_v7 }
  0xfe   :  { %5812 = sst [smem:[#allocation123_spill]] %s4087_s25 }
  0xff   :  { %s4095_s23 = sld [smem:[#allocation12 + $0x93]]  ;;  %vm4270_vm1 = vcmp.eq.s32.totalorder %v144_v38, 0 }
 0x100   :  { %5813 = sst [smem:[#allocation124_spill]] %s4089_s28 }
 0x101   :  { %s4097_s27 = sld [smem:[#allocation12 + $0x113]] }
 0x102   :  { %5814 = sst [smem:[#allocation125_spill]] %s4091_s9 }
 0x103   :  { %5815 = sst [smem:[#allocation126_spill]] %s4093_s13 }
 0x104   :  { %s4099_s26 = sld [smem:[#allocation13 + $0x13]] }
 0x105   :  { %5816 = sst [smem:[#allocation127_spill]] %s4095_s23 }
 0x106   :  { %s4101_s28 = sld [smem:[#allocation14 + $0x980]] }
 0x107   :  { %5817 = sst [smem:[#allocation128_spill]] %s4097_s27 }
 0x108   :  { %s4103_s9 = sld [smem:[#allocation14 + $0x981]] }
 0x109   :  { %s4105_s25 = sld [smem:[#allocation12 + $0x14]] }
 0x10a   :  { %5818 = sst [smem:[#allocation129_spill]] %s4099_s26  ;;  %v572_v63 = vpop.f32.mrf.mxu2 }
 0x10b   :  { %s4107_s13 = sld [smem:[#allocation12 + $0x94]] }
 0x10c   :  { %5819 = sst [smem:[#allocation130_spill]] %s4101_s28 }
 0x10d   :  { %s4109_s27 = sld [smem:[#allocation12 + $0x114]]  ;;  %v673_v52 = vpop.f32.mrf.mxu3 }
 0x10e   :  { %5820 = sst [smem:[#allocation131_spill]] %s4103_s9  ;;  %v674_v58 = vadd.f32 %v673_v52, %v572_v63 }
 0x10f   :  { %s4111_s26 = sld [smem:[#allocation13 + $0x14]]  ;;  %v727_v10 = vpop.f32.mrf.mxu0  ;;  %v1557_v34 = vstv %s4105_s25 }
 0x110   :  { %s4115_s9 = sld [smem:[#allocation14 + $0xa00]]  ;;  %v728_v45 = vadd.f32 %v727_v10, %v674_v58 }
 0x111   :  { %5821 = sst [smem:[#allocation132_spill]] %s4107_s13 }
 0x112   :  { %s4122_s28 = sld [smem:[#allocation14 + $0xa01]]  ;;  %v766_v35 = vpop.f32.mrf.mxu1 }
 0x113   :  { %5822 = sst [smem:[#allocation133_spill]] %s4109_s27  ;;  %v767_v62 = vadd.f32 %v766_v35, %v728_v45  ;;  %v835_v11 = vpop.f32.mrf.mxu2 }
 0x114   :  { %s4128_s7 = sld [smem:[#allocation12 + $0x15]] }
 0x115   :  { %5823 = sst [smem:[#allocation134_spill]] %s4111_s26  ;;  %v836_v57 = vadd.f32 %v835_v11, %v767_v62 }
 0x116   :  { %5824 = sst [smem:[#allocation135_spill]] %s4115_s9  ;;  %v872_v23 = vpop.f32.mrf.mxu3 }
 0x117   :  { %s5827_s29 = sld [smem:[#allocation30_spill]]  ;;  %v4245_v60 = vadd.f32 %v872_v23, %v836_v57 }
 0x118   :  { %5825 = sst [smem:[#allocation136_spill]] %s4122_s28 }
 0x119   :  { %s4134_s30 = sld [smem:[#allocation12 + $0x95]]  ;;  %v1121_v36 = vmul.f32 %v1120_v40, %v4245_v60  ;;  %v1143_v63 = vmul.f32 %v1142_v55, %v4245_v60  ;;  %v1165_v35 = vmul.f32 %v1164_v0, %v4245_v60  ;;  %v4294_v0 = vmul.f32 %v1557_v34, %v4117_v6 }
 0x11a   :  { %5826 = sst [smem:[#allocation137_spill]] %s4128_s7 }
 0x11b   :  { %s5829_s11 = sld [smem:[#allocation31_spill]]  ;;  %v4299_v57 = vadd.f32 %v1121_v36, %v4143_v27  ;;  %v4306_v23 = vadd.f32 %v1143_v63, %v4147_v4  ;;  %v4318_v27 = vadd.f32 %v1165_v35, %v4153_v22 }
 0x11c   :  { %s4140_s12 = sld [smem:[#allocation12 + $0x115]] }
 0x11d   :  { %s4150_s14 = sld [smem:[#allocation13 + $0x15]]  ;;  %v1186_v42 = vstv %s5827_s29 }
 0x11e   :  { %s5832_s15 = sld [smem:[#allocation32_spill]]  ;;  %v1187_v38 = vmul.f32 %v1186_v42, %v4245_v60 }
 0x11f   :  { %5828 = sst [smem:[#allocation30_spill]] %s4134_s30 }
 0x120   :  { %s4160_s4 = sld [smem:[#allocation14 + $0xa80]] }
 0x121   :  { %v1208_v21 = vstv %s5829_s11  ;;  %s5834_s16 = sld [smem:[#allocation33_spill]] }
 0x122   :  { %5830 = sst [smem:[#allocation31_spill]] %s4140_s12  ;;  %v1209_v36 = vmul.f32 %v1208_v21, %v4245_v60 }
 0x123   :  { %5831 = sst [smem:[#allocation138_spill]] %s4150_s14 }
 0x124   :  { %s4172_s3 = sld [smem:[#allocation14 + $0xa81]]  ;;  %v1230_v28 = vstv %s5832_s15 }
 0x125   :  { %s5836_s17 = sld [smem:[#allocation34_spill]]  ;;  %v1231_v22 = vmul.f32 %v1230_v28, %v4245_v60 }
 0x126   :  { %5833 = sst [smem:[#allocation32_spill]] %s4160_s4 }
 0x127   :  { %s5837_s20 = sld [smem:[#allocation40_spill]]  ;;  %v1252_v17 = vstv %s5834_s16 }
 0x128   :  { %s4186_s21 = sld [smem:[#allocation12 + $0x16]]  ;;  %v1253_v28 = vmul.f32 %v1252_v17, %v4245_v60  ;;  %v4372_v17 = vadd.f32 %v1231_v22, %v4167_v15  ;;  %v909_v15 = vpop.f32.mrf.mxu0 }
 0x129   :  { %s5839_s5 = sld [smem:[#allocation35_spill]] }
 0x12a   :  { %5835 = sst [smem:[#allocation33_spill]] %s4172_s3  ;;  %v4389_v22 = vadd.f32 %v1253_v28, %v4170_v50  ;;  %v970_v50 = vpop.f32.mrf.mxu1 }
 0x12b   :  { %s5840_s6 = sld [smem:[#allocation36_spill]]  ;;  %v1274_v30 = vstv %s5836_s17 }
 0x12c   :  { %s4195_s8 = sld [smem:[#allocation12 + $0x96]] }
 0x12d   :  { %s5842_s18 = sld [smem:[#allocation43_spill]]  ;;  %v1491_v46 = vstv %s5837_s20 }
 0x12e   :  { %5838 = sst [smem:[#allocation34_spill]] %s4186_s21  ;;  %v4229_v43 = vmul.f32 %v1491_v46, %v4117_v6 }
 0x12f   :  { %s5843_s3 = sld [smem:[#allocation37_spill]]  ;;  %v1296_v59 = vstv %s5839_s5 }
 0x130   :  { %s5844_s4 = sld [smem:[#allocation38_spill]] }
 0x131   :  { %s5845_s14 = sld [smem:[#allocation39_spill]]  ;;  %v1318_v49 = vstv %s5840_s6 }
 0x132   :  { %5841 = sst [smem:[#allocation40_spill]] %s4195_s8 }
 0x133   :  { %s4207_s28 = sld [smem:[#allocation12 + $0x116]]  ;;  %v1513_v8 = vstv %s5842_s18 }
 0x134   :  { %s5847_s8 = sld [smem:[#allocation41_spill]]  ;;  %v4235_v1 = vmul.f32 %v1513_v8, %v4117_v6 }
 0x135   :  { %s5848_s21 = sld [smem:[#allocation42_spill]]  ;;  %v1340_v39 = vstv %s5843_s3 }
 0x136   :  { %s4214_s9 = sld [smem:[#allocation13 + $0x16]]  ;;  %v1362_v41 = vstv %s5844_s4 }
 0x137   :  { %s5850_s12 = sld [smem:[#allocation44_spill]]  ;;  %v1384_v19 = vstv %s5845_s14  ;;  %v1363_v28 = vmul.f32 %v1362_v41, %v4245_v60 }
 0x138   :  { %s5851_s30 = sld [smem:[#allocation46_spill]] }
 0x139   :  { %5846 = sst [smem:[#allocation35_spill]] %s4207_s28 }
 0x13a   :  { %s4219_s26 = sld [smem:[#allocation14 + $0xb00]]  ;;  %v1406_v31 = vstv %s5847_s8 }
 0x13b   :  { %s5853_s28 = sld [smem:[#allocation52_spill]]  ;;  %v1428_v26 = vstv %s5848_s21 }
 0x13c   :  { %5849 = sst [smem:[#allocation36_spill]] %s4214_s9 }
 0x13d   :  { %s5854_s7 = sld [smem:[#allocation53_spill]]  ;;  %v1450_v2 = vstv %s5850_s12 }
 0x13e   :  { %s4224_s27 = sld [smem:[#allocation14 + $0xb01]]  ;;  %v1535_v53 = vstv %s5851_s30 }
 0x13f   :  { %s5857_s9 = sld [smem:[#allocation47_spill]]  ;;  %v4255_v44 = vmul.f32 %v1535_v53, %v4117_v6 }
 0x140   :  { %5852 = sst [smem:[#allocation43_spill]] %s4219_s26 }
 0x141   :  { %s5858_s13 = sld [smem:[#allocation48_spill]]  ;;  %v148_v48 = vstv %s5853_s28 }
 0x142   :  { %s5859_s18 = sld [smem:[#allocation49_spill]] }
 0x143   :  { %s4231_s26 = sld [smem:[#allocation12 + $0x17]]  ;;  %v149_v24 = vstv %s5854_s7 }
 0x144   :  { %5855 = sst [smem:[#allocation37_spill]] %s4224_s27  ;;  %v4289_v62 = vsel %vm4270_vm1, %v148_v48, %v149_v24 }
 0x145   :  { %s5861_s23 = sld [smem:[#allocation51_spill]]  ;;  %v1124_v29 = vstv %s5857_s9 }
 0x146   :  { %s5862_s10 = sld [smem:[#allocation50_spill]] }
 0x147   :  { %s4238_s27 = sld [smem:[#allocation12 + $0x97]]  ;;  %v1146_v56 = vstv %s5858_s13 }
 0x148   :  { %s5864_s24 = sld [smem:[#allocation56_spill]]  ;;  %v1168_v13 = vstv %s5859_s18 }
 0x149   :  { %5860 = sst [smem:[#allocation38_spill]] %s4231_s26 }
 0x14a   :  { %s5865_s0 = sld [smem:[#allocation59_spill]] }
 0x14b   :  { %s4243_s26 = sld [smem:[#allocation12 + $0x117]]  ;;  %v1128_v37 = vstv %s5861_s23 }
 0x14c   :  { %s5867_s12 = sld [smem:[#allocation54_spill]]  ;;  %v1190_v51 = vstv %s5862_s10 }
 0x14d   :  { %5863 = sst [smem:[#allocation39_spill]] %s4238_s27 }
 0x14e   :  { %s5868_s2 = sld [smem:[#allocation55_spill]]  ;;  %v1150_v52 = vstv %s5864_s24 }
 0x14f   :  { %s4250_s30 = sld [smem:[#allocation13 + $0x17]] }
 0x150   :  { %s5870_s27 = sld [smem:[#allocation57_spill]] }
 0x151   :  { %5866 = sst [smem:[#allocation41_spill]] %s4243_s26 }
 0x152   :  { %s5871_s21 = sld [smem:[#allocation58_spill]]  ;;  %v1133_v45 = vstv %s5867_s12 }
 0x153   :  { %s5872_s28 = sld [smem:[#allocation65_spill]] }
 0x154   :  { %s5873_s7 = sld [smem:[#allocation69_spill]]  ;;  %v1134_v46 = vstv %s5868_s2 }
 0x155   :  { %5869 = sst [smem:[#allocation46_spill]] %s4250_s30  ;;  %v4303_v53 = vsel %vm4270_vm1, %v1133_v45, %v1134_v46 }
 0x156   :  { %s4258_s26 = sld [smem:[#allocation14 + $0xb80]]  ;;  %v1155_v40 = vstv %s5870_s27 }
 0x157   :  { %s5875_s20 = sld [smem:[#allocation60_spill]] }
 0x158   :  { %s5876_s30 = sld [smem:[#allocation61_spill]]  ;;  %v1156_v47 = vstv %s5871_s21 }
 0x159   :  { %s4268_s23 = sld [smem:[#allocation14 + $0xb81]]  ;;  %v1212_v55 = vstv %s5872_s28  ;;  %v4315_v48 = vsel %vm4270_vm1, %v1155_v40, %v1156_v47  ;;  %v4344_v40 = vadd.f32 %v1187_v38, %v4157_v14  ;;  %v1275_v14 = vmul.f32 %v1274_v30, %v4245_v60 }
 0x15a   :  { %s4279_s19 = sld [smem:[#allocation12 + $0x18]]  ;;  %v1234_v8 = vstv %s5873_s7  ;;  %v4365_v38 = vadd.f32 %v1209_v36, %v4163_v54  ;;  %v1297_v36 = vmul.f32 %v1296_v59, %v4245_v60 }
 0x15b   :  { %s5881_s22 = sld [smem:[#allocation63_spill]]  ;;  %v4400_v59 = vadd.f32 %v1275_v14, %v4175_v9  ;;  %v1319_v9 = vmul.f32 %v1318_v49, %v4245_v60  ;;  %v971_v14 = vadd.f32 %v970_v50, %v909_v15  ;;  %v1341_v15 = vmul.f32 %v1340_v39, %v4245_v60 }
 0x15c   :  { %5874 = sst [smem:[#allocation52_spill]] %s4258_s26 }
 0x15d   :  { %s5882_s25 = sld [smem:[#allocation64_spill]]  ;;  %v1177_v11 = vstv %s5875_s20 }
 0x15e   :  { %s4285_s26 = sld [smem:[#allocation12 + $0x98]]  ;;  %v1178_v7 = vstv %s5876_s30 }
 0x15f   :  { %5877 = sst [smem:[#allocation53_spill]] %s4268_s23  ;;  %v4326_v4 = vsel %vm4270_vm1, %v1177_v11, %v1178_v7 }
 0x160   :  { %5880 = sst [smem:[#allocation47_spill]] %s4279_s19 }
 0x161   :  { %s5884_s12 = sld [smem:[#allocation62_spill]]  ;;  %v1199_v24 = vstv %s5881_s22 }
 0x162   :  { %s4296_s1 = sld [smem:[#allocation12 + $0x118]] }
 0x163   :  { %s5886_s27 = sld [smem:[#allocation67_spill]]  ;;  %v1200_v34 = vstv %s5882_s25 }
 0x164   :  { %5883 = sst [smem:[#allocation48_spill]] %s4285_s26  ;;  %v4348_v21 = vsel %vm4270_vm1, %v1199_v24, %v1200_v34 }
 0x165   :  { %s5887_s2 = sld [smem:[#allocation68_spill]] }
 0x166   :  { %s5888_s21 = sld [smem:[#allocation71_spill]] }
 0x167   :  { %s5889_s20 = sld [smem:[#allocation72_spill]] }
 0x168   :  { %5885 = sst [smem:[#allocation49_spill]] %s4296_s1 }
 0x169   :  { %s4311_s30 = sld [smem:[#allocation13 + $0x18]]  ;;  %v1221_v63 = vstv %s5886_s27 }
 0x16a   :  { %s5891_s23 = sld [smem:[#allocation66_spill]] }
 0x16b   :  { %s4322_s1 = sld [smem:[#allocation14 + $0xc00]]  ;;  %v1222_v45 = vstv %s5887_s2 }
 0x16c   :  { %s5893_s29 = sld [smem:[#allocation70_spill]]  ;;  %v1243_v46 = vstv %s5888_s21  ;;  %v4369_v24 = vsel %vm4270_vm1, %v1221_v63, %v1222_v45 }
 0x16d   :  { %s5894_s26 = sld [smem:[#allocation75_spill]]  ;;  %v1244_v35 = vstv %s5889_s20 }
 0x16e   :  { %s4335_s22 = sld [smem:[#allocation14 + $0xc01]]  ;;  %v4376_v34 = vsel %vm4270_vm1, %v1243_v46, %v1244_v35  ;;  %v4419_v35 = vadd.f32 %v1297_v36, %v4178_v3 }
 0x16f   :  { %5890 = sst [smem:[#allocation50_spill]] %s4311_s30 }
 0x170   :  { %s5895_s30 = sld [smem:[#allocation76_spill]] }
 0x171   :  { %5892 = sst [smem:[#allocation56_spill]] %s4322_s1 }
 0x172   :  { %s4341_s25 = sld [smem:[#allocation12 + $0x19]] }
 0x173   :  { %s5898_s1 = sld [smem:[#allocation73_spill]]  ;;  %v1265_v7 = vstv %s5894_s26 }
 0x174   :  { %5896 = sst [smem:[#allocation59_spill]] %s4335_s22 }
 0x175   :  { %s5899_s11 = sld [smem:[#allocation79_spill]] }
 0x176   :  { %s5900_s15 = sld [smem:[#allocation80_spill]]  ;;  %v1266_v33 = vstv %s5895_s30 }
 0x177   :  { %s4354_s27 = sld [smem:[#allocation12 + $0x99]]  ;;  %v4394_v45 = vsel %vm4270_vm1, %v1265_v7, %v1266_v33 }
 0x178   :  { %5897 = sst [smem:[#allocation54_spill]] %s4341_s25 }
 0x179   :  { %s5902_s2 = sld [smem:[#allocation74_spill]]  ;;  %v1256_v30 = vstv %s5898_s1 }
 0x17a   :  { %s5903_s21 = sld [smem:[#allocation77_spill]] }
 0x17b   :  { %s4362_s20 = sld [smem:[#allocation12 + $0x119]]  ;;  %v1287_v11 = vstv %s5899_s11 }
 0x17c   :  { %s5906_s26 = sld [smem:[#allocation83_spill]]  ;;  %v1288_v54 = vstv %s5900_s15 }
 0x17d   :  { %5901 = sst [smem:[#allocation55_spill]] %s4354_s27  ;;  %v4409_v33 = vsel %vm4270_vm1, %v1287_v11, %v1288_v54  ;;  %v1008_v11 = vpop.f32.mrf.mxu2 }
 0x17e   :  { %s5907_s17 = sld [smem:[#allocation84_spill]]  ;;  %v1009_v3 = vadd.f32 %v1008_v11, %v971_v14  ;;  %v4473_v14 = vadd.f32 %v1363_v28, %v4190_v20 }
 0x17f   :  { %s4378_s30 = sld [smem:[#allocation13 + $0x19]] }
 0x180   :  { %s5909_s22 = sld [smem:[#allocation81_spill]]  ;;  %v1278_v46 = vstv %s5903_s21 }
 0x181   :  { %5904 = sst [smem:[#allocation57_spill]] %s4362_s20 }
 0x182   :  { %s4386_s27 = sld [smem:[#allocation14 + $0xc80]]  ;;  %v1309_v47 = vstv %s5906_s26 }
 0x183   :  { %s5913_s11 = sld [smem:[#allocation88_spill]] }
 0x184   :  { %s4397_s15 = sld [smem:[#allocation14 + $0xc81]]  ;;  %v1310_v42 = vstv %s5907_s17 }
 0x185   :  { %5908 = sst [smem:[#allocation58_spill]] %s4378_s30  ;;  %v4427_v54 = vsel %vm4270_vm1, %v1309_v47, %v1310_v42  ;;  %v1039_v42 = vpop.f32.mrf.mxu3  ;;  %v4444_v47 = vadd.f32 %v1319_v9, %v4181_v16  ;;  %v1385_v16 = vmul.f32 %v1384_v19, %v4245_v60 }
 0x186   :  { %s5912_s30 = sld [smem:[#allocation87_spill]]  ;;  %v1040_v41 = vadd.f32 %v1039_v42, %v1009_v3  ;;  %v1429_v3 = vmul.f32 %v1428_v26, %v4245_v60 }
 0x187   :  { %s5915_s5 = sld [smem:[#allocation85_spill]]  ;;  %v4492_v28 = vadd.f32 %v1385_v16, %v4193_v5 }
 0x188   :  { %5911 = sst [smem:[#allocation65_spill]] %s4386_s27 }
 0x189   :  { %s4405_s25 = sld [smem:[#allocation12 + $0x1a]]  ;;  %v1332_v58 = vstv %s5913_s11 }
 0x18a   :  { %5914 = sst [smem:[#allocation69_spill]] %s4397_s15 }
 0x18b   :  { %s5918_s19 = sld [smem:[#allocation91_spill]] }
 0x18c   :  { %s5919_s15 = sld [smem:[#allocation92_spill]]  ;;  %v1331_v63 = vstv %s5912_s30 }
 0x18d   :  { %s4416_s26 = sld [smem:[#allocation12 + $0x9a]]  ;;  %v4448_v39 = vsel %vm4270_vm1, %v1331_v63, %v1332_v58  ;;  %v1084_v58 = vpop.f32.mrf.mxu0  ;;  %v4462_v63 = vadd.f32 %v1341_v15, %v4184_v25  ;;  %v1407_v25 = vmul.f32 %v1406_v31, %v4245_v60 }
 0x18e   :  { %s5921_s17 = sld [smem:[#allocation89_spill]]  ;;  %v1085_v20 = vadd.f32 %v1084_v58, %v1040_v41 }
 0x18f   :  { %5917 = sst [smem:[#allocation60_spill]] %s4405_s25  ;;  %v4505_v41 = vadd.f32 %v1407_v25, %v4199_v18  ;;  %v4522_v18 = vadd.f32 %v1429_v3, %v4202_v32 }
 0x190   :  { %s4423_s25 = sld [smem:[#allocation12 + $0x11a]] }
 0x191   :  { %s5924_s6 = sld [smem:[#allocation95_spill]]  ;;  %v1353_v36 = vstv %s5918_s19 }
 0x192   :  { %s4434_s20 = sld [smem:[#allocation13 + $0x1a]]  ;;  %v1354_v50 = vstv %s5919_s15 }
 0x193   :  { %5920 = sst [smem:[#allocation61_spill]] %s4416_s26  ;;  %v4466_v9 = vsel %vm4270_vm1, %v1353_v36, %v1354_v50 }
 0x194   :  { %s5925_s26 = sld [smem:[#allocation96_spill]] }
 0x195   :  { %s4441_s11 = sld [smem:[#allocation14 + $0xd00]] }
 0x196   :  { %5922 = sst [smem:[#allocation63_spill]] %s4423_s25 }
 0x197   :  { %s5930_s3 = sld [smem:[#allocation99_spill]]  ;;  %v1375_v11 = vstv %s5924_s6 }
 0x198   :  { %5926 = sst [smem:[#allocation64_spill]] %s4434_s20 }
 0x199   :  { %s5931_s20 = sld [smem:[#allocation100_spill]] }
 0x19a   :  { %s4452_s19 = sld [smem:[#allocation14 + $0xd01]]  ;;  %v1376_v7 = vstv %s5925_s26 }
 0x19b   :  { %5928 = sst [smem:[#allocation62_spill]] %s4441_s11  ;;  %v4484_v15 = vsel %vm4270_vm1, %v1375_v11, %v1376_v7  ;;  %v1113_v7 = vpop.f32.mrf.mxu1 }
 0x19c   :  { %s5933_s4 = sld [smem:[#allocation97_spill]]  ;;  %v4511_v26 = vadd.f32 %v1113_v7, %v1085_v20  ;;  %v1451_v20 = vmul.f32 %v1450_v2, %v4245_v60 }
 0x19d   :  { %s5934_s15 = sld [smem:[#allocation103_spill]]  ;;  %v1397_v19 = vstv %s5930_s3 }
 0x19e   :  { %s5935_s11 = sld [smem:[#allocation104_spill]]  ;;  %v1169_v7 = vmul.f32 %v1168_v13, %v4511_v26  ;;  %v1191_v32 = vmul.f32 %v1190_v51, %v4511_v26  ;;  %v1213_v2 = vmul.f32 %v1212_v55, %v4511_v26  ;;  %v1235_v3 = vmul.f32 %v1234_v8, %v4511_v26 }
 0x19f   :  { %s4459_s27 = sld [smem:[#allocation12 + $0x1b]]  ;;  %v1398_v49 = vstv %s5931_s20 }
 0x1a0   :  { %5932 = sst [smem:[#allocation67_spill]] %s4452_s19  ;;  %v4502_v11 = vsel %vm4270_vm1, %v1397_v19, %v1398_v49  ;;  %v1170_v55 = vadd.f32 %v1169_v7, %v4318_v27  ;;  %v1192_v8 = vadd.f32 %v1191_v32, %v4344_v40  ;;  %v5951_v27 = vstv %s5865_s0 }
 0x1a1   :  { %s5937_s19 = sld [smem:[#allocation98_spill]]  ;;  %v5953_v40 = vstv %s5884_s12  ;;  %v5956_v7 = vstv %s5893_s29 }
 0x1a2   :  { %s4470_s26 = sld [smem:[#allocation12 + $0x9b]]  ;;  %v1388_v36 = vstv %s5933_s4 }
 0x1a3   :  { %s5940_s14 = sld [smem:[#allocation101_spill]]  ;;  %v1419_v50 = vstv %s5934_s15 }
 0x1a4   :  { %s4480_s16 = sld [smem:[#allocation12 + $0x11b]]  ;;  %v1420_v42 = vstv %s5935_s11 }
 0x1a5   :  { %5936 = sst [smem:[#allocation68_spill]] %s4459_s27  ;;  %v4515_v58 = vsel %vm4270_vm1, %v1419_v50, %v1420_v42  ;;  %v1125_v42 = vmul.f32 %v1124_v29, %v4511_v26  ;;  %v1147_v50 = vmul.f32 %v1146_v56, %v4511_v26  ;;  %v1257_v29 = vmul.f32 %v1256_v30, %v4511_v26 }
 0x1a6   :  { %s5941_s27 = sld [smem:[#allocation102_spill]]  ;;  %v1279_v56 = vmul.f32 %v1278_v46, %v4511_v26  ;;  %v1214_v30 = vadd.f32 %v1213_v2, %v4365_v38  ;;  %v1236_v46 = vadd.f32 %v1235_v3, %v4372_v17  ;;  %v5955_v38 = vstv %s5891_s23 }
 0x1a7   :  { %s5943_s25 = sld [smem:[#allocation105_spill]]  ;;  %v1126_v13 = vadd.f32 %v1125_v42, %v4299_v57  ;;  %v1148_v51 = vadd.f32 %v1147_v50, %v4306_v23  ;;  %v1258_v19 = vadd.f32 %v1257_v29, %v4389_v22  ;;  %v1173_v42 = vadd.f32 %v5951_v27, %v1170_v55 }
 0x1a8   :  { %5939 = sst [smem:[#allocation71_spill]] %s4470_s26  ;;  %v1280_v31 = vadd.f32 %v1279_v56, %v4400_v59  ;;  %v1195_v50 = vadd.f32 %v5953_v40, %v1192_v8  ;;  %v1217_v17 = vadd.f32 %v5955_v38, %v1214_v30  ;;  %v4585_v22 = vadd.f32 %v5956_v7, %v1236_v46 }
 0x1a9   :  { %s5944_s26 = sld [smem:[#allocation106_spill]]  ;;  %v1410_v5 = vstv %s5940_s14  ;;  %v1129_v57 = vadd.f32 %v1128_v37, %v1126_v13  ;;  %v1151_v23 = vadd.f32 %v1150_v52, %v1148_v51  ;;  %v5957_v59 = vstv %s5902_s2 }
 0x1aa   :  { %5942 = sst [smem:[#allocation72_spill]] %s4480_s16  ;;  %v4589_v32 = vadd.f32 %v5957_v59, %v1258_v19  ;;  %v1174_v29 = vmax.f32 %v1173_v42, 0.0  ;;  %v1196_v56 = vmax.f32 %v1195_v50, 0.0  ;;  %v4604_v51 = vadd.f32 %v1451_v20, %v4205_v61 }
 0x1ab   :  { %s4489_s30 = sld [smem:[#allocation13 + $0x1b]]  ;;  %v1130_v52 = vmax.f32 %v1129_v57, 0.0  ;;  %v1152_v3 = vmax.f32 %v1151_v23, 0.0  ;;  %v1218_v8 = vmax.f32 %v1217_v17, 0.0  ;;  %v1240_v30 = vmax.f32 %v4585_v22, 0.0 }
 0x1ac   :  { %s5945_s8 = sld [smem:[#allocation107_spill]]  ;;  %v1202_v20 = vmul.f32 %v4348_v21, %v1196_v56  ;;  %v5960_v57 = vstv %s5909_s22  ;;  %v5961_v27 = vstv %s5915_s5  ;;  %v5962_v40 = vstv %s5921_s17 }
 0x1ad   :  { %s5946_s20 = sld [smem:[#allocation108_spill]]  ;;  %v1432_v49 = vstv %s5943_s25  ;;  %v1136_v55 = vmul.f32 %v4303_v53, %v1130_v52  ;;  %v1158_v61 = vmul.f32 %v4315_v48, %v1152_v3  ;;  %v1301_v23 = vmul.f32 %v5960_v57, %v4511_v26 }
 0x1ae   :  { %s4498_s16 = sld [smem:[#allocation14 + $0xd80]]  ;;  %v1323_v42 = vmul.f32 %v5961_v27, %v4511_v26  ;;  %v1345_v50 = vmul.f32 %v5962_v40, %v4511_v26  ;;  %v1389_v21 = vmul.f32 %v1388_v36, %v4511_v26  ;;  %v1433_v38 = vmul.f32 %v1432_v49, %v4511_v26 }
 0x1af   :  { %s4509_s11 = sld [smem:[#allocation14 + $0xd81]]  ;;  %v1137_v53 = vadd.f32 %v1136_v55, %v4289_v62  ;;  %v1411_v62 = vmul.f32 %v1410_v5, %v4511_v26  ;;  %v1302_v7 = vadd.f32 %v1301_v23, %v4419_v35  ;;  %v5975_v56 = vstv %s5937_s19 }
 0x1b0   :  { %s4519_s15 = sld [smem:[#allocation12 + $0x1c]]  ;;  %v1324_v22 = vadd.f32 %v1323_v42, %v4444_v47  ;;  %v1346_v36 = vadd.f32 %v1345_v50, %v4462_v63  ;;  %v1390_v59 = vadd.f32 %v1389_v21, %v4492_v28  ;;  %v5976_v55 = vstv %s5941_s27 }
 0x1b1   :  { %s4529_s6 = sld [smem:[#allocation12 + $0x9c]]  ;;  %v1159_v17 = vadd.f32 %v1158_v61, %v1137_v53  ;;  %v1412_v49 = vadd.f32 %v1411_v62, %v4505_v41  ;;  %v5977_v61 = vstv %s5944_s26  ;;  %v1224_v53 = vmul.f32 %v4369_v24, %v1218_v8 }
 0x1b2   :  { %v1441_v25 = vstv %s5945_s8  ;;  %s4557_s9 = sld [smem:[#allocation13 + $0x1c]]  ;;  %v1393_v28 = vadd.f32 %v5975_v56, %v1390_v59 }
 0x1b3   :  { %v1442_v16 = vstv %s5946_s20  ;;  %s5950_s10 = sld [smem:[#allocation78_spill]]  ;;  %v1415_v41 = vadd.f32 %v5976_v55, %v1412_v49 }
 0x1b4   :  { %s4563_s13 = sld [smem:[#allocation14 + $0xe00]]  ;;  %v4601_v13 = vsel %vm4270_vm1, %v1441_v25, %v1442_v16  ;;  %v1262_v16 = vmax.f32 %v4589_v32, 0.0  ;;  %v1180_v25 = vmul.f32 %v4326_v4, %v1174_v29  ;;  %v1434_v32 = vadd.f32 %v1433_v38, %v4522_v18 }
 0x1b5   :  { %5948 = sst [smem:[#allocation66_spill]] %s4509_s11  ;;  %v1394_v40 = vmax.f32 %v1393_v28, 0.0  ;;  %v1416_v62 = vmax.f32 %v1415_v41, 0.0 }
 0x1b6   :  { %s4543_s11 = sld [smem:[#allocation12 + $0x11c]]  ;;  %v4674_v18 = vadd.f32 %v5977_v61, %v1434_v32  ;;  %v1268_v21 = vmul.f32 %v4394_v45, %v1262_v16 }
 0x1b7   :  { %s4569_s18 = sld [smem:[#allocation14 + $0xe01]]  ;;  %v4706_v16 = vmul.f32 %v4502_v11, %v1394_v40 }
 0x1b8   :  { %s5952_s28 = sld [smem:[#allocation109_spill]]  ;;  %v1438_v38 = vmax.f32 %v4674_v18, 0.0 }
 0x1b9   :  { %s5954_s7 = sld [smem:[#allocation110_spill]]  ;;  %v5958_v2 = vstv %s5950_s10 }
 0x1ba   :  { %s4579_s1 = sld [smem:[#allocation12 + $0x1d]]  ;;  %v4593_v37 = vadd.f32 %v5958_v2, %v1280_v31  ;;  %v1181_v2 = vadd.f32 %v1180_v25, %v1159_v17  ;;  %v1444_v41 = vmul.f32 %v4601_v13, %v1438_v38 }
 0x1bb   :  { %s4595_s24 = sld [smem:[#allocation12 + $0x9d]] }
 0x1bc   :  { %s4597_s0 = sld [smem:[#allocation12 + $0x11d]]  ;;  %v1284_v46 = vmax.f32 %v4593_v37, 0.0  ;;  %v1203_v25 = vadd.f32 %v1202_v20, %v1181_v2 }
 0x1bd   :  { %s4608_s23 = sld [smem:[#allocation13 + $0x1d]] }
 0x1be   :  { %v1454_v19 = vstv %s5952_s28  ;;  %s5959_s12 = sld [smem:[#allocation93_spill]]  ;;  %v1290_v24 = vmul.f32 %v4409_v33, %v1284_v46 }
 0x1bf   :  { %v1458_v31 = vstv %s5954_s7  ;;  %s4613_s29 = sld [smem:[#allocation14 + $0xe80]] }
 0x1c0   :  { %s4619_s2 = sld [smem:[#allocation14 + $0xe81]] }
 0x1c1   :  { %s4631_s21 = sld [smem:[#allocation12 + $0x1e]] }
 0x1c2   :  { %s5964_s20 = sld [smem:[#allocation82_spill]] }
 0x1c3   :  { %s5965_s3 = sld [smem:[#allocation86_spill]] }
 0x1c4   :  { %v5963_v48 = vstv %s5959_s12  ;;  %s5966_s22 = sld [smem:[#allocation90_spill]] }
 0x1c5   :  { %v1367_v4 = vmul.f32 %v5963_v48, %v4511_v26  ;;  %s4645_s5 = sld [smem:[#allocation12 + $0x9e]]  ;;  %v1225_v48 = vadd.f32 %v1224_v53, %v1203_v25 }
 0x1c6   :  { %s5967_s17 = sld [smem:[#allocation94_spill]] }
 0x1c7   :  { %s4650_s4 = sld [smem:[#allocation12 + $0x11e]]  ;;  %v1368_v5 = vadd.f32 %v1367_v4, %v4473_v14  ;;  %v1246_v4 = vmul.f32 %v4376_v34, %v1240_v30  ;;  %v1455_v34 = vmul.f32 %v1454_v19, %v4511_v26 }
 0x1c8   :  { %s4656_s25 = sld [smem:[#allocation13 + $0x1e]]  ;;  %v5969_v35 = vstv %s5964_s20 }
 0x1c9   :  { %v1305_v37 = vadd.f32 %v5969_v35, %v1302_v7  ;;  %v5970_v52 = vstv %s5965_s3  ;;  %s5972_s14 = sld [smem:[#allocation111_spill]]  ;;  %v1247_v17 = vadd.f32 %v1246_v4, %v1225_v48  ;;  %v1456_v19 = vadd.f32 %v1455_v34, %v4604_v51 }
 0x1ca   :  { %v1327_v47 = vadd.f32 %v5970_v52, %v1324_v22  ;;  %v5971_v3 = vstv %s5966_s22  ;;  %s4664_s8 = sld [smem:[#allocation14 + $0xf00]] }
 0x1cb   :  { %v1349_v63 = vadd.f32 %v5971_v3, %v1346_v36  ;;  %s5978_s10 = sld [smem:[#allocation112_spill]]  ;;  %v1306_v57 = vmax.f32 %v1305_v37, 0.0  ;;  %v1459_v51 = vadd.f32 %v1458_v31, %v1456_v19 }
 0x1cc   :  { %v5974_v29 = vstv %s5967_s17  ;;  %s4676_s12 = sld [smem:[#allocation14 + $0xf01]]  ;;  %v1328_v23 = vmax.f32 %v1327_v47, 0.0 }
 0x1cd   :  { %v1371_v14 = vadd.f32 %v5974_v29, %v1368_v5  ;;  %s4679_s20 = sld [smem:[#allocation12 + $0x1f]]  ;;  %v1350_v27 = vmax.f32 %v1349_v63, 0.0  ;;  %v1312_v8 = vmul.f32 %v4427_v54, %v1306_v57  ;;  %v1460_v31 = vmax.f32 %v1459_v51, 0.0 }
 0x1ce   :  { %5968 = sst [smem:[#allocation70_spill]] %s4656_s25  ;;  %v1334_v7 = vmul.f32 %v4448_v39, %v1328_v23  ;;  %v1269_v39 = vadd.f32 %v1268_v21, %v1247_v17 }
 0x1cf   :  { %v1372_v42 = vmax.f32 %v1371_v14, 0.0  ;;  %s5981_s19 = sld [smem:[#allocation45_spill]]  ;;  %v1463_v50 = vstv %s5972_s14  ;;  %v1356_v33 = vmul.f32 %v4466_v9, %v1350_v27  ;;  %v4717_v9 = vmul.f32 %v4515_v58, %v1416_v62 }
 0x1d0   :  { %5973 = sst [smem:[#allocation75_spill]] %s4664_s8  ;;  %v1291_v59 = vadd.f32 %v1290_v24, %v1269_v39 }
 0x1d1   :  { %s4682_s27 = sld [smem:[#allocation12 + $0x9f]]  ;;  %v1464_v20 = vstv %s5978_s10  ;;  %v1378_v54 = vmul.f32 %v4484_v15, %v1372_v42 }
 0x1d2   :  { %5979 = sst [smem:[#allocation76_spill]] %s4676_s12  ;;  %v1313_v37 = vadd.f32 %v1312_v8, %v1291_v59  ;;  %v1465_v28 = vsel %vm4270_vm1, %v1463_v50, %v1464_v20 }
 0x1d3   :  { %5980 = sst [smem:[#allocation73_spill]] %s4679_s20  ;;  %v1466_v13 = vmul.f32 %v1465_v28, %v1460_v31 }
 0x1d4   :  { %s5983_s26 = sld [smem:[#allocation113_spill]]  ;;  %v1335_v56 = vadd.f32 %v1334_v7, %v1313_v37 }
 0x1d5   :  { %s4687_s3 = sld [smem:[#allocation12 + $0x11f]]  ;;  %v5988_v45 = vstv %s5981_s19 }
 0x1d6   :  { %s4692_s22 = sld [smem:[#allocation13 + $0x1f]]  ;;  %v1473_v30 = vmul.f32 %v5988_v45, %v4245_v60  ;;  %v1357_v53 = vadd.f32 %v1356_v33, %v1335_v56 }
 0x1d7   :  { %5982 = sst [smem:[#allocation79_spill]] %s4682_s27 }
 0x1d8   :  { %s5986_s17 = sld [smem:[#allocation114_spill]]  ;;  %v1474_v22 = vadd.f32 %v1473_v30, %v4211_v12  ;;  %v1379_v50 = vadd.f32 %v1378_v54, %v1357_v53 }
 0x1d9   :  { %s5987_s14 = sld [smem:[#allocation117_spill]] }
 0x1da   :  { %s5989_s10 = sld [smem:[#allocation118_spill]]  ;;  %v1476_v46 = vstv %s5983_s26  ;;  %v1401_v38 = vadd.f32 %v4706_v16, %v1379_v50 }
 0x1db   :  { %5984 = sst [smem:[#allocation80_spill]] %s4687_s3  ;;  %v1477_v36 = vmul.f32 %v1476_v46, %v4511_v26 }
 0x1dc   :  { %5985 = sst [smem:[#allocation74_spill]] %s4692_s22  ;;  %v1423_v46 = vadd.f32 %v4717_v9, %v1401_v38 }
 0x1dd   :  { %s4701_s12 = sld [smem:[#allocation14 + $0xf80]]  ;;  %v1478_v12 = vadd.f32 %v1477_v36, %v1474_v22 }
 0x1de   :  { %s4709_s22 = sld [smem:[#allocation14 + $0xf81]]  ;;  %v1480_v15 = vstv %s5986_s17 }
 0x1df   :  { %s5992_s28 = sld [smem:[#allocation115_spill]]  ;;  %v1494_v11 = vstv %s5987_s14  ;;  %v1481_v55 = vadd.f32 %v1480_v15, %v1478_v12 }
 0x1e0   :  { %s5993_s8 = sld [smem:[#allocation116_spill]]  ;;  %v1498_v5 = vstv %s5989_s10  ;;  %v1495_v49 = vmul.f32 %v1494_v11, %v4245_v60  ;;  %v1445_v11 = vadd.f32 %v1444_v41, %v1423_v46 }
 0x1e1   :  { %s5994_s19 = sld [smem:[#allocation122_spill]]  ;;  %v1499_v2 = vmul.f32 %v1498_v5, %v4511_v26  ;;  %v1482_v48 = vmax.f32 %v1481_v55, 0.0 }
 0x1e2   :  { %s5995_s25 = sld [smem:[#allocation119_spill]]  ;;  %v1496_v52 = vadd.f32 %v1495_v49, %v4229_v43 }
 0x1e3   :  { %5990 = sst [smem:[#allocation77_spill]] %s4701_s12 }
 0x1e4   :  { %5991 = sst [smem:[#allocation83_spill]] %s4709_s22  ;;  %v1500_v43 = vadd.f32 %v1499_v2, %v1496_v52 }
 0x1e5   :  { %s4714_s12 = sld [smem:[#allocation12 + $0x20]]  ;;  %v1485_v32 = vstv %s5992_s28 }
 0x1e6   :  { %s5996_s26 = sld [smem:[#allocation120_spill]]  ;;  %v1486_v58 = vstv %s5993_s8 }
 0x1e7   :  { %s4722_s22 = sld [smem:[#allocation12 + $0xa0]]  ;;  %v1516_v35 = vstv %s5994_s19  ;;  %v1487_v61 = vsel %vm4270_vm1, %v1485_v32, %v1486_v58 }
 0x1e8   :  { %s5998_s3 = sld [smem:[#allocation121_spill]]  ;;  %v1502_v47 = vstv %s5995_s25  ;;  %v1517_v29 = vmul.f32 %v1516_v35, %v4245_v60  ;;  %v1488_v39 = vmul.f32 %v1487_v61, %v1482_v48 }
 0x1e9   :  { %s5999_s27 = sld [smem:[#allocation123_spill]]  ;;  %v1503_v57 = vadd.f32 %v1502_v47, %v1500_v43 }
 0x1ea   :  { %s4727_s20 = sld [smem:[#allocation12 + $0x120]]  ;;  %v1518_v18 = vadd.f32 %v1517_v29, %v4235_v1 }
 0x1eb   :  { %s4733_s17 = sld [smem:[#allocation13 + $0x20]]  ;;  %v1504_v17 = vmax.f32 %v1503_v57, 0.0 }
 0x1ec   :  { %v1507_v3 = vstv %s5996_s26  ;;  %s4738_s7 = sld [smem:[#allocation14 + $0x1000]] }
 0x1ed   :  { %5997 = sst [smem:[#allocation84_spill]] %s4722_s22 }
 0x1ee   :  { %v1508_v63 = vstv %s5998_s3  ;;  %s6003_s14 = sld [smem:[#allocation124_spill]] }
 0x1ef   :  { %v1520_v14 = vstv %s5999_s27  ;;  %s4743_s10 = sld [smem:[#allocation14 + $0x1001]]  ;;  %v1509_v23 = vsel %vm4270_vm1, %v1507_v3, %v1508_v63 }
 0x1f0   :  { %6000 = sst [smem:[#allocation81_spill]] %s4727_s20  ;;  %v1521_v25 = vmul.f32 %v1520_v14, %v4511_v26  ;;  %v1510_v9 = vmul.f32 %v1509_v23, %v1504_v17 }
 0x1f1   :  { %6001 = sst [smem:[#allocation87_spill]] %s4733_s17 }
 0x1f2   :  { %6002 = sst [smem:[#allocation88_spill]] %s4738_s7  ;;  %v1522_v42 = vadd.f32 %v1521_v25, %v1518_v18 }
 0x1f3   :  { %s6005_s8 = sld [smem:[#allocation127_spill]] }
 0x1f4   :  { %s6006_s28 = sld [smem:[#allocation128_spill]]  ;;  %v1524_v27 = vstv %s6003_s14 }
 0x1f5   :  { %6004 = sst [smem:[#allocation85_spill]] %s4743_s10  ;;  %v1525_v20 = vadd.f32 %v1524_v27, %v1522_v42 }
 0x1f6   :  { %s4747_s25 = sld [smem:[#allocation12 + $0x21]] }
 0x1f7   :  { %s4754_s27 = sld [smem:[#allocation12 + $0xa1]]  ;;  %v1526_v19 = vmax.f32 %v1525_v20, 0.0 }
 0x1f8   :  { %s6009_s3 = sld [smem:[#allocation125_spill]] }
 0x1f9   :  { %s6010_s19 = sld [smem:[#allocation126_spill]]  ;;  %v1538_v40 = vstv %s6005_s8 }
 0x1fa   :  { %s6011_s26 = sld [smem:[#allocation132_spill]]  ;;  %v1542_v1 = vstv %s6006_s28  ;;  %v1539_v4 = vmul.f32 %v1538_v40, %v4245_v60 }
 0x1fb   :  { %s4759_s10 = sld [smem:[#allocation12 + $0x121]]  ;;  %v1543_v21 = vmul.f32 %v1542_v1, %v4511_v26 }
 0x1fc   :  { %6007 = sst [smem:[#allocation91_spill]] %s4747_s25  ;;  %v1540_v7 = vadd.f32 %v1539_v4, %v4255_v44 }
 0x1fd   :  { %6008 = sst [smem:[#allocation92_spill]] %s4754_s27 }
 0x1fe   :  { %s6013_s7 = sld [smem:[#allocation129_spill]]  ;;  %v1529_v24 = vstv %s6009_s3  ;;  %v1544_v16 = vadd.f32 %v1543_v21, %v1540_v7 }
 0x1ff   :  { %s4763_s17 = sld [smem:[#allocation13 + $0x21]]  ;;  %v1530_v8 = vstv %s6010_s19 }
 0x200   :  { %s6015_s25 = sld [smem:[#allocation130_spill]]  ;;  %v1560_v62 = vstv %s6011_s26  ;;  %v1531_v22 = vsel %vm4270_vm1, %v1529_v24, %v1530_v8 }
 0x201   :  { %6012 = sst [smem:[#allocation89_spill]] %s4759_s10  ;;  %v1561_v33 = vmul.f32 %v1560_v62, %v4245_v60  ;;  %v1532_v37 = vmul.f32 %v1531_v22, %v1526_v19 }
 0x202   :  { %s6016_s27 = sld [smem:[#allocation131_spill]] }
 0x203   :  { %s6017_s20 = sld [smem:[#allocation133_spill]]  ;;  %v1562_v36 = vadd.f32 %v1561_v33, %v4294_v0  ;;  %v1467_v0 = vadd.f32 %v1466_v13, %v1445_v11 }
 0x204   :  { %s4767_s22 = sld [smem:[#allocation14 + $0x1080]]  ;;  %v1546_v34 = vstv %s6013_s7 }
 0x205   :  { %6014 = sst [smem:[#allocation95_spill]] %s4763_s17  ;;  %v1547_v5 = vadd.f32 %v1546_v34, %v1544_v16  ;;  %v1489_v31 = vadd.f32 %v1488_v39, %v1467_v0 }
 0x206   :  { %s4772_s14 = sld [smem:[#allocation14 + $0x1081]]  ;;  %v1551_v45 = vstv %s6015_s25 }
 0x207   :  { %s6020_s8 = sld [smem:[#allocation137_spill]]  ;;  %v1548_v52 = vmax.f32 %v1547_v5, 0.0  ;;  %v1511_v41 = vadd.f32 %v1510_v9, %v1489_v31 }
 0x208   :  { %s4777_s28 = sld [smem:[#allocation12 + $0x22]]  ;;  %v1552_v30 = vstv %s6016_s27 }
 0x209   :  { %v1564_v54 = vstv %s6017_s20  ;;  %s6023_s3 = sld [smem:[#allocation134_spill]]  ;;  %v1553_v59 = vsel %vm4270_vm1, %v1551_v45, %v1552_v30  ;;  %v1533_v13 = vadd.f32 %v1532_v37, %v1511_v41 }
 0x20a   :  { %6018 = sst [smem:[#allocation96_spill]] %s4767_s22  ;;  %v1565_v44 = vmul.f32 %v1564_v54, %v4511_v26  ;;  %v1554_v53 = vmul.f32 %v1553_v59, %v1548_v52 }
 0x20b   :  { %s4783_s22 = sld [smem:[#allocation12 + $0xa2]] }
 0x20c   :  { %6019 = sst [smem:[#allocation99_spill]] %s4772_s14  ;;  %v1566_v51 = vadd.f32 %v1565_v44, %v1562_v36  ;;  %v1555_v62 = vadd.f32 %v1554_v53, %v1533_v13 }
 0x20d   :  { %s6024_s19 = sld [smem:[#allocation30_spill]]  ;;  %v1579_v15 = vstv %s6020_s8 }
 0x20e   :  { %6021 = sst [smem:[#allocation100_spill]] %s4777_s28  ;;  %v1580_v58 = vmul.f32 %v1579_v15, %v4117_v6 }
 0x20f   :  { %s6025_s26 = sld [smem:[#allocation31_spill]]  ;;  %v1568_v12 = vstv %s6023_s3 }
 0x210   :  { %s4787_s14 = sld [smem:[#allocation12 + $0x122]]  ;;  %v1569_v63 = vadd.f32 %v1568_v12, %v1566_v51 }
 0x211   :  { %6022 = sst [smem:[#allocation97_spill]] %s4783_s22 }
 0x212   :  { %s4793_s20 = sld [smem:[#allocation13 + $0x22]]  ;;  %v1570_v42 = vmax.f32 %v1569_v63, 0.0 }
 0x213   :  { %s6028_s7 = sld [smem:[#allocation135_spill]]  ;;  %v1582_v49 = vstv %s6024_s19 }
 0x214   :  { %s6029_s25 = sld [smem:[#allocation34_spill]]  ;;  %v1583_v2 = vmul.f32 %v1582_v49, %v4245_v60 }
 0x215   :  { %s4797_s27 = sld [smem:[#allocation14 + $0x1100]]  ;;  %v1586_v32 = vstv %s6025_s26 }
 0x216   :  { %6026 = sst [smem:[#allocation103_spill]] %s4787_s14  ;;  %v1587_v35 = vmul.f32 %v1586_v32, %v4511_v26  ;;  %v1584_v14 = vadd.f32 %v1583_v2, %v1580_v58 }
 0x217   :  { %s6031_s14 = sld [smem:[#allocation136_spill]] }
 0x218   :  { %6027 = sst [smem:[#allocation104_spill]] %s4793_s20  ;;  %v1588_v61 = vadd.f32 %v1587_v35, %v1584_v14 }
 0x219   :  { %s4802_s22 = sld [smem:[#allocation14 + $0x1101]]  ;;  %v1573_v47 = vstv %s6028_s7 }
 0x21a   :  { %s6033_s8 = sld [smem:[#allocation138_spill]]  ;;  %v1601_v3 = vstv %s6029_s25 }
 0x21b   :  { %6030 = sst [smem:[#allocation98_spill]] %s4797_s27  ;;  %v1602_v28 = vmul.f32 %v1601_v3, %v4117_v6 }
 0x21c   :  { %s6034_s20 = sld [smem:[#allocation40_spill]] }
 0x21d   :  { %s6035_s17 = sld [smem:[#allocation35_spill]]  ;;  %v1574_v29 = vstv %s6031_s14 }
 0x21e   :  { %s4807_s28 = sld [smem:[#allocation12 + $0x23]]  ;;  %v1575_v57 = vsel %vm4270_vm1, %v1573_v47, %v1574_v29 }
 0x21f   :  { %6032 = sst [smem:[#allocation42_spill]] %s4802_s22  ;;  %v1576_v34 = vmul.f32 %v1575_v57, %v1570_v42 }
 0x220   :  { %s4811_s3 = sld [smem:[#allocation12 + $0xa3]]  ;;  %v1590_v56 = vstv %s6033_s8 }
 0x221   :  { %s6038_s19 = sld [smem:[#allocation32_spill]]  ;;  %v1591_v40 = vadd.f32 %v1590_v56, %v1588_v61  ;;  %v1577_v15 = vadd.f32 %v1576_v34, %v1555_v62 }
 0x222   :  { %s6039_s26 = sld [smem:[#allocation33_spill]]  ;;  %v1604_v55 = vstv %s6034_s20 }
 0x223   :  { %s4814_s22 = sld [smem:[#allocation12 + $0x123]]  ;;  %v1608_v43 = vstv %s6035_s17  ;;  %v1605_v18 = vmul.f32 %v1604_v55, %v4245_v60  ;;  %v1592_v45 = vmax.f32 %v1591_v40, 0.0 }
 0x224   :  { %6036 = sst [smem:[#allocation101_spill]] %s4807_s28  ;;  %v1609_v25 = vmul.f32 %v1608_v43, %v4511_v26 }
 0x225   :  { %s4820_s27 = sld [smem:[#allocation13 + $0x23]]  ;;  %v1606_v1 = vadd.f32 %v1605_v18, %v1602_v28 }
 0x226   :  { %6037 = sst [smem:[#allocation102_spill]] %s4811_s3 }
 0x227   :  { %s6042_s28 = sld [smem:[#allocation36_spill]]  ;;  %v1595_v23 = vstv %s6038_s19  ;;  %v1610_v20 = vadd.f32 %v1609_v25, %v1606_v1 }
 0x228   :  { %s6043_s7 = sld [smem:[#allocation38_spill]]  ;;  %v1596_v27 = vstv %s6039_s26 }
 0x229   :  { %6040 = sst [smem:[#allocation105_spill]] %s4814_s22  ;;  %v1597_v30 = vsel %vm4270_vm1, %v1595_v23, %v1596_v27 }
 0x22a   :  { %s6044_s25 = sld [smem:[#allocation39_spill]]  ;;  %v1598_v59 = vmul.f32 %v1597_v30, %v1592_v45 }
 0x22b   :  { %6041 = sst [smem:[#allocation106_spill]] %s4820_s27 }
 0x22c   :  { %s6045_s14 = sld [smem:[#allocation41_spill]]  ;;  %v1599_v3 = vadd.f32 %v1598_v59, %v1577_v15  ;;  %v1722_v15 = vstv %s4489_s30 }
 0x22d   :  { %s4824_s3 = sld [smem:[#allocation14 + $0x1180]]  ;;  %v1612_v50 = vstv %s6042_s28 }
 0x22e   :  { %s6047_s8 = sld [smem:[#allocation43_spill]]  ;;  %v1623_v48 = vstv %s6043_s7  ;;  %v1613_v33 = vadd.f32 %v1612_v50, %v1610_v20 }
 0x22f   :  { %s6048_s17 = sld [smem:[#allocation37_spill]]  ;;  %v1624_v38 = vmul.f32 %v1623_v48, %v4117_v6 }
 0x230   :  { %s4830_s20 = sld [smem:[#allocation14 + $0x1181]]  ;;  %v1626_v4 = vstv %s6044_s25  ;;  %v1614_v32 = vmax.f32 %v1613_v33, 0.0 }
 0x231   :  { %s4832_s27 = sld [smem:[#allocation12 + $0x24]]  ;;  %v1627_v17 = vmul.f32 %v1626_v4, %v4245_v60 }
 0x232   :  { %v1630_v21 = vstv %s6045_s14  ;;  %s6051_s22 = sld [smem:[#allocation47_spill]] }
 0x233   :  { %6046 = sst [smem:[#allocation107_spill]] %s4824_s3  ;;  %v1631_v7 = vmul.f32 %v1630_v21, %v4511_v26  ;;  %v1628_v54 = vadd.f32 %v1627_v17, %v1624_v38 }
 0x234   :  { %s4838_s3 = sld [smem:[#allocation12 + $0xa4]]  ;;  %v1617_v24 = vstv %s6047_s8 }
 0x235   :  { %s6052_s10 = sld [smem:[#allocation48_spill]]  ;;  %v1618_v8 = vstv %s6048_s17  ;;  %v1632_v11 = vadd.f32 %v1631_v7, %v1628_v54 }
 0x236   :  { %6049 = sst [smem:[#allocation108_spill]] %s4830_s20  ;;  %v1619_v44 = vsel %vm4270_vm1, %v1617_v24, %v1618_v8 }
 0x237   :  { %s6053_s19 = sld [smem:[#allocation49_spill]]  ;;  %v1620_v43 = vmul.f32 %v1619_v44, %v1614_v32 }
 0x238   :  { %s4842_s26 = sld [smem:[#allocation12 + $0x124]]  ;;  %v1645_v46 = vstv %s6051_s22 }
 0x239   :  { %s6055_s20 = sld [smem:[#allocation46_spill]]  ;;  %v1646_v22 = vmul.f32 %v1645_v46, %v4117_v6  ;;  %v1621_v27 = vadd.f32 %v1620_v43, %v1599_v3 }
 0x23a   :  { %6050 = sst [smem:[#allocation44_spill]] %s4838_s3 }
 0x23b   :  { %s4847_s28 = sld [smem:[#allocation13 + $0x24]]  ;;  %v1648_v39 = vstv %s6052_s10 }
 0x23c   :  { %s6057_s7 = sld [smem:[#allocation52_spill]]  ;;  %v1649_v36 = vmul.f32 %v1648_v39, %v4245_v60 }
 0x23d   :  { %s4851_s25 = sld [smem:[#allocation14 + $0x1200]]  ;;  %v1652_v16 = vstv %s6053_s19 }
 0x23e   :  { %6054 = sst [smem:[#allocation51_spill]] %s4842_s26  ;;  %v1653_v5 = vmul.f32 %v1652_v16, %v4511_v26  ;;  %v1650_v12 = vadd.f32 %v1649_v36, %v1646_v22  ;;  %v1733_v16 = vstv %s4519_s15  ;;  %v1736_v36 = vstv %s4529_s6 }
 0x23f   :  { %s6059_s14 = sld [smem:[#allocation53_spill]]  ;;  %v1634_v19 = vstv %s6055_s20 }
 0x240   :  { %s6060_s8 = sld [smem:[#allocation54_spill]]  ;;  %v1635_v0 = vadd.f32 %v1634_v19, %v1632_v11  ;;  %v1654_v35 = vadd.f32 %v1653_v5, %v1650_v12  ;;  %v1734_v11 = vmul.f32 %v1733_v16, %v4117_v6  ;;  %v1740_v5 = vstv %s4543_s11 }
 0x241   :  { %6056 = sst [smem:[#allocation78_spill]] %s4847_s28  ;;  %v1727_v12 = vstv %s4498_s16 }
 0x242   :  { %s4856_s17 = sld [smem:[#allocation14 + $0x1201]]  ;;  %v1639_v9 = vstv %s6057_s7  ;;  %v1636_v41 = vmax.f32 %v1635_v0, 0.0 }
 0x243   :  { %6058 = sst [smem:[#allocation109_spill]] %s4851_s25 }
 0x244   :  { %s6062_s28 = sld [smem:[#allocation50_spill]] }
 0x245   :  { %s6063_s26 = sld [smem:[#allocation55_spill]]  ;;  %v1640_v51 = vstv %s6059_s14 }
 0x246   :  { %s4863_s3 = sld [smem:[#allocation12 + $0x25]]  ;;  %v1667_v49 = vstv %s6060_s8  ;;  %v1641_v31 = vsel %vm4270_vm1, %v1639_v9, %v1640_v51  ;;  %v1737_v9 = vmul.f32 %v1736_v36, %v4245_v60  ;;  %v1821_v36 = vstv %s4714_s12 }
 0x247   :  { %s6065_s22 = sld [smem:[#allocation57_spill]]  ;;  %v1668_v37 = vmul.f32 %v1667_v49, %v4117_v6  ;;  %v1642_v21 = vmul.f32 %v1641_v31, %v1636_v41  ;;  %v1741_v49 = vmul.f32 %v1740_v5, %v4511_v26  ;;  %v1750_v41 = vstv %s4569_s18 }
 0x248   :  { %6061 = sst [smem:[#allocation110_spill]] %s4856_s17 }
 0x249   :  { %s4867_s10 = sld [smem:[#allocation12 + $0xa5]]  ;;  %v1643_v34 = vadd.f32 %v1642_v21, %v1621_v27 }
 0x24a   :  { %s6067_s19 = sld [smem:[#allocation56_spill]]  ;;  %v1656_v58 = vstv %s6062_s28 }
 0x24b   :  { %s4871_s20 = sld [smem:[#allocation12 + $0x125]]  ;;  %v1670_v2 = vstv %s6063_s26  ;;  %v1657_v14 = vadd.f32 %v1656_v58, %v1654_v35  ;;  %v1738_v58 = vadd.f32 %v1737_v9, %v1734_v11 }
 0x24c   :  { %6064 = sst [smem:[#allocation93_spill]] %s4863_s3  ;;  %v1671_v52 = vmul.f32 %v1670_v2, %v4245_v60  ;;  %v1755_v2 = vstv %s4579_s1 }
 0x24d   :  { %s6069_s17 = sld [smem:[#allocation59_spill]]  ;;  %v1674_v47 = vstv %s6065_s22  ;;  %v1658_v1 = vmax.f32 %v1657_v14, 0.0  ;;  %v1742_v3 = vadd.f32 %v1741_v49, %v1738_v58  ;;  %v1756_v31 = vmul.f32 %v1755_v2, %v4117_v6 }
 0x24e   :  { %s6070_s25 = sld [smem:[#allocation60_spill]]  ;;  %v1675_v29 = vmul.f32 %v1674_v47, %v4511_v26  ;;  %v1672_v28 = vadd.f32 %v1671_v52, %v1668_v37  ;;  %v1744_v52 = vstv %s4557_s9  ;;  %v1758_v47 = vstv %s4595_s24 }
 0x24f   :  { %6066 = sst [smem:[#allocation82_spill]] %s4867_s10  ;;  %v1745_v43 = vadd.f32 %v1744_v52, %v1742_v3 }
 0x250   :  { %s4875_s3 = sld [smem:[#allocation13 + $0x25]]  ;;  %v1661_v63 = vstv %s6067_s19  ;;  %v1676_v25 = vadd.f32 %v1675_v29, %v1672_v28  ;;  %v1762_v29 = vstv %s4597_s0  ;;  %v1749_v28 = vstv %s4563_s13 }
 0x251   :  { %6068 = sst [smem:[#allocation86_spill]] %s4871_s20  ;;  %v1746_v21 = vmax.f32 %v1745_v43, 0.0 }
 0x252   :  { %s6072_s7 = sld [smem:[#allocation58_spill]] }
 0x253   :  { %s6073_s14 = sld [smem:[#allocation61_spill]]  ;;  %v1662_v56 = vstv %s6069_s17 }
 0x254   :  { %s4880_s10 = sld [smem:[#allocation14 + $0x1280]]  ;;  %v1689_v55 = vstv %s6070_s25  ;;  %v1663_v13 = vsel %vm4270_vm1, %v1661_v63, %v1662_v56  ;;  %v1759_v63 = vmul.f32 %v1758_v47, %v4245_v60 }
 0x255   :  { %s6075_s28 = sld [smem:[#allocation63_spill]]  ;;  %v1690_v53 = vmul.f32 %v1689_v55, %v4117_v6  ;;  %v1664_v54 = vmul.f32 %v1663_v13, %v1658_v1  ;;  %v1763_v55 = vmul.f32 %v1762_v29, %v4511_v26 }
 0x256   :  { %6071 = sst [smem:[#allocation90_spill]] %s4875_s3 }
 0x257   :  { %s4886_s26 = sld [smem:[#allocation14 + $0x1281]]  ;;  %v1665_v59 = vadd.f32 %v1664_v54, %v1643_v34 }
 0x258   :  { %s6077_s8 = sld [smem:[#allocation65_spill]]  ;;  %v1678_v61 = vstv %s6072_s7 }
 0x259   :  { %s4890_s3 = sld [smem:[#allocation12 + $0x26]]  ;;  %v1692_v18 = vstv %s6073_s14  ;;  %v1679_v50 = vadd.f32 %v1678_v61, %v1676_v25  ;;  %v1760_v61 = vadd.f32 %v1759_v63, %v1756_v31 }
 0x25a   :  { %6074 = sst [smem:[#allocation94_spill]] %s4880_s10  ;;  %v1693_v57 = vmul.f32 %v1692_v18, %v4245_v60  ;;  %v1777_v18 = vstv %s4631_s21 }
 0x25b   :  { %s6079_s22 = sld [smem:[#allocation69_spill]]  ;;  %v1696_v23 = vstv %s6075_s28  ;;  %v1680_v46 = vmax.f32 %v1679_v50, 0.0  ;;  %v1764_v27 = vadd.f32 %v1763_v55, %v1760_v61  ;;  %v1778_v13 = vmul.f32 %v1777_v18, %v4117_v6 }
 0x25c   :  { %s4894_s10 = sld [smem:[#allocation12 + $0xa6]]  ;;  %v1697_v40 = vmul.f32 %v1696_v23, %v4511_v26  ;;  %v1694_v4 = vadd.f32 %v1693_v57, %v1690_v53  ;;  %v1766_v57 = vstv %s4608_s23  ;;  %v1780_v23 = vstv %s4645_s5 }
 0x25d   :  { %6076 = sst [smem:[#allocation111_spill]] %s4886_s26  ;;  %v1751_v50 = vsel %vm4270_vm1, %v1749_v28, %v1750_v41 }
 0x25e   :  { %s6081_s19 = sld [smem:[#allocation68_spill]]  ;;  %v1683_v42 = vstv %s6077_s8  ;;  %v1698_v62 = vadd.f32 %v1697_v40, %v1694_v4  ;;  %v1784_v40 = vstv %s4650_s4 }
 0x25f   :  { %6078 = sst [smem:[#allocation112_spill]] %s4890_s3  ;;  %v1785_v4 = vmul.f32 %v1784_v40, %v4511_v26 }
 0x260   :  { %s6082_s26 = sld [smem:[#allocation71_spill]] }
 0x261   :  { %s6083_s17 = sld [smem:[#allocation72_spill]]  ;;  %v1684_v48 = vstv %s6079_s22 }
 0x262   :  { %6080 = sst [smem:[#allocation45_spill]] %s4894_s10  ;;  %v1685_v39 = vsel %vm4270_vm1, %v1683_v42, %v1684_v48  ;;  %v1781_v42 = vmul.f32 %v1780_v23, %v4245_v60  ;;  %v1771_v48 = vstv %s4613_s29 }
 0x263   :  { %s4899_s20 = sld [smem:[#allocation12 + $0x126]]  ;;  %v1686_v32 = vmul.f32 %v1685_v39, %v1680_v46 }
 0x264   :  { %s6084_s25 = sld [smem:[#allocation64_spill]]  ;;  %v1711_v20 = vstv %s6081_s19 }
 0x265   :  { %s6085_s7 = sld [smem:[#allocation62_spill]]  ;;  %v1712_v45 = vmul.f32 %v1711_v20, %v4117_v6  ;;  %v1687_v14 = vadd.f32 %v1686_v32, %v1665_v59  ;;  %v1767_v20 = vadd.f32 %v1766_v57, %v1764_v27 }
 0x266   :  { %s6086_s14 = sld [smem:[#allocation67_spill]]  ;;  %v1714_v24 = vstv %s6082_s26 }
 0x267   :  { %s4905_s10 = sld [smem:[#allocation13 + $0x26]]  ;;  %v1718_v8 = vstv %s6083_s17  ;;  %v1715_v30 = vmul.f32 %v1714_v24, %v4245_v60  ;;  %v1772_v24 = vstv %s4619_s2 }
 0x268   :  { %s4908_s3 = sld [smem:[#allocation14 + $0x1300]]  ;;  %v1719_v33 = vmul.f32 %v1718_v8, %v4511_v26  ;;  %v1782_v8 = vadd.f32 %v1781_v42, %v1778_v13 }
 0x269   :  { %s4913_s28 = sld [smem:[#allocation14 + $0x1301]]  ;;  %v1716_v22 = vadd.f32 %v1715_v30, %v1712_v45 }
 0x26a   :  { %v1700_v38 = vstv %s6084_s25  ;;  %s4918_s8 = sld [smem:[#allocation12 + $0x27]]  ;;  %v1786_v34 = vadd.f32 %v1785_v4, %v1782_v8 }
 0x26b   :  { %v1705_v17 = vstv %s6085_s7  ;;  %s4923_s26 = sld [smem:[#allocation12 + $0xa7]]  ;;  %v1701_v44 = vadd.f32 %v1700_v38, %v1698_v62  ;;  %v1720_v51 = vadd.f32 %v1719_v33, %v1716_v22  ;;  %v1773_v22 = vsel %vm4270_vm1, %v1771_v48, %v1772_v24 }
 0x26c   :  { %v1706_v7 = vstv %s6086_s14  ;;  %s4928_s22 = sld [smem:[#allocation12 + $0x127]] }
 0x26d   :  { %s6087_s19 = sld [smem:[#allocation66_spill]]  ;;  %v1707_v19 = vsel %vm4270_vm1, %v1705_v17, %v1706_v7  ;;  %v1702_v35 = vmax.f32 %v1701_v44, 0.0  ;;  %v1723_v37 = vadd.f32 %v1722_v15, %v1720_v51  ;;  %v1752_v44 = vmul.f32 %v1751_v50, %v1746_v21 }
 0x26e   :  { %s4933_s17 = sld [smem:[#allocation13 + $0x27]]  ;;  %v1822_v51 = vmul.f32 %v1821_v36, %v4117_v6 }
 0x26f   :  { %s4939_s15 = sld [smem:[#allocation14 + $0x1380]]  ;;  %v1708_v25 = vmul.f32 %v1707_v19, %v1702_v35  ;;  %v1724_v53 = vmax.f32 %v1723_v37, 0.0  ;;  %v1768_v19 = vmax.f32 %v1767_v20, 0.0 }
 0x270   :  { %s4943_s25 = sld [smem:[#allocation14 + $0x1381]] }
 0x271   :  { %s4947_s30 = sld [smem:[#allocation12 + $0x28]]  ;;  %v1709_v1 = vadd.f32 %v1708_v25, %v1687_v14  ;;  %v1774_v35 = vmul.f32 %v1773_v22, %v1768_v19 }
 0x272   :  { %s4951_s11 = sld [smem:[#allocation12 + $0xa8]] }
 0x273   :  { %v1728_v0 = vstv %s6087_s19  ;;  %s4956_s16 = sld [smem:[#allocation12 + $0x128]] }
 0x274   :  { %v1729_v56 = vsel %vm4270_vm1, %v1727_v12, %v1728_v0  ;;  %s4962_s6 = sld [smem:[#allocation13 + $0x28]] }
 0x275   :  { %s4966_s9 = sld [smem:[#allocation14 + $0x1400]]  ;;  %v1730_v62 = vmul.f32 %v1729_v56, %v1724_v53 }
 0x276   :  { %s4970_s1 = sld [smem:[#allocation14 + $0x1401]] }
 0x277   :  { %s6089_s13 = sld [smem:[#allocation73_spill]]  ;;  %v1731_v54 = vadd.f32 %v1730_v62, %v1709_v1 }
 0x278   :  { %s6090_s24 = sld [smem:[#allocation79_spill]] }
 0x279   :  { %s6091_s18 = sld [smem:[#allocation80_spill]]  ;;  %v1753_v32 = vadd.f32 %v1752_v44, %v1731_v54 }
 0x27a   :  { %s4975_s0 = sld [smem:[#allocation12 + $0x29]] }
 0x27b   :  { %s6092_s21 = sld [smem:[#allocation70_spill]]  ;;  %v1775_v43 = vadd.f32 %v1774_v35, %v1753_v32 }
 0x27c   :  { %6088 = sst [smem:[#allocation113_spill]] %s4970_s1 }
 0x27d   :  { %s6093_s23 = sld [smem:[#allocation75_spill]]  ;;  %v1799_v38 = vstv %s6089_s13 }
 0x27e   :  { %s6094_s5 = sld [smem:[#allocation76_spill]]  ;;  %v1802_v17 = vstv %s6090_s24  ;;  %v1800_v46 = vmul.f32 %v1799_v38, %v4117_v6 }
 0x27f   :  { %s4981_s7 = sld [smem:[#allocation12 + $0xa9]]  ;;  %v1806_v7 = vstv %s6091_s18  ;;  %v1803_v39 = vmul.f32 %v1802_v17, %v4245_v60 }
 0x280   :  { %s4984_s14 = sld [smem:[#allocation12 + $0x129]]  ;;  %v1807_v16 = vmul.f32 %v1806_v7, %v4511_v26 }
 0x281   :  { %s4989_s4 = sld [smem:[#allocation13 + $0x29]]  ;;  %v1788_v45 = vstv %s6092_s21  ;;  %v1804_v9 = vadd.f32 %v1803_v39, %v1800_v46 }
 0x282   :  { %s6096_s29 = sld [smem:[#allocation84_spill]]  ;;  %v1789_v15 = vadd.f32 %v1788_v45, %v1786_v34 }
 0x283   :  { %v1793_v30 = vstv %s6093_s23  ;;  %s4994_s19 = sld [smem:[#allocation14 + $0x1480]]  ;;  %v1808_v0 = vadd.f32 %v1807_v16, %v1804_v9 }
 0x284   :  { %v1794_v33 = vstv %s6094_s5  ;;  %s6098_s1 = sld [smem:[#allocation74_spill]]  ;;  %v1790_v3 = vmax.f32 %v1789_v15, 0.0 }
 0x285   :  { %s6099_s2 = sld [smem:[#allocation81_spill]]  ;;  %v1795_v11 = vsel %vm4270_vm1, %v1793_v30, %v1794_v33 }
 0x286   :  { %s4999_s13 = sld [smem:[#allocation14 + $0x1481]]  ;;  %v1796_v27 = vmul.f32 %v1795_v11, %v1790_v3 }
 0x287   :  { %6095 = sst [smem:[#allocation114_spill]] %s4989_s4 }
 0x288   :  { %s6101_s24 = sld [smem:[#allocation77_spill]]  ;;  %v1824_v5 = vstv %s6096_s29  ;;  %v1797_v21 = vadd.f32 %v1796_v27, %v1775_v43 }
 0x289   :  { %6097 = sst [smem:[#allocation117_spill]] %s4994_s19  ;;  %v1825_v12 = vmul.f32 %v1824_v5, %v4245_v60  ;;  %v1909_v5 = vstv %s4832_s27 }
 0x28a   :  { %s5004_s18 = sld [smem:[#allocation12 + $0x2a]]  ;;  %v1810_v59 = vstv %s6098_s1 }
 0x28b   :  { %s6103_s21 = sld [smem:[#allocation83_spill]]  ;;  %v1828_v49 = vstv %s6099_s2  ;;  %v1826_v52 = vadd.f32 %v1825_v12, %v1822_v51  ;;  %v1811_v31 = vadd.f32 %v1810_v59, %v1808_v0  ;;  %v1910_v0 = vmul.f32 %v1909_v5, %v4117_v6 }
 0x28c   :  { %6100 = sst [smem:[#allocation118_spill]] %s4999_s13  ;;  %v1829_v2 = vmul.f32 %v1828_v49, %v4511_v26 }
 0x28d   :  { %s6104_s23 = sld [smem:[#allocation91_spill]]  ;;  %v1812_v13 = vmax.f32 %v1811_v31, 0.0 }
 0x28e   :  { %s5009_s5 = sld [smem:[#allocation12 + $0xaa]]  ;;  %v1815_v58 = vstv %s6101_s24  ;;  %v1830_v14 = vadd.f32 %v1829_v2, %v1826_v52 }
 0x28f   :  { %s6106_s13 = sld [smem:[#allocation87_spill]] }
 0x290   :  { %6102 = sst [smem:[#allocation115_spill]] %s5004_s18 }
 0x291   :  { %s6107_s19 = sld [smem:[#allocation92_spill]]  ;;  %v1816_v37 = vstv %s6103_s21 }
 0x292   :  { %s5015_s12 = sld [smem:[#allocation12 + $0x12a]]  ;;  %v1817_v41 = vsel %vm4270_vm1, %v1815_v58, %v1816_v37 }
 0x293   :  { %s6109_s4 = sld [smem:[#allocation89_spill]]  ;;  %v1843_v47 = vstv %s6104_s23  ;;  %v1818_v34 = vmul.f32 %v1817_v41, %v1812_v13 }
 0x294   :  { %6105 = sst [smem:[#allocation116_spill]] %s5009_s5  ;;  %v1844_v56 = vmul.f32 %v1843_v47, %v4117_v6 }
 0x295   :  { %s5019_s18 = sld [smem:[#allocation13 + $0x2a]]  ;;  %v1832_v63 = vstv %s6106_s13  ;;  %v1819_v44 = vadd.f32 %v1818_v34, %v1797_v21 }
 0x296   :  { %s6111_s1 = sld [smem:[#allocation88_spill]]  ;;  %v1833_v25 = vadd.f32 %v1832_v63, %v1830_v14 }
 0x297   :  { %s5023_s29 = sld [smem:[#allocation14 + $0x1500]]  ;;  %v1846_v29 = vstv %s6107_s19 }
 0x298   :  { %6108 = sst [smem:[#allocation122_spill]] %s5015_s12  ;;  %v1847_v28 = vmul.f32 %v1846_v29, %v4245_v60  ;;  %v1834_v62 = vmax.f32 %v1833_v25, 0.0 }
 0x299   :  { %s6113_s5 = sld [smem:[#allocation85_spill]]  ;;  %v1850_v55 = vstv %s6109_s4 }
 0x29a   :  { %s6114_s2 = sld [smem:[#allocation100_spill]]  ;;  %v1851_v18 = vmul.f32 %v1850_v55, %v4511_v26  ;;  %v1848_v57 = vadd.f32 %v1847_v28, %v1844_v56 }
 0x29b   :  { %6110 = sst [smem:[#allocation119_spill]] %s5019_s18 }
 0x29c   :  { %s5027_s12 = sld [smem:[#allocation14 + $0x1501]]  ;;  %v1837_v61 = vstv %s6111_s1  ;;  %v1852_v1 = vadd.f32 %v1851_v18, %v1848_v57 }
 0x29d   :  { %6112 = sst [smem:[#allocation120_spill]] %s5023_s29 }
 0x29e   :  { %s6116_s24 = sld [smem:[#allocation95_spill]] }
 0x29f   :  { %s6117_s21 = sld [smem:[#allocation97_spill]]  ;;  %v1838_v53 = vstv %s6113_s5 }
 0x2a0   :  { %s5032_s18 = sld [smem:[#allocation12 + $0x2b]]  ;;  %v1865_v23 = vstv %s6114_s2  ;;  %v1839_v20 = vsel %vm4270_vm1, %v1837_v61, %v1838_v53 }
 0x2a1   :  { %s6119_s13 = sld [smem:[#allocation103_spill]]  ;;  %v1866_v50 = vmul.f32 %v1865_v23, %v4117_v6  ;;  %v1840_v15 = vmul.f32 %v1839_v20, %v1834_v62 }
 0x2a2   :  { %6115 = sst [smem:[#allocation121_spill]] %s5027_s12 }
 0x2a3   :  { %s5038_s19 = sld [smem:[#allocation12 + $0xab]]  ;;  %v1841_v35 = vadd.f32 %v1840_v15, %v1819_v44 }
 0x2a4   :  { %s6121_s23 = sld [smem:[#allocation96_spill]]  ;;  %v1854_v42 = vstv %s6116_s24 }
 0x2a5   :  { %s5042_s12 = sld [smem:[#allocation12 + $0x12b]]  ;;  %v1868_v40 = vstv %s6117_s21  ;;  %v1855_v38 = vadd.f32 %v1854_v42, %v1852_v1 }
 0x2a6   :  { %6118 = sst [smem:[#allocation123_spill]] %s5032_s18  ;;  %v1869_v48 = vmul.f32 %v1868_v40, %v4245_v60 }
 0x2a7   :  { %s6123_s4 = sld [smem:[#allocation99_spill]]  ;;  %v1872_v4 = vstv %s6119_s13  ;;  %v1856_v11 = vmax.f32 %v1855_v38, 0.0 }
 0x2a8   :  { %s5046_s29 = sld [smem:[#allocation13 + $0x2b]]  ;;  %v1873_v8 = vmul.f32 %v1872_v4, %v4511_v26  ;;  %v1870_v7 = vadd.f32 %v1869_v48, %v1866_v50 }
 0x2a9   :  { %6120 = sst [smem:[#allocation124_spill]] %s5038_s19 }
 0x2aa   :  { %s6125_s1 = sld [smem:[#allocation101_spill]]  ;;  %v1859_v24 = vstv %s6121_s23  ;;  %v1874_v54 = vadd.f32 %v1873_v8, %v1870_v7  ;;  %v1960_v8 = vstv %s4899_s20 }
 0x2ab   :  { %6122 = sst [smem:[#allocation127_spill]] %s5042_s12  ;;  %v1961_v7 = vmul.f32 %v1960_v8, %v4511_v26 }
 0x2ac   :  { %s6126_s19 = sld [smem:[#allocation102_spill]] }
 0x2ad   :  { %s6127_s5 = sld [smem:[#allocation105_spill]]  ;;  %v1860_v17 = vstv %s6123_s4 }
 0x2ae   :  { %6124 = sst [smem:[#allocation128_spill]] %s5046_s29  ;;  %v1861_v9 = vsel %vm4270_vm1, %v1859_v24, %v1860_v17 }
 0x2af   :  { %s5051_s18 = sld [smem:[#allocation14 + $0x1580]]  ;;  %v1862_v3 = vmul.f32 %v1861_v9, %v1856_v11 }
 0x2b0   :  { %s6129_s2 = sld [smem:[#allocation104_spill]]  ;;  %v1887_v45 = vstv %s6125_s1 }
 0x2b1   :  { %s6130_s24 = sld [smem:[#allocation98_spill]]  ;;  %v1888_v19 = vmul.f32 %v1887_v45, %v4117_v6  ;;  %v1863_v25 = vadd.f32 %v1862_v3, %v1841_v35  ;;  %v1986_v35 = vstv %s4933_s17 }
 0x2b2   :  { %s6131_s21 = sld [smem:[#allocation42_spill]]  ;;  %v1890_v30 = vstv %s6126_s19 }
 0x2b3   :  { %s5057_s29 = sld [smem:[#allocation14 + $0x1581]]  ;;  %v1894_v33 = vstv %s6127_s5  ;;  %v1891_v22 = vmul.f32 %v1890_v30, %v4245_v60 }
 0x2b4   :  { %s5060_s12 = sld [smem:[#allocation12 + $0x2c]]  ;;  %v1895_v36 = vmul.f32 %v1894_v33, %v4511_v26 }
 0x2b5   :  { %6128 = sst [smem:[#allocation125_spill]] %s5051_s18  ;;  %v1892_v12 = vadd.f32 %v1891_v22, %v1888_v19  ;;  %v1964_v19 = vstv %s4905_s10  ;;  %v1969_v22 = vstv %s4908_s3 }
 0x2b6   :  { %s5065_s13 = sld [smem:[#allocation12 + $0xac]]  ;;  %v1876_v46 = vstv %s6129_s2 }
 0x2b7   :  { %v1881_v39 = vstv %s6130_s24  ;;  %s6134_s23 = sld [smem:[#allocation44_spill]]  ;;  %v1877_v59 = vadd.f32 %v1876_v46, %v1874_v54  ;;  %v1896_v37 = vadd.f32 %v1895_v36, %v1892_v12  ;;  %v1975_v46 = vstv %s4918_s8 }
 0x2b8   :  { %v1882_v16 = vstv %s6131_s21  ;;  %s5070_s18 = sld [smem:[#allocation12 + $0x12c]]  ;;  %v1970_v36 = vstv %s4913_s28  ;;  %v1976_v11 = vmul.f32 %v1975_v46, %v4117_v6 }
 0x2b9   :  { %6132 = sst [smem:[#allocation126_spill]] %s5057_s29  ;;  %v1883_v51 = vsel %vm4270_vm1, %v1881_v39, %v1882_v16  ;;  %v1878_v14 = vmax.f32 %v1877_v59, 0.0  ;;  %v1978_v39 = vstv %s4923_s26  ;;  %v1982_v16 = vstv %s4928_s22 }
 0x2ba   :  { %s6136_s29 = sld [smem:[#allocation106_spill]]  ;;  %v1979_v9 = vmul.f32 %v1978_v39, %v4245_v60  ;;  %v1983_v5 = vmul.f32 %v1982_v16, %v4511_v26 }
 0x2bb   :  { %s6137_s4 = sld [smem:[#allocation51_spill]]  ;;  %v1884_v1 = vmul.f32 %v1883_v51, %v1878_v14 }
 0x2bc   :  { %6133 = sst [smem:[#allocation132_spill]] %s5065_s13 }
 0x2bd   :  { %s5075_s19 = sld [smem:[#allocation13 + $0x2c]]  ;;  %v1912_v49 = vstv %s6134_s23  ;;  %v1885_v62 = vadd.f32 %v1884_v1, %v1863_v25 }
 0x2be   :  { %6135 = sst [smem:[#allocation129_spill]] %s5070_s18  ;;  %v1913_v58 = vmul.f32 %v1912_v49, %v4245_v60  ;;  %v1997_v49 = vstv %s4947_s30 }
 0x2bf   :  { %s6139_s1 = sld [smem:[#allocation107_spill]] }
 0x2c0   :  { %s5080_s5 = sld [smem:[#allocation14 + $0x1600]]  ;;  %v1898_v32 = vstv %s6136_s29  ;;  %v1914_v63 = vadd.f32 %v1913_v58, %v1910_v0  ;;  %v1971_v0 = vsel %vm4270_vm1, %v1969_v22, %v1970_v36  ;;  %v1980_v58 = vadd.f32 %v1979_v9, %v1976_v11 }
 0x2c1   :  { %s6141_s2 = sld [smem:[#allocation108_spill]]  ;;  %v1916_v2 = vstv %s6137_s4  ;;  %v1899_v56 = vadd.f32 %v1898_v32, %v1896_v37  ;;  %v1998_v37 = vmul.f32 %v1997_v49, %v4117_v6 }
 0x2c2   :  { %s6142_s24 = sld [smem:[#allocation93_spill]]  ;;  %v1917_v47 = vmul.f32 %v1916_v2, %v4511_v26  ;;  %v2000_v2 = vstv %s4951_s11 }
 0x2c3   :  { %6138 = sst [smem:[#allocation130_spill]] %s5075_s19  ;;  %v1900_v50 = vmax.f32 %v1899_v56, 0.0  ;;  %v1992_v56 = vstv %s4943_s25 }
 0x2c4   :  { %s5085_s21 = sld [smem:[#allocation14 + $0x1601]]  ;;  %v1918_v43 = vadd.f32 %v1917_v47, %v1914_v63  ;;  %v2004_v47 = vstv %s4956_s16  ;;  %v1991_v63 = vstv %s4939_s15 }
 0x2c5   :  { %s6144_s19 = sld [smem:[#allocation78_spill]]  ;;  %v1903_v52 = vstv %s6139_s1 }
 0x2c6   :  { %6140 = sst [smem:[#allocation131_spill]] %s5080_s5 }
 0x2c7   :  { %s6145_s18 = sld [smem:[#allocation82_spill]]  ;;  %v1904_v31 = vstv %s6141_s2 }
 0x2c8   :  { %s5091_s27 = sld [smem:[#allocation12 + $0x2d]]  ;;  %v1931_v29 = vstv %s6142_s24  ;;  %v1905_v53 = vsel %vm4270_vm1, %v1903_v52, %v1904_v31  ;;  %v2001_v52 = vmul.f32 %v2000_v2, %v4245_v60  ;;  %v1984_v31 = vadd.f32 %v1983_v5, %v1980_v58 }
 0x2c9   :  { %s6147_s5 = sld [smem:[#allocation86_spill]]  ;;  %v1932_v41 = vmul.f32 %v1931_v29, %v4117_v6  ;;  %v1906_v54 = vmul.f32 %v1905_v53, %v1900_v50  ;;  %v2005_v29 = vmul.f32 %v2004_v47, %v4511_v26  ;;  %v2085_v2 = vstv %s5060_s12 }
 0x2ca   :  { %6143 = sst [smem:[#allocation133_spill]] %s5085_s21 }
 0x2cb   :  { %s5095_s13 = sld [smem:[#allocation12 + $0xad]]  ;;  %v1920_v28 = vstv %s6144_s19  ;;  %v1907_v15 = vadd.f32 %v1906_v54, %v1885_v62 }
 0x2cc   :  { %s6149_s29 = sld [smem:[#allocation109_spill]]  ;;  %v1921_v27 = vadd.f32 %v1920_v28, %v1918_v43  ;;  %v2002_v28 = vadd.f32 %v2001_v52, %v1998_v37 }
 0x2cd   :  { %s5099_s23 = sld [smem:[#allocation12 + $0x12d]]  ;;  %v1934_v55 = vstv %s6145_s18 }
 0x2ce   :  { %6146 = sst [smem:[#allocation137_spill]] %s5091_s27  ;;  %v1935_v61 = vmul.f32 %v1934_v55, %v4245_v60  ;;  %v1922_v34 = vmax.f32 %v1921_v27, 0.0  ;;  %v2019_v55 = vstv %s4975_s0  ;;  %v2006_v25 = vadd.f32 %v2005_v29, %v2002_v28 }
 0x2cf   :  { %s6150_s21 = sld [smem:[#allocation110_spill]]  ;;  %v1938_v18 = vstv %s6147_s5  ;;  %v2020_v53 = vmul.f32 %v2019_v55, %v4117_v6 }
 0x2d0   :  { %s6151_s4 = sld [smem:[#allocation112_spill]]  ;;  %v1939_v23 = vmul.f32 %v1938_v18, %v4511_v26  ;;  %v1936_v42 = vadd.f32 %v1935_v61, %v1932_v41  ;;  %v1987_v41 = vadd.f32 %v1986_v35, %v1984_v31  ;;  %v2008_v61 = vstv %s4962_s6 }
 0x2d1   :  { %6148 = sst [smem:[#allocation134_spill]] %s5095_s13  ;;  %v2022_v18 = vstv %s4981_s7  ;;  %v2009_v1 = vadd.f32 %v2008_v61, %v2006_v25  ;;  %v2086_v31 = vmul.f32 %v2085_v2, %v4117_v6 }
 0x2d2   :  { %s5103_s27 = sld [smem:[#allocation13 + $0x2d]]  ;;  %v1925_v57 = vstv %s6149_s29  ;;  %v1940_v21 = vadd.f32 %v1939_v23, %v1936_v42  ;;  %v2026_v23 = vstv %s4984_s14  ;;  %v2013_v42 = vstv %s4966_s9 }
 0x2d3   :  { %s6152_s1 = sld [smem:[#allocation90_spill]]  ;;  %v2010_v54 = vmax.f32 %v2009_v1, 0.0 }
 0x2d4   :  { %s6153_s2 = sld [smem:[#allocation45_spill]] }
 0x2d5   :  { %s5108_s13 = sld [smem:[#allocation14 + $0x1680]]  ;;  %v1926_v13 = vstv %s6150_s21 }
 0x2d6   :  { %s5114_s18 = sld [smem:[#allocation14 + $0x1681]]  ;;  %v1953_v40 = vstv %s6151_s4  ;;  %v1927_v38 = vsel %vm4270_vm1, %v1925_v57, %v1926_v13  ;;  %v2023_v57 = vmul.f32 %v2022_v18, %v4245_v60  ;;  %v1993_v13 = vsel %vm4270_vm1, %v1991_v63, %v1992_v56 }
 0x2d7   :  { %s6155_s19 = sld [smem:[#allocation94_spill]]  ;;  %v1954_v20 = vmul.f32 %v1953_v40, %v4117_v6  ;;  %v1928_v59 = vmul.f32 %v1927_v38, %v1922_v34  ;;  %v2027_v40 = vmul.f32 %v2026_v23, %v4511_v26 }
 0x2d8   :  { %s5118_s24 = sld [smem:[#allocation12 + $0x2e]] }
 0x2d9   :  { %s6156_s5 = sld [smem:[#allocation111_spill]]  ;;  %v1942_v48 = vstv %s6152_s1  ;;  %v1929_v3 = vadd.f32 %v1928_v59, %v1907_v15 }
 0x2da   :  { %v1956_v4 = vstv %s6153_s2  ;;  %s5127_s21 = sld [smem:[#allocation12 + $0x12e]]  ;;  %v1943_v45 = vadd.f32 %v1942_v48, %v1940_v21  ;;  %v2024_v48 = vadd.f32 %v2023_v57, %v2020_v53 }
 0x2db   :  { %6154 = sst [smem:[#allocation30_spill]] %s5108_s13  ;;  %v1957_v24 = vmul.f32 %v1956_v4, %v4245_v60 }
 0x2dc   :  { %s5122_s13 = sld [smem:[#allocation12 + $0xae]]  ;;  %v1944_v51 = vmax.f32 %v1943_v45, 0.0  ;;  %v2028_v62 = vadd.f32 %v2027_v40, %v2024_v48  ;;  %v2114_v40 = vstv %s5099_s23 }
 0x2dd   :  { %v1947_v17 = vstv %s6155_s19  ;;  %s5133_s29 = sld [smem:[#allocation13 + $0x2e]]  ;;  %v1958_v33 = vadd.f32 %v1957_v24, %v1954_v20  ;;  %v1988_v20 = vmax.f32 %v1987_v41, 0.0 }
 0x2de   :  { %s5136_s4 = sld [smem:[#allocation14 + $0x1700]] }
 0x2df   :  { %v1948_v30 = vstv %s6156_s5  ;;  %s5141_s20 = sld [smem:[#allocation14 + $0x1701]]  ;;  %v1962_v44 = vadd.f32 %v1961_v7, %v1958_v33 }
 0x2e0   :  { %s5146_s1 = sld [smem:[#allocation12 + $0x2f]]  ;;  %v1949_v12 = vsel %vm4270_vm1, %v1947_v17, %v1948_v30 }
 0x2e1   :  { %s5151_s8 = sld [smem:[#allocation12 + $0xaf]]  ;;  %v1965_v32 = vadd.f32 %v1964_v19, %v1962_v44  ;;  %v1950_v14 = vmul.f32 %v1949_v12, %v1944_v51  ;;  %v1994_v44 = vmul.f32 %v1993_v13, %v1988_v20 }
 0x2e2   :  { %s5156_s3 = sld [smem:[#allocation12 + $0x12f]] }
 0x2e3   :  { %s5161_s10 = sld [smem:[#allocation13 + $0x2f]]  ;;  %v1966_v43 = vmax.f32 %v1965_v32, 0.0  ;;  %v1951_v27 = vadd.f32 %v1950_v14, %v1929_v3 }
 0x2e4   :  { %s5167_s28 = sld [smem:[#allocation14 + $0x1780]] }
 0x2e5   :  { %s5171_s26 = sld [smem:[#allocation14 + $0x1781]]  ;;  %v1972_v21 = vmul.f32 %v1971_v0, %v1966_v43 }
 0x2e6   :  { %s5175_s22 = sld [smem:[#allocation12 + $0x30]] }
 0x2e7   :  { %s6157_s17 = sld [smem:[#allocation113_spill]]  ;;  %v1973_v34 = vadd.f32 %v1972_v21, %v1951_v27 }
 0x2e8   :  { %s6158_s30 = sld [smem:[#allocation115_spill]] }
 0x2e9   :  { %s5179_s11 = sld [smem:[#allocation12 + $0xb0]]  ;;  %v1995_v59 = vadd.f32 %v1994_v44, %v1973_v34 }
 0x2ea   :  { %s6159_s15 = sld [smem:[#allocation114_spill]] }
 0x2eb   :  { %s6160_s25 = sld [smem:[#allocation116_spill]] }
 0x2ec   :  { %s5184_s16 = sld [smem:[#allocation12 + $0x130]] }
 0x2ed   :  { %s6161_s6 = sld [smem:[#allocation122_spill]]  ;;  %v2014_v50 = vstv %s6157_s17 }
 0x2ee   :  { %s5190_s0 = sld [smem:[#allocation13 + $0x30]]  ;;  %v2041_v4 = vstv %s6158_s30  ;;  %v2015_v45 = vsel %vm4270_vm1, %v2013_v42, %v2014_v50 }
 0x2ef   :  { %s6163_s7 = sld [smem:[#allocation117_spill]]  ;;  %v2042_v38 = vmul.f32 %v2041_v4, %v4117_v6  ;;  %v2016_v32 = vmul.f32 %v2015_v45, %v2010_v54  ;;  %v2115_v4 = vmul.f32 %v2114_v40, %v4511_v26 }
 0x2f0   :  { %s5194_s2 = sld [smem:[#allocation14 + $0x1800]]  ;;  %v2030_v24 = vstv %s6159_s15 }
 0x2f1   :  { %s6165_s14 = sld [smem:[#allocation118_spill]]  ;;  %v2044_v8 = vstv %s6160_s25  ;;  %v2031_v46 = vadd.f32 %v2030_v24, %v2028_v62  ;;  %v2017_v14 = vadd.f32 %v2016_v32, %v1995_v59 }
 0x2f2   :  { %s5198_s19 = sld [smem:[#allocation14 + $0x1801]]  ;;  %v2045_v17 = vmul.f32 %v2044_v8, %v4245_v60  ;;  %v2129_v8 = vstv %s5118_s24 }
 0x2f3   :  { %s6167_s9 = sld [smem:[#allocation123_spill]]  ;;  %v2048_v7 = vstv %s6161_s6  ;;  %v2032_v0 = vmax.f32 %v2031_v46, 0.0  ;;  %v2130_v45 = vmul.f32 %v2129_v8, %v4117_v6 }
 0x2f4   :  { %6162 = sst [smem:[#allocation31_spill]] %s5190_s0  ;;  %v2049_v33 = vmul.f32 %v2048_v7, %v4511_v26  ;;  %v2046_v16 = vadd.f32 %v2045_v17, %v2042_v38  ;;  %v2118_v17 = vstv %s5103_s27  ;;  %v2132_v7 = vstv %s5122_s13 }
 0x2f5   :  { %s6168_s5 = sld [smem:[#allocation124_spill]]  ;;  %v2035_v30 = vstv %s6163_s7 }
 0x2f6   :  { %6164 = sst [smem:[#allocation135_spill]] %s5194_s2  ;;  %v2050_v15 = vadd.f32 %v2049_v33, %v2046_v16  ;;  %v2136_v33 = vstv %s5127_s21 }
 0x2f7   :  { %s6169_s17 = sld [smem:[#allocation127_spill]]  ;;  %v2036_v39 = vstv %s6165_s14  ;;  %v2137_v16 = vmul.f32 %v2136_v33, %v4511_v26 }
 0x2f8   :  { %6166 = sst [smem:[#allocation34_spill]] %s5198_s19  ;;  %v2037_v58 = vsel %vm4270_vm1, %v2035_v30, %v2036_v39  ;;  %v2133_v30 = vmul.f32 %v2132_v7, %v4245_v60 }
 0x2f9   :  { %s5203_s0 = sld [smem:[#allocation12 + $0x31]]  ;;  %v2063_v19 = vstv %s6167_s9  ;;  %v2038_v43 = vmul.f32 %v2037_v58, %v2032_v0 }
 0x2fa   :  { %s6171_s30 = sld [smem:[#allocation119_spill]]  ;;  %v2064_v51 = vmul.f32 %v2063_v19, %v4117_v6 }
 0x2fb   :  { %s6172_s15 = sld [smem:[#allocation120_spill]]  ;;  %v2066_v22 = vstv %s6168_s5  ;;  %v2039_v1 = vadd.f32 %v2038_v43, %v2017_v14  ;;  %v2162_v14 = vstv %s5161_s10 }
 0x2fc   :  { %s6173_s25 = sld [smem:[#allocation121_spill]]  ;;  %v2067_v12 = vmul.f32 %v2066_v22, %v4245_v60  ;;  %v2124_v22 = vstv %s5114_s18 }
 0x2fd   :  { %s5209_s19 = sld [smem:[#allocation12 + $0xb1]]  ;;  %v2070_v36 = vstv %s6169_s17 }
 0x2fe   :  { %s5212_s2 = sld [smem:[#allocation12 + $0x131]]  ;;  %v2071_v49 = vmul.f32 %v2070_v36, %v4511_v26  ;;  %v2068_v52 = vadd.f32 %v2067_v12, %v2064_v51  ;;  %v2134_v36 = vadd.f32 %v2133_v30, %v2130_v45  ;;  %v2140_v51 = vstv %s5133_s29 }
 0x2ff   :  { %6170 = sst [smem:[#allocation136_spill]] %s5203_s0  ;;  %v2145_v12 = vstv %s5136_s4 }
 0x300   :  { %s5217_s6 = sld [smem:[#allocation13 + $0x31]]  ;;  %v2052_v11 = vstv %s6171_s30  ;;  %v2072_v56 = vadd.f32 %v2071_v49, %v2068_v52  ;;  %v2138_v59 = vadd.f32 %v2137_v16, %v2134_v36  ;;  %v2146_v49 = vstv %s5141_s20 }
 0x301   :  { %v2057_v9 = vstv %s6172_s15  ;;  %s6176_s7 = sld [smem:[#allocation132_spill]]  ;;  %v2053_v35 = vadd.f32 %v2052_v11, %v2050_v15  ;;  %v2151_v11 = vstv %s5146_s1 }
 0x302   :  { %v2058_v5 = vstv %s6173_s25  ;;  %s5222_s0 = sld [smem:[#allocation14 + $0x1880]]  ;;  %v2152_v0 = vmul.f32 %v2151_v11, %v4117_v6 }
 0x303   :  { %6174 = sst [smem:[#allocation138_spill]] %s5209_s19  ;;  %v2059_v37 = vsel %vm4270_vm1, %v2057_v9, %v2058_v5  ;;  %v2054_v25 = vmax.f32 %v2053_v35, 0.0  ;;  %v2154_v9 = vstv %s5151_s8  ;;  %v2158_v5 = vstv %s5156_s3 }
 0x304   :  { %s6178_s19 = sld [smem:[#allocation128_spill]]  ;;  %v2155_v58 = vmul.f32 %v2154_v9, %v4245_v60  ;;  %v2159_v2 = vmul.f32 %v2158_v5, %v4511_v26 }
 0x305   :  { %s6179_s14 = sld [smem:[#allocation129_spill]]  ;;  %v2060_v62 = vmul.f32 %v2059_v37, %v2054_v25 }
 0x306   :  { %6175 = sst [smem:[#allocation40_spill]] %s5217_s6 }
 0x307   :  { %s5227_s9 = sld [smem:[#allocation14 + $0x1881]]  ;;  %v2088_v47 = vstv %s6176_s7  ;;  %v2061_v54 = vadd.f32 %v2060_v62, %v2039_v1 }
 0x308   :  { %6177 = sst [smem:[#allocation35_spill]] %s5222_s0  ;;  %v2089_v63 = vmul.f32 %v2088_v47, %v4245_v60  ;;  %v2173_v47 = vstv %s5175_s22 }
 0x309   :  { %s6181_s5 = sld [smem:[#allocation125_spill]] }
 0x30a   :  { %s5232_s17 = sld [smem:[#allocation12 + $0x32]]  ;;  %v2074_v3 = vstv %s6178_s19  ;;  %v2090_v61 = vadd.f32 %v2089_v63, %v2086_v31  ;;  %v2147_v31 = vsel %vm4270_vm1, %v2145_v12, %v2146_v49  ;;  %v2156_v63 = vadd.f32 %v2155_v58, %v2152_v0 }
 0x30b   :  { %s6182_s30 = sld [smem:[#allocation126_spill]]  ;;  %v2092_v29 = vstv %s6179_s14  ;;  %v2075_v53 = vadd.f32 %v2074_v3, %v2072_v56  ;;  %v2141_v3 = vadd.f32 %v2140_v51, %v2138_v59  ;;  %v2174_v56 = vmul.f32 %v2173_v47, %v4117_v6 }
 0x30c   :  { %s6183_s15 = sld [smem:[#allocation137_spill]]  ;;  %v2093_v55 = vmul.f32 %v2092_v29, %v4511_v26  ;;  %v2176_v29 = vstv %s5179_s11 }
 0x30d   :  { %6180 = sst [smem:[#allocation32_spill]] %s5227_s9  ;;  %v2076_v38 = vmax.f32 %v2075_v53, 0.0  ;;  %v2168_v53 = vstv %s5171_s26 }
 0x30e   :  { %s5237_s25 = sld [smem:[#allocation12 + $0xb2]]  ;;  %v2094_v27 = vadd.f32 %v2093_v55, %v2090_v61  ;;  %v2180_v55 = vstv %s5184_s16  ;;  %v2167_v61 = vstv %s5167_s28 }
 0x30f   :  { %s6185_s9 = sld [smem:[#allocation130_spill]]  ;;  %v2079_v28 = vstv %s6181_s5 }
 0x310   :  { %s6186_s0 = sld [smem:[#allocation134_spill]]  ;;  %v2217_v7 = vstv %s5232_s17 }
 0x311   :  { %s5243_s12 = sld [smem:[#allocation12 + $0x132]]  ;;  %v2080_v41 = vstv %s6182_s30 }
 0x312   :  { %s5247_s6 = sld [smem:[#allocation13 + $0x32]]  ;;  %v2107_v18 = vstv %s6183_s15  ;;  %v2081_v50 = vsel %vm4270_vm1, %v2079_v28, %v2080_v41  ;;  %v2177_v28 = vmul.f32 %v2176_v29, %v4245_v60  ;;  %v2160_v41 = vadd.f32 %v2159_v2, %v2156_v63 }
 0x313   :  { %s6187_s19 = sld [smem:[#allocation131_spill]]  ;;  %v2108_v13 = vmul.f32 %v2107_v18, %v4117_v6  ;;  %v2082_v15 = vmul.f32 %v2081_v50, %v2076_v38  ;;  %v2181_v18 = vmul.f32 %v2180_v55, %v4511_v26 }
 0x314   :  { %6184 = sst [smem:[#allocation33_spill]] %s5237_s25 }
 0x315   :  { %s5251_s7 = sld [smem:[#allocation14 + $0x1900]]  ;;  %v2096_v57 = vstv %s6185_s9  ;;  %v2083_v32 = vadd.f32 %v2082_v15, %v2061_v54 }
 0x316   :  { %s6188_s25 = sld [smem:[#allocation133_spill]]  ;;  %v2110_v23 = vstv %s6186_s0  ;;  %v2097_v21 = vadd.f32 %v2096_v57, %v2094_v27  ;;  %v2178_v57 = vadd.f32 %v2177_v28, %v2174_v56  ;;  %v2142_v27 = vmax.f32 %v2141_v3, 0.0 }
 0x317   :  { %s5255_s14 = sld [smem:[#allocation14 + $0x1901]]  ;;  %v2111_v42 = vmul.f32 %v2110_v23, %v4245_v60  ;;  %v2224_v16 = vstv %s5243_s12 }
 0x318   :  { %s5260_s5 = sld [smem:[#allocation12 + $0x33]]  ;;  %v2098_v44 = vmax.f32 %v2097_v21, 0.0  ;;  %v2182_v1 = vadd.f32 %v2181_v18, %v2178_v57  ;;  %v2225_v36 = vmul.f32 %v2224_v16, %v4511_v26  ;;  %v2228_v0 = vstv %s5247_s6 }
 0x319   :  { %v2101_v48 = vstv %s6187_s19  ;;  %s5266_s0 = sld [smem:[#allocation12 + $0xb3]]  ;;  %v2112_v24 = vadd.f32 %v2111_v42, %v2108_v13  ;;  %v2163_v13 = vadd.f32 %v2162_v14, %v2160_v41 }
 0x31a   :  { %s6189_s9 = sld [smem:[#allocation30_spill]] }
 0x31b   :  { %s5270_s30 = sld [smem:[#allocation12 + $0x133]]  ;;  %v2116_v34 = vadd.f32 %v2115_v4, %v2112_v24  ;;  %v2202_v4 = vstv %s5212_s2  ;;  %v2164_v45 = vmax.f32 %v2163_v13, 0.0  ;;  %v2233_v58 = vstv %s5251_s7 }
 0x31c   :  { %v2102_v20 = vstv %s6188_s25  ;;  %s5274_s23 = sld [smem:[#allocation13 + $0x33]]  ;;  %v2203_v8 = vmul.f32 %v2202_v4, %v4511_v26 }
 0x31d   :  { %s5279_s15 = sld [smem:[#allocation14 + $0x1980]]  ;;  %v2103_v46 = vsel %vm4270_vm1, %v2101_v48, %v2102_v20  ;;  %v2119_v19 = vadd.f32 %v2118_v17, %v2116_v34  ;;  %v2169_v20 = vsel %vm4270_vm1, %v2167_v61, %v2168_v53  ;;  %v2148_v34 = vmul.f32 %v2147_v31, %v2142_v27 }
 0x31e   :  { %s5285_s13 = sld [smem:[#allocation14 + $0x1981]]  ;;  %v2104_v35 = vmul.f32 %v2103_v46, %v2098_v44  ;;  %v2218_v46 = vmul.f32 %v2217_v7, %v4117_v6  ;;  %v2170_v59 = vmul.f32 %v2169_v20, %v2164_v45  ;;  %v2239_v51 = vstv %s5260_s5 }
 0x31f   :  { %s5288_s27 = sld [smem:[#allocation12 + $0x34]]  ;;  %v2120_v37 = vmax.f32 %v2119_v19, 0.0  ;;  %v2242_v12 = vstv %s5266_s0  ;;  %v2234_v2 = vstv %s5255_s14 }
 0x320   :  { %v2123_v39 = vstv %s6189_s9  ;;  %s5293_s24 = sld [smem:[#allocation12 + $0xb4]]  ;;  %v2105_v43 = vadd.f32 %v2104_v35, %v2083_v32  ;;  %v2235_v56 = vsel %vm4270_vm1, %v2233_v58, %v2234_v2 }
 0x321   :  { %s5298_s21 = sld [smem:[#allocation12 + $0x134]]  ;;  %v2125_v52 = vsel %vm4270_vm1, %v2123_v39, %v2124_v22  ;;  %v2246_v49 = vstv %s5270_s30 }
 0x322   :  { %s5303_s18 = sld [smem:[#allocation13 + $0x34]]  ;;  %v2126_v25 = vmul.f32 %v2125_v52, %v2120_v37  ;;  %v2240_v37 = vmul.f32 %v2239_v51, %v4117_v6  ;;  %v2243_v52 = vmul.f32 %v2242_v12, %v4245_v60  ;;  %v2247_v47 = vmul.f32 %v2246_v49, %v4511_v26 }
 0x323   :  { %s5308_s29 = sld [smem:[#allocation14 + $0x1a00]]  ;;  %v2255_v57 = vstv %s5279_s15 }
 0x324   :  { %s6190_s4 = sld [smem:[#allocation136_spill]]  ;;  %v2127_v21 = vadd.f32 %v2126_v25, %v2105_v43  ;;  %v2244_v28 = vadd.f32 %v2243_v52, %v2240_v37  ;;  %v2250_v43 = vstv %s5274_s23  ;;  %v2256_v13 = vstv %s5285_s13 }
 0x325   :  { %s5313_s20 = sld [smem:[#allocation14 + $0x1a01]]  ;;  %v2261_v29 = vstv %s5288_s27 }
 0x326   :  { %s6191_s1 = sld [smem:[#allocation31_spill]]  ;;  %v2149_v44 = vadd.f32 %v2148_v34, %v2127_v21  ;;  %v2264_v55 = vstv %s5293_s24  ;;  %v2262_v41 = vmul.f32 %v2261_v29, %v4117_v6  ;;  %v2248_v53 = vadd.f32 %v2247_v47, %v2244_v28 }
 0x327   :  { %s6192_s8 = sld [smem:[#allocation138_spill]]  ;;  %v2265_v61 = vmul.f32 %v2264_v55, %v4245_v60  ;;  %v2268_v18 = vstv %s5298_s21 }
 0x328   :  { %s5319_s3 = sld [smem:[#allocation12 + $0x35]]  ;;  %v2171_v35 = vadd.f32 %v2170_v59, %v2149_v44 }
 0x329   :  { %s5323_s22 = sld [smem:[#allocation12 + $0xb5]] }
 0x32a   :  { %s6193_s10 = sld [smem:[#allocation135_spill]]  ;;  %v2195_v23 = vstv %s6190_s4 }
 0x32b   :  { %s5327_s11 = sld [smem:[#allocation12 + $0x135]]  ;;  %v2196_v50 = vmul.f32 %v2195_v23, %v4117_v6  ;;  %v2269_v23 = vmul.f32 %v2268_v18, %v4511_v26 }
 0x32c   :  { %s6194_s25 = sld [smem:[#allocation34_spill]]  ;;  %v2184_v42 = vstv %s6191_s1 }
 0x32d   :  { %v2198_v40 = vstv %s6192_s8  ;;  %s5331_s16 = sld [smem:[#allocation13 + $0x35]]  ;;  %v2185_v62 = vadd.f32 %v2184_v42, %v2182_v1  ;;  %v2266_v42 = vadd.f32 %v2265_v61, %v2262_v41 }
 0x32e   :  { %s6195_s28 = sld [smem:[#allocation40_spill]]  ;;  %v2199_v48 = vmul.f32 %v2198_v40, %v4245_v60  ;;  %v2283_v40 = vstv %s5319_s3 }
 0x32f   :  { %s6196_s26 = sld [smem:[#allocation33_spill]]  ;;  %v2186_v15 = vmax.f32 %v2185_v62, 0.0  ;;  %v2286_v4 = vstv %s5323_s22  ;;  %v2270_v21 = vadd.f32 %v2269_v23, %v2266_v42  ;;  %v2284_v20 = vmul.f32 %v2283_v40, %v4117_v6 }
 0x330   :  { %s5336_s19 = sld [smem:[#allocation14 + $0x1a80]]  ;;  %v2189_v24 = vstv %s6193_s10  ;;  %v2200_v17 = vadd.f32 %v2199_v48, %v2196_v50  ;;  %v2251_v50 = vadd.f32 %v2250_v43, %v2248_v53  ;;  %v2272_v48 = vstv %s5303_s18 }
 0x331   :  { %s5342_s9 = sld [smem:[#allocation14 + $0x1a81]]  ;;  %v2273_v45 = vadd.f32 %v2272_v48, %v2270_v21 }
 0x332   :  { %v2190_v38 = vstv %s6194_s25  ;;  %s6197_s4 = sld [smem:[#allocation35_spill]]  ;;  %v2204_v54 = vadd.f32 %v2203_v8, %v2200_v17  ;;  %v2290_v8 = vstv %s5327_s11  ;;  %v2277_v17 = vstv %s5308_s29 }
 0x333   :  { %s5346_s1 = sld [smem:[#allocation12 + $0x36]]  ;;  %v2191_v19 = vsel %vm4270_vm1, %v2189_v24, %v2190_v38  ;;  %v2287_v24 = vmul.f32 %v2286_v4, %v4245_v60  ;;  %v2257_v38 = vsel %vm4270_vm1, %v2255_v57, %v2256_v13  ;;  %v2291_v7 = vmul.f32 %v2290_v8, %v4511_v26 }
 0x334   :  { %s6198_s2 = sld [smem:[#allocation32_spill]]  ;;  %v2206_v30 = vstv %s6195_s28  ;;  %v2192_v3 = vmul.f32 %v2191_v19, %v2186_v15  ;;  %v2252_v34 = vmax.f32 %v2251_v50, 0.0  ;;  %v2274_v51 = vmax.f32 %v2273_v45, 0.0 }
 0x335   :  { %v2220_v33 = vstv %s6196_s26  ;;  %s5350_s8 = sld [smem:[#allocation12 + $0xb6]]  ;;  %v2207_v11 = vadd.f32 %v2206_v30, %v2204_v54  ;;  %v2288_v30 = vadd.f32 %v2287_v24, %v2284_v20 }
 0x336   :  { %v2221_v39 = vmul.f32 %v2220_v33, %v4245_v60  ;;  %s5355_s10 = sld [smem:[#allocation12 + $0x136]]  ;;  %v2193_v25 = vadd.f32 %v2192_v3, %v2171_v35  ;;  %v2258_v59 = vmul.f32 %v2257_v38, %v2252_v34 }
 0x337   :  { %s5361_s17 = sld [smem:[#allocation13 + $0x36]]  ;;  %v2208_v31 = vmax.f32 %v2207_v11, 0.0  ;;  %v2292_v44 = vadd.f32 %v2291_v7, %v2288_v30  ;;  %v2299_v11 = vstv %s5336_s19 }
 0x338   :  { %v2211_v22 = vstv %s6197_s4  ;;  %v2222_v5 = vadd.f32 %v2221_v39, %v2218_v46  ;;  %s5364_s25 = sld [smem:[#allocation14 + $0x1b00]]  ;;  %v2278_v46 = vstv %s5313_s20  ;;  %v2294_v39 = vstv %s5331_s16 }
 0x339   :  { %s5369_s12 = sld [smem:[#allocation14 + $0x1b01]]  ;;  %v2305_v33 = vstv %s5346_s1  ;;  %v2279_v12 = vsel %vm4270_vm1, %v2277_v17, %v2278_v46 }
 0x33a   :  { %v2212_v9 = vstv %s6198_s2  ;;  %v2226_v32 = vadd.f32 %v2225_v36, %v2222_v5  ;;  %s5374_s28 = sld [smem:[#allocation12 + $0x37]]  ;;  %v2306_v19 = vmul.f32 %v2305_v33, %v4117_v6  ;;  %v2280_v29 = vmul.f32 %v2279_v12, %v2274_v51 }
 0x33b   :  { %s5379_s5 = sld [smem:[#allocation12 + $0xb7]]  ;;  %v2213_v63 = vsel %vm4270_vm1, %v2211_v22, %v2212_v9  ;;  %v2308_v16 = vstv %s5350_s8  ;;  %v2300_v9 = vstv %s5342_s9 }
 0x33c   :  { %s5384_s6 = sld [smem:[#allocation12 + $0x137]]  ;;  %v2229_v14 = vadd.f32 %v2228_v0, %v2226_v32  ;;  %v2214_v27 = vmul.f32 %v2213_v63, %v2208_v31  ;;  %v2309_v22 = vmul.f32 %v2308_v16, %v4245_v60  ;;  %v2312_v36 = vstv %s5355_s10 }
 0x33d   :  { %s5389_s7 = sld [smem:[#allocation13 + $0x37]]  ;;  %v2313_v5 = vmul.f32 %v2312_v36, %v4511_v26  ;;  %v2295_v32 = vadd.f32 %v2294_v39, %v2292_v44  ;;  %v2301_v35 = vsel %vm4270_vm1, %v2299_v11, %v2300_v9  ;;  %v2316_v52 = vstv %s5361_s17 }
 0x33e   :  { %s5395_s14 = sld [smem:[#allocation14 + $0x1b80]]  ;;  %v2230_v1 = vmax.f32 %v2229_v14, 0.0  ;;  %v2215_v62 = vadd.f32 %v2214_v27, %v2193_v25  ;;  %v2310_v49 = vadd.f32 %v2309_v22, %v2306_v19  ;;  %v2321_v14 = vstv %s5364_s25 }
 0x33f   :  { %s5399_s0 = sld [smem:[#allocation14 + $0x1b81]]  ;;  %v2296_v55 = vmax.f32 %v2295_v32, 0.0 }
 0x340   :  { %s5403_s30 = sld [smem:[#allocation12 + $0x38]]  ;;  %v2236_v54 = vmul.f32 %v2235_v56, %v2230_v1  ;;  %v2327_v0 = vstv %s5374_s28  ;;  %v2314_v37 = vadd.f32 %v2313_v5, %v2310_v49  ;;  %v2322_v56 = vstv %s5369_s12 }
 0x341   :  { %s5407_s23 = sld [smem:[#allocation12 + $0xb8]]  ;;  %v2330_v58 = vstv %s5379_s5  ;;  %v2328_v3 = vmul.f32 %v2327_v0, %v4117_v6  ;;  %v2323_v42 = vsel %vm4270_vm1, %v2321_v14, %v2322_v56  ;;  %v2302_v50 = vmul.f32 %v2301_v35, %v2296_v55 }
 0x342   :  { %s5412_s15 = sld [smem:[#allocation12 + $0x138]]  ;;  %v2237_v15 = vadd.f32 %v2236_v54, %v2215_v62  ;;  %v2334_v2 = vstv %s5384_s6  ;;  %v2331_v31 = vmul.f32 %v2330_v58, %v4245_v60  ;;  %v2317_v43 = vadd.f32 %v2316_v52, %v2314_v37 }
 0x343   :  { %s5418_s13 = sld [smem:[#allocation13 + $0x38]]  ;;  %v2335_v63 = vmul.f32 %v2334_v2, %v4511_v26  ;;  %v2338_v18 = vstv %s5389_s7 }
 0x344   :  { %s5421_s27 = sld [smem:[#allocation14 + $0x1c00]]  ;;  %v2259_v47 = vadd.f32 %v2258_v59, %v2237_v15  ;;  %v2332_v41 = vadd.f32 %v2331_v31, %v2328_v3  ;;  %v2318_v48 = vmax.f32 %v2317_v43, 0.0  ;;  %v2343_v38 = vstv %s5395_s14 }
 0x345   :  { %s5426_s24 = sld [smem:[#allocation14 + $0x1c01]]  ;;  %v2344_v17 = vstv %s5399_s0 }
 0x346   :  { %s5431_s21 = sld [smem:[#allocation12 + $0x39]]  ;;  %v2349_v28 = vstv %s5403_s30  ;;  %v2336_v23 = vadd.f32 %v2335_v63, %v2332_v41  ;;  %v2281_v13 = vadd.f32 %v2280_v29, %v2259_v47  ;;  %v2324_v46 = vmul.f32 %v2323_v42, %v2318_v48 }
 0x347   :  { %s5436_s18 = sld [smem:[#allocation12 + $0xb9]]  ;;  %v2352_v61 = vstv %s5407_s23  ;;  %v2350_v25 = vmul.f32 %v2349_v28, %v4117_v6  ;;  %v2345_v11 = vsel %vm4270_vm1, %v2343_v38, %v2344_v17 }
 0x348   :  { %s5440_s29 = sld [smem:[#allocation12 + $0x139]]  ;;  %v2353_v53 = vmul.f32 %v2352_v61, %v4245_v60  ;;  %v2356_v57 = vstv %s5412_s15  ;;  %v2339_v4 = vadd.f32 %v2338_v18, %v2336_v23  ;;  %v2303_v45 = vadd.f32 %v2302_v50, %v2281_v13 }
 0x349   :  { %s5445_s20 = sld [smem:[#allocation13 + $0x39]]  ;;  %v2357_v27 = vmul.f32 %v2356_v57, %v4511_v26  ;;  %v2360_v7 = vstv %s5418_s13 }
 0x34a   :  { %s5450_s3 = sld [smem:[#allocation14 + $0x1c80]]  ;;  %v2354_v40 = vadd.f32 %v2353_v53, %v2350_v25  ;;  %v2365_v30 = vstv %s5421_s27  ;;  %v2340_v39 = vmax.f32 %v2339_v4, 0.0  ;;  %v2325_v51 = vadd.f32 %v2324_v46, %v2303_v45 }
 0x34b   :  { %s5455_s22 = sld [smem:[#allocation14 + $0x1c81]]  ;;  %v2366_v16 = vstv %s5426_s24 }
 0x34c   :  { %s5460_s11 = sld [smem:[#allocation12 + $0x3a]]  ;;  %v2371_v1 = vstv %s5431_s21  ;;  %v2358_v20 = vadd.f32 %v2357_v27, %v2354_v40  ;;  %v2367_v12 = vsel %vm4270_vm1, %v2365_v30, %v2366_v16  ;;  %v2346_v2 = vmul.f32 %v2345_v11, %v2340_v39 }
 0x34d   :  { %s5463_s16 = sld [smem:[#allocation12 + $0xba]]  ;;  %v2374_v21 = vstv %s5436_s18  ;;  %v2372_v24 = vmul.f32 %v2371_v1, %v4117_v6 }
 0x34e   :  { %s5469_s26 = sld [smem:[#allocation12 + $0x13a]]  ;;  %v2375_v8 = vmul.f32 %v2374_v21, %v4245_v60  ;;  %v2378_v62 = vstv %s5440_s29  ;;  %v2361_v19 = vadd.f32 %v2360_v7, %v2358_v20  ;;  %v2347_v56 = vadd.f32 %v2346_v2, %v2325_v51 }
 0x34f   :  { %s5472_s19 = sld [smem:[#allocation13 + $0x3a]]  ;;  %v2379_v34 = vmul.f32 %v2378_v62, %v4511_v26  ;;  %v2382_v9 = vstv %s5445_s20 }
 0x350   :  { %s5477_s9 = sld [smem:[#allocation14 + $0x1d00]]  ;;  %v2376_v33 = vadd.f32 %v2375_v8, %v2372_v24  ;;  %v2387_v49 = vstv %s5450_s3  ;;  %v2362_v35 = vmax.f32 %v2361_v19, 0.0 }
 0x351   :  { %s5480_s4 = sld [smem:[#allocation14 + $0x1d01]]  ;;  %v2388_v52 = vstv %s5455_s22 }
 0x352   :  { %s5485_s1 = sld [smem:[#allocation12 + $0x3b]]  ;;  %v2393_v54 = vstv %s5460_s11  ;;  %v2380_v22 = vadd.f32 %v2379_v34, %v2376_v33  ;;  %v2368_v55 = vmul.f32 %v2367_v12, %v2362_v35  ;;  %v2389_v43 = vsel %vm4270_vm1, %v2387_v49, %v2388_v52 }
 0x353   :  { %s5491_s2 = sld [smem:[#allocation12 + $0xbb]]  ;;  %v2396_v44 = vstv %s5463_s16  ;;  %v2394_v5 = vmul.f32 %v2393_v54, %v4117_v6 }
 0x354   :  { %s5495_s8 = sld [smem:[#allocation12 + $0x13b]]  ;;  %v2397_v36 = vmul.f32 %v2396_v44, %v4245_v60  ;;  %v2400_v15 = vstv %s5469_s26  ;;  %v2383_v37 = vadd.f32 %v2382_v9, %v2380_v22  ;;  %v2369_v42 = vadd.f32 %v2368_v55, %v2347_v56 }
 0x355   :  { %s5499_s10 = sld [smem:[#allocation13 + $0x3b]]  ;;  %v2401_v59 = vmul.f32 %v2400_v15, %v4511_v26  ;;  %v2404_v29 = vstv %s5472_s19 }
 0x356   :  { %s5503_s17 = sld [smem:[#allocation14 + $0x1d80]]  ;;  %v2398_v32 = vadd.f32 %v2397_v36, %v2394_v5  ;;  %v2384_v61 = vmax.f32 %v2383_v37, 0.0  ;;  %v2409_v40 = vstv %s5477_s9 }
 0x357   :  { %s5510_s25 = sld [smem:[#allocation14 + $0x1d81]]  ;;  %v2410_v1 = vstv %s5480_s4  ;;  %s3132_s4 = smov [#allocation17]  }
 0x358   :  { %s5514_s12 = sld [smem:[#allocation12 + $0x3c]]  ;;  %v2415_v0 = vstv %s5485_s1  ;;  %v2402_v47 = vadd.f32 %v2401_v59, %v2398_v32  ;;  %v2390_v4 = vmul.f32 %v2389_v43, %v2384_v61  ;;  %v2411_v24 = vsel %vm4270_vm1, %v2409_v40, %v2410_v1  ;;  %s2530_s1 = sshll.u32 %s3132_s4, 4  ;;  %s2531_s1 = int_to_ptr.vmem [resolvable:$true] %s2530_s1 }
 0x359   :  { %v2418_v58 = vstv %s5491_s2  ;;  %s2906_s28 = sld [smem:[#allocation12 + $0xbc]]  ;;  %v2416_v3 = vmul.f32 %v2415_v0, %v4117_v6 }
 0x35a   :  { %s2907_s5 = sld [smem:[#allocation12 + $0x13c]]  ;;  %v2419_v31 = vmul.f32 %v2418_v58, %v4245_v60  ;;  %v2422_v63 = vstv %s5495_s8  ;;  %v2405_v18 = vadd.f32 %v2404_v29, %v2402_v47  ;;  %v2391_v17 = vadd.f32 %v2390_v4, %v2369_v42 }
 0x35b   :  { %s5523_s6 = sld [smem:[#allocation13 + $0x3c]]  ;;  %v2423_v14 = vmul.f32 %v2422_v63, %v4511_v26  ;;  %v2426_v57 = vstv %s5499_s10 }
 0x35c   :  { %s5527_s7 = sld [smem:[#allocation14 + $0x1e00]]  ;;  %v2420_v28 = vadd.f32 %v2419_v31, %v2416_v3  ;;  %v2406_v21 = vmax.f32 %v2405_v18, 0.0  ;;  %v2431_v7 = vstv %s5503_s17 }
 0x35d   :  { %s5529_s14 = sld [smem:[#allocation14 + $0x1e01]]  ;;  %v2432_v34 = vstv %s5510_s25 }
 0x35e   :  { %v2437_v41 = vstv %s5514_s12  ;;  %s5534_s0 = sld [smem:[#allocation12 + $0x3d]]  ;;  %v2424_v25 = vadd.f32 %v2423_v14, %v2420_v28  ;;  %v2412_v46 = vmul.f32 %v2411_v24, %v2406_v21  ;;  %v2433_v19 = vsel %vm4270_vm1, %v2431_v7, %v2432_v34 }
 0x35f   :  { %v2440_v53 = vstv %s2906_s28  ;;  %s2912_s30 = sld [smem:[#allocation12 + $0xbd]]  ;;  %v2438_v23 = vmul.f32 %v2437_v41, %v4117_v6 }
 0x360   :  { %v2441_v27 = vmul.f32 %v2440_v53, %v4245_v60  ;;  %v2444_v13 = vstv %s2907_s5  ;;  %s2913_s23 = sld [smem:[#allocation12 + $0x13d]]  ;;  %v2427_v20 = vadd.f32 %v2426_v57, %v2424_v25  ;;  %v2413_v11 = vadd.f32 %v2412_v46, %v2391_v17 }
 0x361   :  { %v2445_v50 = vmul.f32 %v2444_v13, %v4511_v26  ;;  %s5542_s15 = sld [smem:[#allocation13 + $0x3d]]  ;;  %v2448_v62 = vstv %s5523_s6 }
 0x362   :  { %v2442_v48 = vadd.f32 %v2441_v27, %v2438_v23  ;;  %s5544_s13 = sld [smem:[#allocation14 + $0x1e80]]  ;;  %v2428_v39 = vmax.f32 %v2427_v20, 0.0  ;;  %v2453_v22 = vstv %s5527_s7 }
 0x363   :  { %s5546_s27 = sld [smem:[#allocation14 + $0x1e81]]  ;;  %v2454_v36 = vstv %s5529_s14 }
 0x364   :  { %v2446_v8 = vadd.f32 %v2445_v50, %v2442_v48  ;;  %v2459_v38 = vstv %s5534_s0  ;;  %s5552_s24 = sld [smem:[#allocation12 + $0x3e]]  ;;  %v2434_v51 = vmul.f32 %v2433_v19, %v2428_v39  ;;  %v2455_v49 = vsel %vm4270_vm1, %v2453_v22, %v2454_v36 }
 0x365   :  { %v2462_v45 = vstv %s2912_s30  ;;  %s2918_s21 = sld [smem:[#allocation12 + $0xbe]]  ;;  %v2460_v30 = vmul.f32 %v2459_v38, %v4117_v6 }
 0x366   :  { %v2463_v33 = vmul.f32 %v2462_v45, %v4245_v60  ;;  %v2466_v54 = vstv %s2913_s23  ;;  %s5558_s18 = sld [smem:[#allocation12 + $0x13e]]  ;;  %v2449_v16 = vadd.f32 %v2448_v62, %v2446_v8  ;;  %v2435_v37 = vadd.f32 %v2434_v51, %v2413_v11 }
 0x367   :  { %v2467_v44 = vmul.f32 %v2466_v54, %v4511_v26  ;;  %s5561_s29 = sld [smem:[#allocation13 + $0x3e]]  ;;  %v2470_v9 = vstv %s5542_s15 }
 0x368   :  { %v2464_v15 = vadd.f32 %v2463_v33, %v2460_v30  ;;  %s5567_s20 = sld [smem:[#allocation14 + $0x1f00]]  ;;  %v2450_v12 = vmax.f32 %v2449_v16, 0.0  ;;  %v2475_v52 = vstv %s5544_s13 }
 0x369   :  { %s5570_s3 = sld [smem:[#allocation14 + $0x1f01]]  ;;  %v2476_v47 = vstv %s5546_s27 }
 0x36a   :  { %v2468_v5 = vadd.f32 %v2467_v44, %v2464_v15  ;;  %v2481_v59 = vstv %s5552_s24  ;;  %s2923_s22 = sld [smem:[#allocation12 + $0x3f]]  ;;  %v2456_v63 = vmul.f32 %v2455_v49, %v2450_v12  ;;  %v2477_v56 = vsel %vm4270_vm1, %v2475_v52, %v2476_v47 }
 0x36b   :  { %v2484_v32 = vstv %s2918_s21  ;;  %s2924_s11 = sld [smem:[#allocation12 + $0xbf]]  ;;  %v2482_v58 = vmul.f32 %v2481_v59, %v4117_v6 }
 0x36c   :  { %v2471_v0 = vadd.f32 %v2470_v9, %v2468_v5  ;;  %v2485_v2 = vmul.f32 %v2484_v32, %v4245_v60  ;;  %v2488_v35 = vstv %s5558_s18  ;;  %s2925_s16 = sld [smem:[#allocation12 + $0x13f]]  ;;  %v2457_v43 = vadd.f32 %v2456_v63, %v2435_v37 }
 0x36d   :  { %v2489_v3 = vmul.f32 %v2488_v35, %v4511_v26  ;;  %s2926_s26 = sld [smem:[#allocation13 + $0x3f]]  ;;  %v2492_v29 = vstv %s5561_s29 }
 0x36e   :  { %v2486_v31 = vadd.f32 %v2485_v2, %v2482_v58  ;;  %s2927_s19 = sld [smem:[#allocation14 + $0x1f80]]  ;;  %v2472_v14 = vmax.f32 %v2471_v0, 0.0  ;;  %v2497_v41 = vstv %s5567_s20 }
 0x36f   :  { %s2928_s9 = sld [smem:[#allocation14 + $0x1f81]]  ;;  %v2498_v61 = vstv %s5570_s3 }
 0x370   :  { %v2490_v28 = vadd.f32 %v2489_v3, %v2486_v31  ;;  %v2503_v55 = vstv %s2923_s22  ;;  %v2478_v13 = vmul.f32 %v2477_v56, %v2472_v14  ;;  %v2499_v1 = vsel %vm4270_vm1, %v2497_v41, %v2498_v61  ;;  %s6199_s10 = sld [smem:[#allocation139_spill]] }
 0x371   :  { %v2506_v18 = vstv %s2924_s11  ;;  %v2504_v53 = vmul.f32 %v2503_v55, %v4117_v6 }
 0x372   :  { %v2493_v25 = vadd.f32 %v2492_v29, %v2490_v28  ;;  %v2507_v57 = vmul.f32 %v2506_v18, %v4245_v60  ;;  %v2510_v23 = vstv %s2925_s16  ;;  %v2479_v48 = vadd.f32 %v2478_v13, %v2457_v43 }
 0x373   :  { %v2511_v27 = vmul.f32 %v2510_v23, %v4511_v26  ;;  %v2514_v50 = vstv %s2926_s26 }
 0x374   :  { %v2494_v42 = vmax.f32 %v2493_v25, 0.0  ;;  %v2508_v40 = vadd.f32 %v2507_v57, %v2504_v53  ;;  %v2519_v21 = vstv %s2927_s19 }
 0x375   :  { %v2520_v20 = vstv %s2928_s9 }
 0x376   :  { %v2512_v4 = vadd.f32 %v2511_v27, %v2508_v40  ;;  %v2500_v24 = vmul.f32 %v2499_v1, %v2494_v42  ;;  %v2521_v6 = vsel %vm4270_vm1, %v2519_v21, %v2520_v20  ;;  %s2532_s17 = sshll.u32 %s6199_s10, 4  ;;  %s2533_s17 = int_to_ptr.hbm [resolvable:$true] %s2532_s17 }
 0x378   :  { %v2515_v8 = vadd.f32 %v2514_v50, %v2512_v4  ;;  %v2501_v60 = vadd.f32 %v2500_v24, %v2479_v48 }
 0x37a   :  { %v2516_v62 = vmax.f32 %v2515_v8, 0.0 }
 0x37c   :  { %v2522_v26 = vmul.f32 %v2521_v6, %v2516_v62 }
 0x37e   :  { %v2523_v38 = vadd.f32 %v2522_v26, %v2501_v60 }
 0x380   :  { %2524 = vst [vmem:[#allocation17] sm:$0xff] %v2523_v38 }
 0x381   :  { %2535 = dma.vmem_to_hbm [thread:$0]  %s2531_s1, 128, %s2533_s17, [#allocation4]  }
 0x382   :  { %3120 = dma.done.wait [#allocation4], 128  }
 0x383   :  { %3121 = vsyncadd [#allocation4], 4294967168 }
 0x384   :  { %2540 = vsyncpa [#allocation3], 1 }
 0x385   :  { %2541 = vsyncpa [#allocation8], 1 }
 0x386   :  { %2542 = vsyncpa [#allocation11], 1 }
 0x387   :  { %2543 = vsyncpa [#allocation4], 1 }
 0x388   :  { %2544 = vsyncpa [#allocation5], 1 }
 0x389   :  { %2545 = vsyncpa [#allocation6], 1 }
 0x38a   :  { %2546 = vsyncpa [#allocation15], 1 }

</bundles_post_ra>
